<compile_context>
chip_gen: v5e
topology: v5e:2x2
jax: 0.10.0
libtpu: 0.0.40
codegen_flags: <defaults>
</compile_context>

<pallas_src>
import jax
import jax.numpy as jnp
import numpy as np
from jax.experimental import pallas as pl
from jax.experimental.pallas import tpu as pltpu


def make_nott_attention_kernel(*, dim, num_heads, n_t, n_s, batch_block, mxu_dtype):
    """Returns the kernel body closed over static sizes."""
    head_dim = dim // num_heads
    scale = head_dim ** (-0.5)
    n_tot = n_t + n_s
    Bb = batch_block

    def _softmax_lastdim(logits_f32):
        # max-subtracted softmax, f32 math, EUP approximate reciprocal.
        m = jnp.max(logits_f32, axis=-1, keepdims=True)
        e = jnp.exp(logits_f32 - m)
        s = jnp.sum(e, axis=-1, keepdims=True)
        return e * pl.reciprocal(s, approx=True)

    def kernel(x_ref, wq_ref, wk_ref, wv_ref, wp_ref, bproj_ref, o_ref):
        # x_ref: (Bb, N, C) block.  Fold batch into the projection M-dim.
        x2d = x_ref[...].reshape(Bb * n_tot, dim)          # merge leading dims
        x_m = x2d.astype(mxu_dtype)

        # f32 accumulators for the (per-head accumulated) output projection.
        acc_t = jnp.zeros((Bb * n_t, dim), jnp.float32)
        acc_s = jnp.zeros((Bb * n_s, dim), jnp.float32)

        # Static per-head loop (num_heads is small and static).
        for h in range(num_heads):
            # Per-head Q/K/V projections: head selection is a *leading-axis*
            # index of the head-major weight refs, not a lane slice.
            q = jnp.dot(x_m, wq_ref[h], preferred_element_type=jnp.float32)
            k = jnp.dot(x_m, wk_ref[h], preferred_element_type=jnp.float32)
            v = jnp.dot(x_m, wv_ref[h], preferred_element_type=jnp.float32)

            # Fold scale into q (multiply on (Bb*N, d), not on the logits).
            q3 = (q * scale).reshape(Bb, n_tot, head_dim).astype(mxu_dtype)
            k3 = k.reshape(Bb, n_tot, head_dim).astype(mxu_dtype)
            v3 = v.reshape(Bb, n_tot, head_dim).astype(mxu_dtype)

            q_t = q3[:, :n_t, :]
            q_s = q3[:, n_t:, :]
            k_s = k3[:, n_t:, :]
            v_s = v3[:, n_t:, :]

            # ---- branch 1: template queries attend to search keys ----
            logits_t = jnp.einsum('bqd,bkd->bqk', q_t, k_s,
                                  preferred_element_type=jnp.float32)
            p_t = _softmax_lastdim(logits_t).astype(mxu_dtype)
            o_t = jnp.einsum('bqk,bkd->bqd', p_t, v_s,
                             preferred_element_type=jnp.float32)   # (Bb, n_t, d)

            # ---- branch 2: search queries attend to all keys ----
            # TODO(synk): at production sequence lengths tile this over n_s
            # (running softmax) instead of materializing (Bb, n_s, N) at once.
            logits_s = jnp.einsum('bqd,bkd->bqk', q_s, k3,
                                  preferred_element_type=jnp.float32)
            p_s = _softmax_lastdim(logits_s).astype(mxu_dtype)
            o_s = jnp.einsum('bqk,bkd->bqd', p_s, v3,
                             preferred_element_type=jnp.float32)   # (Bb, n_s, d)

            # ---- per-head accumulation of the output projection ----
            # (replaces the lane-axis concat of per-head results)
            wp_h = wp_ref[h]                                        # (d, C)
            acc_t = acc_t + jnp.dot(
                o_t.reshape(Bb * n_t, head_dim).astype(mxu_dtype), wp_h,
                preferred_element_type=jnp.float32)
            acc_s = acc_s + jnp.dot(
                o_s.reshape(Bb * n_s, head_dim).astype(mxu_dtype), wp_h,
                preferred_element_type=jnp.float32)

        bias = bproj_ref[...]                                       # (1, C) f32
        y_t = (acc_t + bias).reshape(Bb, n_t, dim).astype(o_ref.dtype)
        y_s = (acc_s + bias).reshape(Bb, n_s, dim).astype(o_ref.dtype)
        o_ref[:, :n_t, :] = y_t
        o_ref[:, n_t:, :] = y_s

    return kernel


def nott_attention_pallas(x, w_qkv, w_proj, b_proj, *, num_heads, t_h, t_w, s_h, s_w,
                          batch_block=None, mxu_dtype=jnp.bfloat16):
    # TODO(synk): padding_mask path not implemented (forward is called with None here).
    # Dropout layers are identity at inference and are therefore omitted.
    B, N, C = x.shape
    n_t = t_h * t_w * 2
    n_s = s_h * s_w
    assert n_t + n_s == N
    d = C // num_heads
    assert num_heads * d == C
    # Sublane (8) alignment of the token split; pad upstream if violated.
    assert n_t % 8 == 0 and n_s % 8 == 0

    if batch_block is None:
        # Largest divisor of B that is <= 8: amortizes per-step overhead while
        # keeping VMEM bounded; for large B this still leaves >= 2 parallel
        # grid steps for the two TensorCores on v7x.
        batch_block = next(c for c in (8, 4, 2, 1) if c <= B and B % c == 0)
    assert B % batch_block == 0
    Bb = batch_block

    # Head-major weight layouts, prepared outside the kernel (free XLA reshapes).
    # PyTorch qkv packs the 3C output axis as (3, H, d):
    w_q = w_qkv[:, 0 * C:1 * C].reshape(C, num_heads, d).transpose(1, 0, 2)  # (H, C, d)
    w_k = w_qkv[:, 1 * C:2 * C].reshape(C, num_heads, d).transpose(1, 0, 2)
    w_v = w_qkv[:, 2 * C:3 * C].reshape(C, num_heads, d).transpose(1, 0, 2)
    w_p = w_proj.reshape(num_heads, d, C)                                    # (H, d, C)

    # MXU operands in mxu_dtype (bf16 by default); halves weight VMEM too.
    w_q = w_q.astype(mxu_dtype)
    w_k = w_k.astype(mxu_dtype)
    w_v = w_v.astype(mxu_dtype)
    w_p = w_p.astype(mxu_dtype)
    b_proj_2d = b_proj.reshape(1, C).astype(jnp.float32)

    kernel = make_nott_attention_kernel(dim=C, num_heads=num_heads, n_t=n_t, n_s=n_s,
                                        batch_block=Bb, mxu_dtype=mxu_dtype)

    # NOTE(v7x): at production dims the constant-index weight blocks below are
    # still double-buffered by the pipeline; single-buffer them (or DMA them
    # manually via memory_space=pl.ANY) if VMEM gets tight on 64 MiB parts.
    return pl.pallas_call(
        kernel,
        out_shape=jax.ShapeDtypeStruct((B, N, C), x.dtype),
        grid_spec=pltpu.PrefetchScalarGridSpec(
            num_scalar_prefetch=0,
            grid=(B // Bb,),
            in_specs=[
                pl.BlockSpec((Bb, N, C), lambda b: (b, 0, 0)),            # x
                pl.BlockSpec((num_heads, C, d), lambda b: (0, 0, 0)),     # w_q
                pl.BlockSpec((num_heads, C, d), lambda b: (0, 0, 0)),     # w_k
                pl.BlockSpec((num_heads, C, d), lambda b: (0, 0, 0)),     # w_v
                pl.BlockSpec((num_heads, d, C), lambda b: (0, 0, 0)),     # w_proj
                pl.BlockSpec((1, C), lambda b: (0, 0)),                   # b_proj
            ],
            out_specs=pl.BlockSpec((Bb, N, C), lambda b: (b, 0, 0)),
        ),
        compiler_params=pltpu.CompilerParams(
            dimension_semantics=("parallel",),
            vmem_limit_bytes=32 * 1024 * 1024,
        ),
    )(x, w_q, w_k, w_v, w_p, b_proj_2d)


def nott_attention_ref(x, w_qkv, w_proj, b_proj, *, num_heads, t_h, t_w, s_h, s_w):
    """Pure-JAX reference mirroring the PyTorch forward (padding_mask=None)."""
    B, N, C = x.shape
    d = C // num_heads
    scale = d ** (-0.5)
    n_t = t_h * t_w * 2

    qkv = x @ w_qkv                                            # (B, N, 3C)
    qkv = qkv.reshape(B, N, 3, num_heads, d).transpose(2, 0, 3, 1, 4)
    q, k, v = qkv[0], qkv[1], qkv[2]                           # (B, H, N, d)

    q_t, q_s = q[:, :, :n_t], q[:, :, n_t:]
    k_s = k[:, :, n_t:]
    v_s = v[:, :, n_t:]

    attn = (q_t @ jnp.swapaxes(k_s, -2, -1)) * scale
    attn = jax.nn.softmax(attn, axis=-1)
    x_t = (attn @ v_s).transpose(0, 2, 1, 3).reshape(B, n_t, C)

    attn = (q_s @ jnp.swapaxes(k, -2, -1)) * scale
    attn = jax.nn.softmax(attn, axis=-1)
    x_s = (attn @ v).transpose(0, 2, 1, 3).reshape(B, N - n_t, C)

    out = jnp.concatenate([x_t, x_s], axis=1)
    return out @ w_proj + b_proj


if __name__ == "__main__":
    # Small, deterministic configuration.
    B = 2
    dim = 32
    num_heads = 4
    t_h = t_w = 4          # N_t = 4*4*2 = 32
    s_h = s_w = 4          # N_s = 16
    N = t_h * t_w * 2 + s_h * s_w   # 48

    key = jax.random.PRNGKey(0)
    k_x, k_qkv, k_proj, k_b = jax.random.split(key, 4)

    x = jax.random.normal(k_x, (B, N, dim), dtype=jnp.float32)
    # Parameters (deterministic, synthetic). Stored as (in, out).
    w_qkv = jax.random.normal(k_qkv, (dim, 3 * dim), dtype=jnp.float32) * 0.05
    w_proj = jax.random.normal(k_proj, (dim, dim), dtype=jnp.float32) * 0.05
    b_proj = jax.random.normal(k_b, (dim,), dtype=jnp.float32) * 0.05

    ref = nott_attention_ref(x, w_qkv, w_proj, b_proj,
                             num_heads=num_heads,
                             t_h=t_h, t_w=t_w, s_h=s_h, s_w=s_w)
    ref = jax.block_until_ready(ref)

    # 1) f32 MXU operands: tight numerical check (approx reciprocal only).
    out_f32 = nott_attention_pallas(x, w_qkv, w_proj, b_proj,
                                    num_heads=num_heads,
                                    t_h=t_h, t_w=t_w, s_h=s_h, s_w=s_w,
                                    mxu_dtype=jnp.float32)
    out_f32 = jax.block_until_ready(out_f32)
    assert out_f32.shape == (B, N, dim)
    np.testing.assert_allclose(np.asarray(out_f32), np.asarray(ref),
                               rtol=5e-3, atol=5e-3)

    # 2) default bf16 MXU operands (v6e/v7x fast path): looser tolerance.
    out_bf16 = nott_attention_pallas(x, w_qkv, w_proj, b_proj,
                                     num_heads=num_heads,
                                     t_h=t_h, t_w=t_w, s_h=s_h, s_w=s_w)
    out_bf16 = jax.block_until_ready(out_bf16)
    assert out_bf16.shape == (B, N, dim)
    np.testing.assert_allclose(np.asarray(out_bf16), np.asarray(ref),
                               rtol=2e-2, atol=2e-2)

    print("KERNEL_OK")
</pallas_src>

<mosaic_0001>
module attributes {stable_mosaic.version = 11 : i64} {
  func.func @kernel(%arg0: i32, %arg1: memref<2x48x32xf32, #tpu.memory_space<vmem>>, %arg2: memref<4x32x8xf32, #tpu.memory_space<vmem>>, %arg3: memref<4x32x8xf32, #tpu.memory_space<vmem>>, %arg4: memref<4x32x8xf32, #tpu.memory_space<vmem>>, %arg5: memref<4x8x32xf32, #tpu.memory_space<vmem>>, %arg6: memref<1x32xf32, #tpu.memory_space<vmem>>, %arg7: memref<2x48x32xf32, #tpu.memory_space<vmem>>) attributes {dimension_semantics = [#tpu.dimension_semantics<parallel>], iteration_bounds = array<i64: 1>, scalar_prefetch = 0 : i64, scratch_operands = 0 : i64, tpu.core_type = #tpu.core_type<tc>, window_params = [{transform_indices = @transform_0, window_bounds = array<i64: 2, 48, 32>}, {pipeline_mode = #tpu.pipeline_mode<synchronous>, transform_indices = @transform_1, window_bounds = array<i64: 4, 32, 8>}, {pipeline_mode = #tpu.pipeline_mode<synchronous>, transform_indices = @transform_2, window_bounds = array<i64: 4, 32, 8>}, {pipeline_mode = #tpu.pipeline_mode<synchronous>, transform_indices = @transform_3, window_bounds = array<i64: 4, 32, 8>}, {pipeline_mode = #tpu.pipeline_mode<synchronous>, transform_indices = @transform_4, window_bounds = array<i64: 4, 8, 32>}, {pipeline_mode = #tpu.pipeline_mode<synchronous>, transform_indices = @transform_5, window_bounds = array<i64: 1, 32>}, {transform_indices = @transform_6, window_bounds = array<i64: 2, 48, 32>}]} {
    %c0 = arith.constant 0 : index
    %c0_0 = arith.constant 0 : index
    %c0_1 = arith.constant 0 : index
    %0 = vector.load %arg1[%c0, %c0_0, %c0_1] : memref<2x48x32xf32, #tpu.memory_space<vmem>>, vector<2x48x32xf32>
    %1 = vector.shape_cast %0 : vector<2x48x32xf32> to vector<96x32xf32>
    %cst = arith.constant 0.000000e+00 : f32
    %2 = vector.broadcast %cst : f32 to vector<64x32xf32>
    %cst_2 = arith.constant 0.000000e+00 : f32
    %3 = vector.broadcast %cst_2 : f32 to vector<32x32xf32>
    %c0_3 = arith.constant 0 : index
    %c0_4 = arith.constant 0 : index
    %c0_5 = arith.constant 0 : index
    %4 = vector.load %arg2[%c0_3, %c0_4, %c0_5] : memref<4x32x8xf32, #tpu.memory_space<vmem>>, vector<1x32x8xf32>
    %5 = vector.shape_cast %4 : vector<1x32x8xf32> to vector<32x8xf32>
    %cst_6 = arith.constant dense<0.000000e+00> : vector<96x8xf32>
    %6 = tpu.matmul %1, %5, %cst_6 {dimension_numbers = #tpu.dot_dimension_numbers<[1], [0], [0], [1], [0, 0, 1, 1], [], []>} : vector<96x32xf32>, vector<32x8xf32>, vector<96x8xf32> -> vector<96x8xf32>
    %c0_7 = arith.constant 0 : index
    %c0_8 = arith.constant 0 : index
    %c0_9 = arith.constant 0 : index
    %7 = vector.load %arg3[%c0_7, %c0_8, %c0_9] : memref<4x32x8xf32, #tpu.memory_space<vmem>>, vector<1x32x8xf32>
    %8 = vector.shape_cast %7 : vector<1x32x8xf32> to vector<32x8xf32>
    %cst_10 = arith.constant dense<0.000000e+00> : vector<96x8xf32>
    %9 = tpu.matmul %1, %8, %cst_10 {dimension_numbers = #tpu.dot_dimension_numbers<[1], [0], [0], [1], [0, 0, 1, 1], [], []>} : vector<96x32xf32>, vector<32x8xf32>, vector<96x8xf32> -> vector<96x8xf32>
    %c0_11 = arith.constant 0 : index
    %c0_12 = arith.constant 0 : index
    %c0_13 = arith.constant 0 : index
    %10 = vector.load %arg4[%c0_11, %c0_12, %c0_13] : memref<4x32x8xf32, #tpu.memory_space<vmem>>, vector<1x32x8xf32>
    %11 = vector.shape_cast %10 : vector<1x32x8xf32> to vector<32x8xf32>
    %cst_14 = arith.constant dense<0.000000e+00> : vector<96x8xf32>
    %12 = tpu.matmul %1, %11, %cst_14 {dimension_numbers = #tpu.dot_dimension_numbers<[1], [0], [0], [1], [0, 0, 1, 1], [], []>} : vector<96x32xf32>, vector<32x8xf32>, vector<96x8xf32> -> vector<96x8xf32>
    %cst_15 = arith.constant 0.353553385 : f32
    %13 = vector.broadcast %cst_15 : f32 to vector<96x8xf32>
    %14 = arith.mulf %6, %13 : vector<96x8xf32>
    %15 = vector.shape_cast %14 : vector<96x8xf32> to vector<2x48x8xf32>
    %16 = vector.shape_cast %9 : vector<96x8xf32> to vector<2x48x8xf32>
    %17 = vector.shape_cast %12 : vector<96x8xf32> to vector<2x48x8xf32>
    %18 = vector.extract_strided_slice %15 {offsets = [0, 0, 0], sizes = [2, 32, 8], strides = [1, 1, 1]} : vector<2x48x8xf32> to vector<2x32x8xf32>
    %19 = vector.extract_strided_slice %15 {offsets = [0, 32, 0], sizes = [2, 16, 8], strides = [1, 1, 1]} : vector<2x48x8xf32> to vector<2x16x8xf32>
    %20 = vector.extract_strided_slice %16 {offsets = [0, 32, 0], sizes = [2, 16, 8], strides = [1, 1, 1]} : vector<2x48x8xf32> to vector<2x16x8xf32>
    %21 = vector.extract_strided_slice %17 {offsets = [0, 32, 0], sizes = [2, 16, 8], strides = [1, 1, 1]} : vector<2x48x8xf32> to vector<2x16x8xf32>
    "tpu.trace_start"() <{level = 10 : i32, message = "bqd,bkd->bqk"}> : () -> ()
    %cst_16 = arith.constant dense<0.000000e+00> : vector<2x32x16xf32>
    %22 = tpu.matmul %18, %20, %cst_16 {dimension_numbers = #tpu.dot_dimension_numbers<[2], [2], [1], [1], [0, 0, 0, 1, 1, 1], [0], [0]>} : vector<2x32x8xf32>, vector<2x16x8xf32>, vector<2x32x16xf32> -> vector<2x32x16xf32>
    "tpu.trace_stop"() : () -> ()
    %cst_17 = arith.constant dense<0xFF800000> : vector<2x32xf32>
    %23 = vector.multi_reduction <maximumf>, %22, %cst_17 [2] : vector<2x32x16xf32> to vector<2x32xf32>
    %24 = vector.shape_cast %23 : vector<2x32xf32> to vector<2x32x1xf32>
    %25 = vector.broadcast %24 : vector<2x32x1xf32> to vector<2x32x16xf32>
    %26 = arith.subf %22, %25 : vector<2x32x16xf32>
    %27 = math.exp %26 : vector<2x32x16xf32>
    %cst_18 = arith.constant dense<0.000000e+00> : vector<2x32xf32>
    %28 = vector.multi_reduction <add>, %27, %cst_18 [2] : vector<2x32x16xf32> to vector<2x32xf32>
    %29 = vector.shape_cast %28 : vector<2x32xf32> to vector<2x32x1xf32>
    %30 = tpu.reciprocal %29 {approx = true} : vector<2x32x1xf32> -> vector<2x32x1xf32>
    %31 = vector.broadcast %30 : vector<2x32x1xf32> to vector<2x32x16xf32>
    %32 = arith.mulf %27, %31 : vector<2x32x16xf32>
    "tpu.trace_start"() <{level = 10 : i32, message = "bqk,bkd->bqd"}> : () -> ()
    %cst_19 = arith.constant dense<0.000000e+00> : vector<2x32x8xf32>
    %33 = tpu.matmul %32, %21, %cst_19 {dimension_numbers = #tpu.dot_dimension_numbers<[2], [1], [1], [2], [0, 0, 0, 1, 1, 2], [0], [0]>} : vector<2x32x16xf32>, vector<2x16x8xf32>, vector<2x32x8xf32> -> vector<2x32x8xf32>
    "tpu.trace_stop"() : () -> ()
    "tpu.trace_start"() <{level = 10 : i32, message = "bqd,bkd->bqk"}> : () -> ()
    %cst_20 = arith.constant dense<0.000000e+00> : vector<2x16x48xf32>
    %34 = tpu.matmul %19, %16, %cst_20 {dimension_numbers = #tpu.dot_dimension_numbers<[2], [2], [1], [1], [0, 0, 0, 1, 1, 1], [0], [0]>} : vector<2x16x8xf32>, vector<2x48x8xf32>, vector<2x16x48xf32> -> vector<2x16x48xf32>
    "tpu.trace_stop"() : () -> ()
    %cst_21 = arith.constant dense<0xFF800000> : vector<2x16xf32>
    %35 = vector.multi_reduction <maximumf>, %34, %cst_21 [2] : vector<2x16x48xf32> to vector<2x16xf32>
    %36 = vector.shape_cast %35 : vector<2x16xf32> to vector<2x16x1xf32>
    %37 = vector.broadcast %36 : vector<2x16x1xf32> to vector<2x16x48xf32>
    %38 = arith.subf %34, %37 : vector<2x16x48xf32>
    %39 = math.exp %38 : vector<2x16x48xf32>
    %cst_22 = arith.constant dense<0.000000e+00> : vector<2x16xf32>
    %40 = vector.multi_reduction <add>, %39, %cst_22 [2] : vector<2x16x48xf32> to vector<2x16xf32>
    %41 = vector.shape_cast %40 : vector<2x16xf32> to vector<2x16x1xf32>
    %42 = tpu.reciprocal %41 {approx = true} : vector<2x16x1xf32> -> vector<2x16x1xf32>
    %43 = vector.broadcast %42 : vector<2x16x1xf32> to vector<2x16x48xf32>
    %44 = arith.mulf %39, %43 : vector<2x16x48xf32>
    "tpu.trace_start"() <{level = 10 : i32, message = "bqk,bkd->bqd"}> : () -> ()
    %cst_23 = arith.constant dense<0.000000e+00> : vector<2x16x8xf32>
    %45 = tpu.matmul %44, %17, %cst_23 {dimension_numbers = #tpu.dot_dimension_numbers<[2], [1], [1], [2], [0, 0, 0, 1, 1, 2], [0], [0]>} : vector<2x16x48xf32>, vector<2x48x8xf32>, vector<2x16x8xf32> -> vector<2x16x8xf32>
    "tpu.trace_stop"() : () -> ()
    %c0_24 = arith.constant 0 : index
    %c0_25 = arith.constant 0 : index
    %c0_26 = arith.constant 0 : index
    %46 = vector.load %arg5[%c0_24, %c0_25, %c0_26] : memref<4x8x32xf32, #tpu.memory_space<vmem>>, vector<1x8x32xf32>
    %47 = vector.shape_cast %46 : vector<1x8x32xf32> to vector<8x32xf32>
    %48 = vector.shape_cast %33 : vector<2x32x8xf32> to vector<64x8xf32>
    %cst_27 = arith.constant dense<0.000000e+00> : vector<64x32xf32>
    %49 = tpu.matmul %48, %47, %cst_27 {dimension_numbers = #tpu.dot_dimension_numbers<[1], [0], [0], [1], [0, 0, 1, 1], [], []>} : vector<64x8xf32>, vector<8x32xf32>, vector<64x32xf32> -> vector<64x32xf32>
    %50 = arith.addf %2, %49 : vector<64x32xf32>
    %51 = vector.shape_cast %45 : vector<2x16x8xf32> to vector<32x8xf32>
    %cst_28 = arith.constant dense<0.000000e+00> : vector<32x32xf32>
    %52 = tpu.matmul %51, %47, %cst_28 {dimension_numbers = #tpu.dot_dimension_numbers<[1], [0], [0], [1], [0, 0, 1, 1], [], []>} : vector<32x8xf32>, vector<8x32xf32>, vector<32x32xf32> -> vector<32x32xf32>
    %53 = arith.addf %3, %52 : vector<32x32xf32>
    %c1 = arith.constant 1 : index
    %c0_29 = arith.constant 0 : index
    %c0_30 = arith.constant 0 : index
    %54 = vector.load %arg2[%c1, %c0_29, %c0_30] : memref<4x32x8xf32, #tpu.memory_space<vmem>>, vector<1x32x8xf32>
    %55 = vector.shape_cast %54 : vector<1x32x8xf32> to vector<32x8xf32>
    %cst_31 = arith.constant dense<0.000000e+00> : vector<96x8xf32>
    %56 = tpu.matmul %1, %55, %cst_31 {dimension_numbers = #tpu.dot_dimension_numbers<[1], [0], [0], [1], [0, 0, 1, 1], [], []>} : vector<96x32xf32>, vector<32x8xf32>, vector<96x8xf32> -> vector<96x8xf32>
    %c1_32 = arith.constant 1 : index
    %c0_33 = arith.constant 0 : index
    %c0_34 = arith.constant 0 : index
    %57 = vector.load %arg3[%c1_32, %c0_33, %c0_34] : memref<4x32x8xf32, #tpu.memory_space<vmem>>, vector<1x32x8xf32>
    %58 = vector.shape_cast %57 : vector<1x32x8xf32> to vector<32x8xf32>
    %cst_35 = arith.constant dense<0.000000e+00> : vector<96x8xf32>
    %59 = tpu.matmul %1, %58, %cst_35 {dimension_numbers = #tpu.dot_dimension_numbers<[1], [0], [0], [1], [0, 0, 1, 1], [], []>} : vector<96x32xf32>, vector<32x8xf32>, vector<96x8xf32> -> vector<96x8xf32>
    %c1_36 = arith.constant 1 : index
    %c0_37 = arith.constant 0 : index
    %c0_38 = arith.constant 0 : index
    %60 = vector.load %arg4[%c1_36, %c0_37, %c0_38] : memref<4x32x8xf32, #tpu.memory_space<vmem>>, vector<1x32x8xf32>
    %61 = vector.shape_cast %60 : vector<1x32x8xf32> to vector<32x8xf32>
    %cst_39 = arith.constant dense<0.000000e+00> : vector<96x8xf32>
    %62 = tpu.matmul %1, %61, %cst_39 {dimension_numbers = #tpu.dot_dimension_numbers<[1], [0], [0], [1], [0, 0, 1, 1], [], []>} : vector<96x32xf32>, vector<32x8xf32>, vector<96x8xf32> -> vector<96x8xf32>
    %cst_40 = arith.constant 0.353553385 : f32
    %63 = vector.broadcast %cst_40 : f32 to vector<96x8xf32>
    %64 = arith.mulf %56, %63 : vector<96x8xf32>
    %65 = vector.shape_cast %64 : vector<96x8xf32> to vector<2x48x8xf32>
    %66 = vector.shape_cast %59 : vector<96x8xf32> to vector<2x48x8xf32>
    %67 = vector.shape_cast %62 : vector<96x8xf32> to vector<2x48x8xf32>
    %68 = vector.extract_strided_slice %65 {offsets = [0, 0, 0], sizes = [2, 32, 8], strides = [1, 1, 1]} : vector<2x48x8xf32> to vector<2x32x8xf32>
    %69 = vector.extract_strided_slice %65 {offsets = [0, 32, 0], sizes = [2, 16, 8], strides = [1, 1, 1]} : vector<2x48x8xf32> to vector<2x16x8xf32>
    %70 = vector.extract_strided_slice %66 {offsets = [0, 32, 0], sizes = [2, 16, 8], strides = [1, 1, 1]} : vector<2x48x8xf32> to vector<2x16x8xf32>
    %71 = vector.extract_strided_slice %67 {offsets = [0, 32, 0], sizes = [2, 16, 8], strides = [1, 1, 1]} : vector<2x48x8xf32> to vector<2x16x8xf32>
    "tpu.trace_start"() <{level = 10 : i32, message = "bqd,bkd->bqk"}> : () -> ()
    %cst_41 = arith.constant dense<0.000000e+00> : vector<2x32x16xf32>
    %72 = tpu.matmul %68, %70, %cst_41 {dimension_numbers = #tpu.dot_dimension_numbers<[2], [2], [1], [1], [0, 0, 0, 1, 1, 1], [0], [0]>} : vector<2x32x8xf32>, vector<2x16x8xf32>, vector<2x32x16xf32> -> vector<2x32x16xf32>
    "tpu.trace_stop"() : () -> ()
    %cst_42 = arith.constant dense<0xFF800000> : vector<2x32xf32>
    %73 = vector.multi_reduction <maximumf>, %72, %cst_42 [2] : vector<2x32x16xf32> to vector<2x32xf32>
    %74 = vector.shape_cast %73 : vector<2x32xf32> to vector<2x32x1xf32>
    %75 = vector.broadcast %74 : vector<2x32x1xf32> to vector<2x32x16xf32>
    %76 = arith.subf %72, %75 : vector<2x32x16xf32>
    %77 = math.exp %76 : vector<2x32x16xf32>
    %cst_43 = arith.constant dense<0.000000e+00> : vector<2x32xf32>
    %78 = vector.multi_reduction <add>, %77, %cst_43 [2] : vector<2x32x16xf32> to vector<2x32xf32>
    %79 = vector.shape_cast %78 : vector<2x32xf32> to vector<2x32x1xf32>
    %80 = tpu.reciprocal %79 {approx = true} : vector<2x32x1xf32> -> vector<2x32x1xf32>
    %81 = vector.broadcast %80 : vector<2x32x1xf32> to vector<2x32x16xf32>
    %82 = arith.mulf %77, %81 : vector<2x32x16xf32>
    "tpu.trace_start"() <{level = 10 : i32, message = "bqk,bkd->bqd"}> : () -> ()
    %cst_44 = arith.constant dense<0.000000e+00> : vector<2x32x8xf32>
    %83 = tpu.matmul %82, %71, %cst_44 {dimension_numbers = #tpu.dot_dimension_numbers<[2], [1], [1], [2], [0, 0, 0, 1, 1, 2], [0], [0]>} : vector<2x32x16xf32>, vector<2x16x8xf32>, vector<2x32x8xf32> -> vector<2x32x8xf32>
    "tpu.trace_stop"() : () -> ()
    "tpu.trace_start"() <{level = 10 : i32, message = "bqd,bkd->bqk"}> : () -> ()
    %cst_45 = arith.constant dense<0.000000e+00> : vector<2x16x48xf32>
    %84 = tpu.matmul %69, %66, %cst_45 {dimension_numbers = #tpu.dot_dimension_numbers<[2], [2], [1], [1], [0, 0, 0, 1, 1, 1], [0], [0]>} : vector<2x16x8xf32>, vector<2x48x8xf32>, vector<2x16x48xf32> -> vector<2x16x48xf32>
    "tpu.trace_stop"() : () -> ()
    %cst_46 = arith.constant dense<0xFF800000> : vector<2x16xf32>
    %85 = vector.multi_reduction <maximumf>, %84, %cst_46 [2] : vector<2x16x48xf32> to vector<2x16xf32>
    %86 = vector.shape_cast %85 : vector<2x16xf32> to vector<2x16x1xf32>
    %87 = vector.broadcast %86 : vector<2x16x1xf32> to vector<2x16x48xf32>
    %88 = arith.subf %84, %87 : vector<2x16x48xf32>
    %89 = math.exp %88 : vector<2x16x48xf32>
    %cst_47 = arith.constant dense<0.000000e+00> : vector<2x16xf32>
    %90 = vector.multi_reduction <add>, %89, %cst_47 [2] : vector<2x16x48xf32> to vector<2x16xf32>
    %91 = vector.shape_cast %90 : vector<2x16xf32> to vector<2x16x1xf32>
    %92 = tpu.reciprocal %91 {approx = true} : vector<2x16x1xf32> -> vector<2x16x1xf32>
    %93 = vector.broadcast %92 : vector<2x16x1xf32> to vector<2x16x48xf32>
    %94 = arith.mulf %89, %93 : vector<2x16x48xf32>
    "tpu.trace_start"() <{level = 10 : i32, message = "bqk,bkd->bqd"}> : () -> ()
    %cst_48 = arith.constant dense<0.000000e+00> : vector<2x16x8xf32>
    %95 = tpu.matmul %94, %67, %cst_48 {dimension_numbers = #tpu.dot_dimension_numbers<[2], [1], [1], [2], [0, 0, 0, 1, 1, 2], [0], [0]>} : vector<2x16x48xf32>, vector<2x48x8xf32>, vector<2x16x8xf32> -> vector<2x16x8xf32>
    "tpu.trace_stop"() : () -> ()
    %c1_49 = arith.constant 1 : index
    %c0_50 = arith.constant 0 : index
    %c0_51 = arith.constant 0 : index
    %96 = vector.load %arg5[%c1_49, %c0_50, %c0_51] : memref<4x8x32xf32, #tpu.memory_space<vmem>>, vector<1x8x32xf32>
    %97 = vector.shape_cast %96 : vector<1x8x32xf32> to vector<8x32xf32>
    %98 = vector.shape_cast %83 : vector<2x32x8xf32> to vector<64x8xf32>
    %cst_52 = arith.constant dense<0.000000e+00> : vector<64x32xf32>
    %99 = tpu.matmul %98, %97, %cst_52 {dimension_numbers = #tpu.dot_dimension_numbers<[1], [0], [0], [1], [0, 0, 1, 1], [], []>} : vector<64x8xf32>, vector<8x32xf32>, vector<64x32xf32> -> vector<64x32xf32>
    %100 = arith.addf %50, %99 : vector<64x32xf32>
    %101 = vector.shape_cast %95 : vector<2x16x8xf32> to vector<32x8xf32>
    %cst_53 = arith.constant dense<0.000000e+00> : vector<32x32xf32>
    %102 = tpu.matmul %101, %97, %cst_53 {dimension_numbers = #tpu.dot_dimension_numbers<[1], [0], [0], [1], [0, 0, 1, 1], [], []>} : vector<32x8xf32>, vector<8x32xf32>, vector<32x32xf32> -> vector<32x32xf32>
    %103 = arith.addf %53, %102 : vector<32x32xf32>
    %c2 = arith.constant 2 : index
    %c0_54 = arith.constant 0 : index
    %c0_55 = arith.constant 0 : index
    %104 = vector.load %arg2[%c2, %c0_54, %c0_55] : memref<4x32x8xf32, #tpu.memory_space<vmem>>, vector<1x32x8xf32>
    %105 = vector.shape_cast %104 : vector<1x32x8xf32> to vector<32x8xf32>
    %cst_56 = arith.constant dense<0.000000e+00> : vector<96x8xf32>
    %106 = tpu.matmul %1, %105, %cst_56 {dimension_numbers = #tpu.dot_dimension_numbers<[1], [0], [0], [1], [0, 0, 1, 1], [], []>} : vector<96x32xf32>, vector<32x8xf32>, vector<96x8xf32> -> vector<96x8xf32>
    %c2_57 = arith.constant 2 : index
    %c0_58 = arith.constant 0 : index
    %c0_59 = arith.constant 0 : index
    %107 = vector.load %arg3[%c2_57, %c0_58, %c0_59] : memref<4x32x8xf32, #tpu.memory_space<vmem>>, vector<1x32x8xf32>
    %108 = vector.shape_cast %107 : vector<1x32x8xf32> to vector<32x8xf32>
    %cst_60 = arith.constant dense<0.000000e+00> : vector<96x8xf32>
    %109 = tpu.matmul %1, %108, %cst_60 {dimension_numbers = #tpu.dot_dimension_numbers<[1], [0], [0], [1], [0, 0, 1, 1], [], []>} : vector<96x32xf32>, vector<32x8xf32>, vector<96x8xf32> -> vector<96x8xf32>
    %c2_61 = arith.constant 2 : index
    %c0_62 = arith.constant 0 : index
    %c0_63 = arith.constant 0 : index
    %110 = vector.load %arg4[%c2_61, %c0_62, %c0_63] : memref<4x32x8xf32, #tpu.memory_space<vmem>>, vector<1x32x8xf32>
    %111 = vector.shape_cast %110 : vector<1x32x8xf32> to vector<32x8xf32>
    %cst_64 = arith.constant dense<0.000000e+00> : vector<96x8xf32>
    %112 = tpu.matmul %1, %111, %cst_64 {dimension_numbers = #tpu.dot_dimension_numbers<[1], [0], [0], [1], [0, 0, 1, 1], [], []>} : vector<96x32xf32>, vector<32x8xf32>, vector<96x8xf32> -> vector<96x8xf32>
    %cst_65 = arith.constant 0.353553385 : f32
    %113 = vector.broadcast %cst_65 : f32 to vector<96x8xf32>
    %114 = arith.mulf %106, %113 : vector<96x8xf32>
    %115 = vector.shape_cast %114 : vector<96x8xf32> to vector<2x48x8xf32>
    %116 = vector.shape_cast %109 : vector<96x8xf32> to vector<2x48x8xf32>
    %117 = vector.shape_cast %112 : vector<96x8xf32> to vector<2x48x8xf32>
    %118 = vector.extract_strided_slice %115 {offsets = [0, 0, 0], sizes = [2, 32, 8], strides = [1, 1, 1]} : vector<2x48x8xf32> to vector<2x32x8xf32>
    %119 = vector.extract_strided_slice %115 {offsets = [0, 32, 0], sizes = [2, 16, 8], strides = [1, 1, 1]} : vector<2x48x8xf32> to vector<2x16x8xf32>
    %120 = vector.extract_strided_slice %116 {offsets = [0, 32, 0], sizes = [2, 16, 8], strides = [1, 1, 1]} : vector<2x48x8xf32> to vector<2x16x8xf32>
    %121 = vector.extract_strided_slice %117 {offsets = [0, 32, 0], sizes = [2, 16, 8], strides = [1, 1, 1]} : vector<2x48x8xf32> to vector<2x16x8xf32>
    "tpu.trace_start"() <{level = 10 : i32, message = "bqd,bkd->bqk"}> : () -> ()
    %cst_66 = arith.constant dense<0.000000e+00> : vector<2x32x16xf32>
    %122 = tpu.matmul %118, %120, %cst_66 {dimension_numbers = #tpu.dot_dimension_numbers<[2], [2], [1], [1], [0, 0, 0, 1, 1, 1], [0], [0]>} : vector<2x32x8xf32>, vector<2x16x8xf32>, vector<2x32x16xf32> -> vector<2x32x16xf32>
    "tpu.trace_stop"() : () -> ()
    %cst_67 = arith.constant dense<0xFF800000> : vector<2x32xf32>
    %123 = vector.multi_reduction <maximumf>, %122, %cst_67 [2] : vector<2x32x16xf32> to vector<2x32xf32>
    %124 = vector.shape_cast %123 : vector<2x32xf32> to vector<2x32x1xf32>
    %125 = vector.broadcast %124 : vector<2x32x1xf32> to vector<2x32x16xf32>
    %126 = arith.subf %122, %125 : vector<2x32x16xf32>
    %127 = math.exp %126 : vector<2x32x16xf32>
    %cst_68 = arith.constant dense<0.000000e+00> : vector<2x32xf32>
    %128 = vector.multi_reduction <add>, %127, %cst_68 [2] : vector<2x32x16xf32> to vector<2x32xf32>
    %129 = vector.shape_cast %128 : vector<2x32xf32> to vector<2x32x1xf32>
    %130 = tpu.reciprocal %129 {approx = true} : vector<2x32x1xf32> -> vector<2x32x1xf32>
    %131 = vector.broadcast %130 : vector<2x32x1xf32> to vector<2x32x16xf32>
    %132 = arith.mulf %127, %131 : vector<2x32x16xf32>
    "tpu.trace_start"() <{level = 10 : i32, message = "bqk,bkd->bqd"}> : () -> ()
    %cst_69 = arith.constant dense<0.000000e+00> : vector<2x32x8xf32>
    %133 = tpu.matmul %132, %121, %cst_69 {dimension_numbers = #tpu.dot_dimension_numbers<[2], [1], [1], [2], [0, 0, 0, 1, 1, 2], [0], [0]>} : vector<2x32x16xf32>, vector<2x16x8xf32>, vector<2x32x8xf32> -> vector<2x32x8xf32>
    "tpu.trace_stop"() : () -> ()
    "tpu.trace_start"() <{level = 10 : i32, message = "bqd,bkd->bqk"}> : () -> ()
    %cst_70 = arith.constant dense<0.000000e+00> : vector<2x16x48xf32>
    %134 = tpu.matmul %119, %116, %cst_70 {dimension_numbers = #tpu.dot_dimension_numbers<[2], [2], [1], [1], [0, 0, 0, 1, 1, 1], [0], [0]>} : vector<2x16x8xf32>, vector<2x48x8xf32>, vector<2x16x48xf32> -> vector<2x16x48xf32>
    "tpu.trace_stop"() : () -> ()
    %cst_71 = arith.constant dense<0xFF800000> : vector<2x16xf32>
    %135 = vector.multi_reduction <maximumf>, %134, %cst_71 [2] : vector<2x16x48xf32> to vector<2x16xf32>
    %136 = vector.shape_cast %135 : vector<2x16xf32> to vector<2x16x1xf32>
    %137 = vector.broadcast %136 : vector<2x16x1xf32> to vector<2x16x48xf32>
    %138 = arith.subf %134, %137 : vector<2x16x48xf32>
    %139 = math.exp %138 : vector<2x16x48xf32>
    %cst_72 = arith.constant dense<0.000000e+00> : vector<2x16xf32>
    %140 = vector.multi_reduction <add>, %139, %cst_72 [2] : vector<2x16x48xf32> to vector<2x16xf32>
    %141 = vector.shape_cast %140 : vector<2x16xf32> to vector<2x16x1xf32>
    %142 = tpu.reciprocal %141 {approx = true} : vector<2x16x1xf32> -> vector<2x16x1xf32>
    %143 = vector.broadcast %142 : vector<2x16x1xf32> to vector<2x16x48xf32>
    %144 = arith.mulf %139, %143 : vector<2x16x48xf32>
    "tpu.trace_start"() <{level = 10 : i32, message = "bqk,bkd->bqd"}> : () -> ()
    %cst_73 = arith.constant dense<0.000000e+00> : vector<2x16x8xf32>
    %145 = tpu.matmul %144, %117, %cst_73 {dimension_numbers = #tpu.dot_dimension_numbers<[2], [1], [1], [2], [0, 0, 0, 1, 1, 2], [0], [0]>} : vector<2x16x48xf32>, vector<2x48x8xf32>, vector<2x16x8xf32> -> vector<2x16x8xf32>
    "tpu.trace_stop"() : () -> ()
    %c2_74 = arith.constant 2 : index
    %c0_75 = arith.constant 0 : index
    %c0_76 = arith.constant 0 : index
    %146 = vector.load %arg5[%c2_74, %c0_75, %c0_76] : memref<4x8x32xf32, #tpu.memory_space<vmem>>, vector<1x8x32xf32>
    %147 = vector.shape_cast %146 : vector<1x8x32xf32> to vector<8x32xf32>
    %148 = vector.shape_cast %133 : vector<2x32x8xf32> to vector<64x8xf32>
    %cst_77 = arith.constant dense<0.000000e+00> : vector<64x32xf32>
    %149 = tpu.matmul %148, %147, %cst_77 {dimension_numbers = #tpu.dot_dimension_numbers<[1], [0], [0], [1], [0, 0, 1, 1], [], []>} : vector<64x8xf32>, vector<8x32xf32>, vector<64x32xf32> -> vector<64x32xf32>
    %150 = arith.addf %100, %149 : vector<64x32xf32>
    %151 = vector.shape_cast %145 : vector<2x16x8xf32> to vector<32x8xf32>
    %cst_78 = arith.constant dense<0.000000e+00> : vector<32x32xf32>
    %152 = tpu.matmul %151, %147, %cst_78 {dimension_numbers = #tpu.dot_dimension_numbers<[1], [0], [0], [1], [0, 0, 1, 1], [], []>} : vector<32x8xf32>, vector<8x32xf32>, vector<32x32xf32> -> vector<32x32xf32>
    %153 = arith.addf %103, %152 : vector<32x32xf32>
    %c3 = arith.constant 3 : index
    %c0_79 = arith.constant 0 : index
    %c0_80 = arith.constant 0 : index
    %154 = vector.load %arg2[%c3, %c0_79, %c0_80] : memref<4x32x8xf32, #tpu.memory_space<vmem>>, vector<1x32x8xf32>
    %155 = vector.shape_cast %154 : vector<1x32x8xf32> to vector<32x8xf32>
    %cst_81 = arith.constant dense<0.000000e+00> : vector<96x8xf32>
    %156 = tpu.matmul %1, %155, %cst_81 {dimension_numbers = #tpu.dot_dimension_numbers<[1], [0], [0], [1], [0, 0, 1, 1], [], []>} : vector<96x32xf32>, vector<32x8xf32>, vector<96x8xf32> -> vector<96x8xf32>
    %c3_82 = arith.constant 3 : index
    %c0_83 = arith.constant 0 : index
    %c0_84 = arith.constant 0 : index
    %157 = vector.load %arg3[%c3_82, %c0_83, %c0_84] : memref<4x32x8xf32, #tpu.memory_space<vmem>>, vector<1x32x8xf32>
    %158 = vector.shape_cast %157 : vector<1x32x8xf32> to vector<32x8xf32>
    %cst_85 = arith.constant dense<0.000000e+00> : vector<96x8xf32>
    %159 = tpu.matmul %1, %158, %cst_85 {dimension_numbers = #tpu.dot_dimension_numbers<[1], [0], [0], [1], [0, 0, 1, 1], [], []>} : vector<96x32xf32>, vector<32x8xf32>, vector<96x8xf32> -> vector<96x8xf32>
    %c3_86 = arith.constant 3 : index
    %c0_87 = arith.constant 0 : index
    %c0_88 = arith.constant 0 : index
    %160 = vector.load %arg4[%c3_86, %c0_87, %c0_88] : memref<4x32x8xf32, #tpu.memory_space<vmem>>, vector<1x32x8xf32>
    %161 = vector.shape_cast %160 : vector<1x32x8xf32> to vector<32x8xf32>
    %cst_89 = arith.constant dense<0.000000e+00> : vector<96x8xf32>
    %162 = tpu.matmul %1, %161, %cst_89 {dimension_numbers = #tpu.dot_dimension_numbers<[1], [0], [0], [1], [0, 0, 1, 1], [], []>} : vector<96x32xf32>, vector<32x8xf32>, vector<96x8xf32> -> vector<96x8xf32>
    %cst_90 = arith.constant 0.353553385 : f32
    %163 = vector.broadcast %cst_90 : f32 to vector<96x8xf32>
    %164 = arith.mulf %156, %163 : vector<96x8xf32>
    %165 = vector.shape_cast %164 : vector<96x8xf32> to vector<2x48x8xf32>
    %166 = vector.shape_cast %159 : vector<96x8xf32> to vector<2x48x8xf32>
    %167 = vector.shape_cast %162 : vector<96x8xf32> to vector<2x48x8xf32>
    %168 = vector.extract_strided_slice %165 {offsets = [0, 0, 0], sizes = [2, 32, 8], strides = [1, 1, 1]} : vector<2x48x8xf32> to vector<2x32x8xf32>
    %169 = vector.extract_strided_slice %165 {offsets = [0, 32, 0], sizes = [2, 16, 8], strides = [1, 1, 1]} : vector<2x48x8xf32> to vector<2x16x8xf32>
    %170 = vector.extract_strided_slice %166 {offsets = [0, 32, 0], sizes = [2, 16, 8], strides = [1, 1, 1]} : vector<2x48x8xf32> to vector<2x16x8xf32>
    %171 = vector.extract_strided_slice %167 {offsets = [0, 32, 0], sizes = [2, 16, 8], strides = [1, 1, 1]} : vector<2x48x8xf32> to vector<2x16x8xf32>
    "tpu.trace_start"() <{level = 10 : i32, message = "bqd,bkd->bqk"}> : () -> ()
    %cst_91 = arith.constant dense<0.000000e+00> : vector<2x32x16xf32>
    %172 = tpu.matmul %168, %170, %cst_91 {dimension_numbers = #tpu.dot_dimension_numbers<[2], [2], [1], [1], [0, 0, 0, 1, 1, 1], [0], [0]>} : vector<2x32x8xf32>, vector<2x16x8xf32>, vector<2x32x16xf32> -> vector<2x32x16xf32>
    "tpu.trace_stop"() : () -> ()
    %cst_92 = arith.constant dense<0xFF800000> : vector<2x32xf32>
    %173 = vector.multi_reduction <maximumf>, %172, %cst_92 [2] : vector<2x32x16xf32> to vector<2x32xf32>
    %174 = vector.shape_cast %173 : vector<2x32xf32> to vector<2x32x1xf32>
    %175 = vector.broadcast %174 : vector<2x32x1xf32> to vector<2x32x16xf32>
    %176 = arith.subf %172, %175 : vector<2x32x16xf32>
    %177 = math.exp %176 : vector<2x32x16xf32>
    %cst_93 = arith.constant dense<0.000000e+00> : vector<2x32xf32>
    %178 = vector.multi_reduction <add>, %177, %cst_93 [2] : vector<2x32x16xf32> to vector<2x32xf32>
    %179 = vector.shape_cast %178 : vector<2x32xf32> to vector<2x32x1xf32>
    %180 = tpu.reciprocal %179 {approx = true} : vector<2x32x1xf32> -> vector<2x32x1xf32>
    %181 = vector.broadcast %180 : vector<2x32x1xf32> to vector<2x32x16xf32>
    %182 = arith.mulf %177, %181 : vector<2x32x16xf32>
    "tpu.trace_start"() <{level = 10 : i32, message = "bqk,bkd->bqd"}> : () -> ()
    %cst_94 = arith.constant dense<0.000000e+00> : vector<2x32x8xf32>
    %183 = tpu.matmul %182, %171, %cst_94 {dimension_numbers = #tpu.dot_dimension_numbers<[2], [1], [1], [2], [0, 0, 0, 1, 1, 2], [0], [0]>} : vector<2x32x16xf32>, vector<2x16x8xf32>, vector<2x32x8xf32> -> vector<2x32x8xf32>
    "tpu.trace_stop"() : () -> ()
    "tpu.trace_start"() <{level = 10 : i32, message = "bqd,bkd->bqk"}> : () -> ()
    %cst_95 = arith.constant dense<0.000000e+00> : vector<2x16x48xf32>
    %184 = tpu.matmul %169, %166, %cst_95 {dimension_numbers = #tpu.dot_dimension_numbers<[2], [2], [1], [1], [0, 0, 0, 1, 1, 1], [0], [0]>} : vector<2x16x8xf32>, vector<2x48x8xf32>, vector<2x16x48xf32> -> vector<2x16x48xf32>
    "tpu.trace_stop"() : () -> ()
    %cst_96 = arith.constant dense<0xFF800000> : vector<2x16xf32>
    %185 = vector.multi_reduction <maximumf>, %184, %cst_96 [2] : vector<2x16x48xf32> to vector<2x16xf32>
    %186 = vector.shape_cast %185 : vector<2x16xf32> to vector<2x16x1xf32>
    %187 = vector.broadcast %186 : vector<2x16x1xf32> to vector<2x16x48xf32>
    %188 = arith.subf %184, %187 : vector<2x16x48xf32>
    %189 = math.exp %188 : vector<2x16x48xf32>
    %cst_97 = arith.constant dense<0.000000e+00> : vector<2x16xf32>
    %190 = vector.multi_reduction <add>, %189, %cst_97 [2] : vector<2x16x48xf32> to vector<2x16xf32>
    %191 = vector.shape_cast %190 : vector<2x16xf32> to vector<2x16x1xf32>
    %192 = tpu.reciprocal %191 {approx = true} : vector<2x16x1xf32> -> vector<2x16x1xf32>
    %193 = vector.broadcast %192 : vector<2x16x1xf32> to vector<2x16x48xf32>
    %194 = arith.mulf %189, %193 : vector<2x16x48xf32>
    "tpu.trace_start"() <{level = 10 : i32, message = "bqk,bkd->bqd"}> : () -> ()
    %cst_98 = arith.constant dense<0.000000e+00> : vector<2x16x8xf32>
    %195 = tpu.matmul %194, %167, %cst_98 {dimension_numbers = #tpu.dot_dimension_numbers<[2], [1], [1], [2], [0, 0, 0, 1, 1, 2], [0], [0]>} : vector<2x16x48xf32>, vector<2x48x8xf32>, vector<2x16x8xf32> -> vector<2x16x8xf32>
    "tpu.trace_stop"() : () -> ()
    %c3_99 = arith.constant 3 : index
    %c0_100 = arith.constant 0 : index
    %c0_101 = arith.constant 0 : index
    %196 = vector.load %arg5[%c3_99, %c0_100, %c0_101] : memref<4x8x32xf32, #tpu.memory_space<vmem>>, vector<1x8x32xf32>
    %197 = vector.shape_cast %196 : vector<1x8x32xf32> to vector<8x32xf32>
    %198 = vector.shape_cast %183 : vector<2x32x8xf32> to vector<64x8xf32>
    %cst_102 = arith.constant dense<0.000000e+00> : vector<64x32xf32>
    %199 = tpu.matmul %198, %197, %cst_102 {dimension_numbers = #tpu.dot_dimension_numbers<[1], [0], [0], [1], [0, 0, 1, 1], [], []>} : vector<64x8xf32>, vector<8x32xf32>, vector<64x32xf32> -> vector<64x32xf32>
    %200 = arith.addf %150, %199 : vector<64x32xf32>
    %201 = vector.shape_cast %195 : vector<2x16x8xf32> to vector<32x8xf32>
    %cst_103 = arith.constant dense<0.000000e+00> : vector<32x32xf32>
    %202 = tpu.matmul %201, %197, %cst_103 {dimension_numbers = #tpu.dot_dimension_numbers<[1], [0], [0], [1], [0, 0, 1, 1], [], []>} : vector<32x8xf32>, vector<8x32xf32>, vector<32x32xf32> -> vector<32x32xf32>
    %203 = arith.addf %153, %202 : vector<32x32xf32>
    %c0_104 = arith.constant 0 : index
    %c0_105 = arith.constant 0 : index
    %204 = vector.load %arg6[%c0_104, %c0_105] : memref<1x32xf32, #tpu.memory_space<vmem>>, vector<1x32xf32>
    %205 = vector.broadcast %204 : vector<1x32xf32> to vector<64x32xf32>
    %206 = arith.addf %200, %205 : vector<64x32xf32>
    %207 = vector.shape_cast %206 : vector<64x32xf32> to vector<2x32x32xf32>
    %208 = vector.broadcast %204 : vector<1x32xf32> to vector<32x32xf32>
    %209 = arith.addf %203, %208 : vector<32x32xf32>
    %210 = vector.shape_cast %209 : vector<32x32xf32> to vector<2x16x32xf32>
    %c0_106 = arith.constant 0 : index
    %c0_107 = arith.constant 0 : index
    %c0_108 = arith.constant 0 : index
    %211 = vector.load %arg7[%c0_106, %c0_107, %c0_108] : memref<2x48x32xf32, #tpu.memory_space<vmem>>, vector<2x32x32xf32>
    tpu.vector_store %arg7[%c0_106, %c0_107, %c0_108], %207 {strides = array<i32>} : memref<2x48x32xf32, #tpu.memory_space<vmem>>, vector<2x32x32xf32>,
    %c0_109 = arith.constant 0 : index
    %c32 = arith.constant 32 : index
    %c0_110 = arith.constant 0 : index
    %212 = vector.load %arg7[%c0_109, %c32, %c0_110] : memref<2x48x32xf32, #tpu.memory_space<vmem>>, vector<2x16x32xf32>
    tpu.vector_store %arg7[%c0_109, %c32, %c0_110], %210 {strides = array<i32>} : memref<2x48x32xf32, #tpu.memory_space<vmem>>, vector<2x16x32xf32>,
    return
  }
  func.func @transform_0(%arg0: i32) -> (i32, i32, i32) {
    %c0_i32 = arith.constant 0 : i32
    %c0_i32_0 = arith.constant 0 : i32
    %c0_i32_1 = arith.constant 0 : i32
    return %arg0, %c0_i32, %c0_i32_0 : i32, i32, i32
  }
  func.func @transform_1(%arg0: i32) -> (i32, i32, i32) {
    %c0_i32 = arith.constant 0 : i32
    %c0_i32_0 = arith.constant 0 : i32
    %c0_i32_1 = arith.constant 0 : i32
    %c0_i32_2 = arith.constant 0 : i32
    return %c0_i32, %c0_i32_0, %c0_i32_1 : i32, i32, i32
  }
  func.func @transform_2(%arg0: i32) -> (i32, i32, i32) {
    %c0_i32 = arith.constant 0 : i32
    %c0_i32_0 = arith.constant 0 : i32
    %c0_i32_1 = arith.constant 0 : i32
    %c0_i32_2 = arith.constant 0 : i32
    return %c0_i32, %c0_i32_0, %c0_i32_1 : i32, i32, i32
  }
  func.func @transform_3(%arg0: i32) -> (i32, i32, i32) {
    %c0_i32 = arith.constant 0 : i32
    %c0_i32_0 = arith.constant 0 : i32
    %c0_i32_1 = arith.constant 0 : i32
    %c0_i32_2 = arith.constant 0 : i32
    return %c0_i32, %c0_i32_0, %c0_i32_1 : i32, i32, i32
  }
  func.func @transform_4(%arg0: i32) -> (i32, i32, i32) {
    %c0_i32 = arith.constant 0 : i32
    %c0_i32_0 = arith.constant 0 : i32
    %c0_i32_1 = arith.constant 0 : i32
    %c0_i32_2 = arith.constant 0 : i32
    return %c0_i32, %c0_i32_0, %c0_i32_1 : i32, i32, i32
  }
  func.func @transform_5(%arg0: i32) -> (i32, i32) {
    %c0_i32 = arith.constant 0 : i32
    %c0_i32_0 = arith.constant 0 : i32
    %c0_i32_1 = arith.constant 0 : i32
    return %c0_i32, %c0_i32_0 : i32, i32
  }
  func.func @transform_6(%arg0: i32) -> (i32, i32, i32) {
    %c0_i32 = arith.constant 0 : i32
    %c0_i32_0 = arith.constant 0 : i32
    %c0_i32_1 = arith.constant 0 : i32
    return %arg0, %c0_i32, %c0_i32_0 : i32, i32, i32
  }
}

</mosaic_0001>

<bundles_post_ra>
// kernel: tpu_custom_call.1
= control target key start
LH: loop header
LB: loop body
LE: loop exit
PB: predicated region body
PF: predicated region fallthrough
CT: control target
= control target key end

     0   :  { %vm39_vm0 = vcmask 261120   ;;  %vm255_vm1 = vcmask 64512   ;;  %vm350_vm2 = vcmask 130048   ;;  %vm603_vm3 = vcmask 392192   ;;  %s5049_s2 = inlined_call_operand.vmem [shape: f32[4,32,8], index: 2, kind: input, shape index: {}]   ;;  %s5050_s3 = inlined_call_operand.vmem [shape: f32[4,32,8], index: 3, kind: input, shape index: {}]   ;;  %s5051_s0 = inlined_call_operand.vmem [shape: f32[2,48,32], index: 0, kind: input, shape index: {}]   ;;  %s5052_s1 = inlined_call_operand.vmem [shape: f32[4,32,8], index: 1, kind: input, shape index: {}]   ;;  %s5053_s4 = inlined_call_operand.vmem [shape: f32[4,8,32], index: 4, kind: input, shape index: {}]   ;;  %s5054_s5 = inlined_call_operand.vmem [shape: f32[1,32], index: 5, kind: input, shape index: {}]   ;;  %s5055_s6 = inlined_call_operand.vmem [shape: f32[2,48,32], index: 6, kind: output, shape index: {}]  }
   0x1   :  { %v132_v0 = vld [vmem:[%s5049_s2 + $0x18] sm:$0xff]  ;;  %v131_v1 = vld [vmem:[%s5049_s2 + $0x10] sm:$0xff]  ;;  %v130_v2 = vld [vmem:[%s5049_s2 + $0x8] sm:$0xff] }
   0x2   :  { %145 = vmatpush.msra.mxu1 %v132_v0  ;;  %v189_v3 = vld [vmem:[%s5050_s3 + $0x18] sm:$0xff]  ;;  %v188_v4 = vld [vmem:[%s5050_s3 + $0x10] sm:$0xff]  ;;  %v129_v5 = vld [vmem:[%s5049_s2] sm:$0xff] }
   0x3   :  { %3486 = vmatpush.msra.mxu2 %v189_v3  ;;  %v187_v6 = vld [vmem:[%s5050_s3 + $0x8] sm:$0xff]  ;;  %v3760_v7 = vld [vmem:[%s5051_s0] sm:$0xff]  ;;  %v3768_v9 = vld [vmem:[%s5051_s0 + $0x18] sm:$0xff] }
   0x4   :  { %146 = vmatpush.msra.mxu1 %v131_v1  ;;  %v186_v8 = vld [vmem:[%s5050_s3] sm:$0xff]  ;;  %v38_v10 = vld [vmem:[%s5052_s1 + $0x18] sm:$0xff]  ;;  %v37_v11 = vld [vmem:[%s5052_s1 + $0x10] sm:$0xff] }
   0x5   :  { %3487 = vmatpush.msra.mxu2 %v188_v4  ;;  %88 = vmatpush.msra.mxu0 %v38_v10  ;;  %v3783_v12 = vld [vmem:[%s5051_s0 + $0x8] sm:$0xff]  ;;  %v3788_v13 = vld [vmem:[%s5051_s0 + $0x20] sm:$0xff]  ;;  %v3805_v16 = vld [vmem:[%s5051_s0 + $0x10] sm:$0xff] }
   0x6   :  { %147 = vmatpush.msra.mxu1 %v130_v2  ;;  %v36_v14 = vld [vmem:[%s5052_s1 + $0x8] sm:$0xff]  ;;  %v35_v15 = vld [vmem:[%s5052_s1] sm:$0xff]  ;;  %v3821_v18 = vld [vmem:[%s5051_s0 + $0x30] sm:$0xff] }
   0x7   :  { %3488 = vmatpush.msra.mxu2 %v187_v6  ;;  %89 = vmatpush.msra.mxu0 %v37_v11  ;;  %v3810_v17 = vld [vmem:[%s5051_s0 + $0x28] sm:$0xff]  ;;  %v3832_v19 = vld [vmem:[%s5051_s0 + $0x38] sm:$0xff]  ;;  %v3843_v20 = vld [vmem:[%s5051_s0 + $0x40] sm:$0xff] }
   0x8   :  { %148 = vmatpush.msra.mxu1 %v129_v5  ;;  %v3854_v21 = vld [vmem:[%s5051_s0 + $0x48] sm:$0xff]  ;;  %v3865_v22 = vld [vmem:[%s5051_s0 + $0x50] sm:$0xff]  ;;  %v3876_v23 = vld [vmem:[%s5051_s0 + $0x58] sm:$0xff] }
   0x9   :  { %3107 = vmatmul.msk.f32.vlgmr.msra.gmra.mxu1 %vm39_vm0, %v3760_v7  ;;  %3489 = vmatpush.msra.mxu2 %v186_v8 }
   0xa   :  { %3122 = vmatmul.msk.f32.vlgmr.msra.gmra.mxu2 %vm39_vm0, %v3768_v9  ;;  %90 = vmatpush.msra.mxu0 %v36_v14 }
   0xc   :  { %91 = vmatpush.msra.mxu0 %v35_v15 }
   0xd   :  { %3095 = vmatmul.msk.f32.vlgmr.msra.gmra.mxu0 %vm39_vm0, %v3760_v7 }
   0xe   :  { %202 = vmatpush.msrb.mxu0 %v189_v3 }
  0x10   :  { %203 = vmatpush.msrb.mxu0 %v188_v4 }
  0x11   :  { %3108 = vmatmul.msk.f32.gmra.mxu1 %vm39_vm0, %v3783_v12 }
  0x12   :  { %3123 = vmatmul.msk.f32.gmra.mxu2 %vm39_vm0, %v3788_v13  ;;  %204 = vmatpush.msrb.mxu0 %v187_v6 }
  0x14   :  { %205 = vmatpush.msrb.mxu0 %v186_v8 }
  0x15   :  { %3096 = vmatmul.msk.f32.gmra.mxu0 %vm39_vm0, %v3783_v12 }
  0x19   :  { %3109 = vmatmul.msk.f32.gmra.mxu1 %vm39_vm0, %v3805_v16 }
  0x1a   :  { %3124 = vmatmul.msk.f32.gmra.mxu2 %vm39_vm0, %v3810_v17 }
  0x1d   :  { %3097 = vmatmul.msk.f32.gmra.mxu0 %vm39_vm0, %v3805_v16 }
  0x21   :  { %3110 = vmatmul.msk.f32.gmra.mxu1 %vm39_vm0, %v3768_v9 }
  0x22   :  { %3125 = vmatmul.msk.f32.gmra.mxu2 %vm39_vm0, %v3821_v18 }
  0x25   :  { %3098 = vmatmul.msk.f32.gmra.mxu0 %vm39_vm0, %v3768_v9 }
  0x29   :  { %3111 = vmatmul.msk.f32.gmra.mxu1 %vm39_vm0, %v3788_v13 }
  0x2a   :  { %3126 = vmatmul.msk.f32.gmra.mxu2 %vm39_vm0, %v3832_v19 }
  0x2d   :  { %3099 = vmatmul.msk.f32.gmra.mxu0 %vm39_vm0, %v3788_v13 }
  0x31   :  { %3112 = vmatmul.msk.f32.gmra.mxu1 %vm39_vm0, %v3810_v17 }
  0x32   :  { %3127 = vmatmul.msk.f32.gmra.mxu2 %vm39_vm0, %v3843_v20 }
  0x35   :  { %3100 = vmatmul.msk.f32.gmra.mxu0 %vm39_vm0, %v3810_v17 }
  0x39   :  { %3113 = vmatmul.msk.f32.gmra.mxu1 %vm39_vm0, %v3821_v18 }
  0x3a   :  { %3128 = vmatmul.msk.f32.gmra.mxu2 %vm39_vm0, %v3854_v21 }
  0x3d   :  { %3101 = vmatmul.msk.f32.gmra.mxu0 %vm39_vm0, %v3821_v18 }
  0x41   :  { %3114 = vmatmul.msk.f32.gmra.mxu1 %vm39_vm0, %v3832_v19 }
  0x42   :  { %3129 = vmatmul.msk.f32.gmra.mxu2 %vm39_vm0, %v3865_v22 }
  0x45   :  { %3102 = vmatmul.msk.f32.gmra.mxu0 %vm39_vm0, %v3832_v19 }
  0x49   :  { %3115 = vmatmul.msk.f32.gmra.mxu1 %vm39_vm0, %v3843_v20 }
  0x4a   :  { %3130 = vmatmul.msk.f32.gmra.mxu2 %vm39_vm0, %v3876_v23 }
  0x4d   :  { %3103 = vmatmul.msk.f32.gmra.mxu0 %vm39_vm0, %v3843_v20 }
  0x51   :  { %3116 = vmatmul.msk.f32.gmra.mxu1 %vm39_vm0, %v3854_v21 }
  0x55   :  { %3104 = vmatmul.msk.f32.gmra.mxu0 %vm39_vm0, %v3854_v21 }
  0x59   :  { %3117 = vmatmul.msk.f32.gmra.mxu1 %vm39_vm0, %v3865_v22 }
  0x5d   :  { %3105 = vmatmul.msk.f32.gmra.mxu0 %vm39_vm0, %v3865_v22 }
  0x61   :  { %3118 = vmatmul.msk.f32.gmra.mxu1 %vm39_vm0, %v3876_v23 }
  0x65   :  { %3106 = vmatmul.msk.f32.gmra.mxu0 %vm39_vm0, %v3876_v23 }
  0x6d   :  { %3119 = vmatmul.msk.f32.vlgmr.msrb.gmra.mxu0 %vm39_vm0, %v3760_v7 }
  0x75   :  { %3120 = vmatmul.msk.f32.gmra.mxu0 %vm39_vm0, %v3783_v12 }
  0x7d   :  { %3121 = vmatmul.msk.f32.gmra.mxu0 %vm39_vm0, %v3805_v16 }
  0x86   :  { %v150_v24 = vpop.f32.mrf.mxu1 }
  0x8a   :  { %v93_v27 = vpop.f32.mrf.mxu0 }
  0x8b   :  { %v243_v38 = vmul.f32 0.35355338, %v93_v27 }
  0x8d   :  { %v3904_v26 = vpop.f32.mrf.mxu2 }
  0x8e   :  { %v153_v25 = vpop.f32.mrf.mxu1 }
  0x92   :  { %v96_v32 = vpop.f32.mrf.mxu0 }
  0x93   :  { %v244_v42 = vmul.f32 0.35355338, %v96_v32 }
  0x95   :  { %v3906_v29 = vpop.f32.mrf.mxu2 }
  0x96   :  { %v156_v28 = vpop.f32.mrf.mxu1 }
  0x9a   :  { %v99_v35 = vpop.f32.mrf.mxu0 }
  0x9b   :  { %v245_v46 = vmul.f32 0.35355338, %v99_v35 }
  0x9d   :  { %v3908_v31 = vpop.f32.mrf.mxu2 }
  0x9e   :  { %v159_v30 = vpop.f32.mrf.mxu1 }
  0xa2   :  { %v102_v39 = vpop.f32.mrf.mxu0 }
  0xa3   :  { %v246_v51 = vmul.f32 0.35355338, %v102_v39 }
  0xa5   :  { %v225_v34 = vpop.f32.mrf.mxu2 }
  0xa6   :  { %v162_v33 = vpop.f32.mrf.mxu1 }
  0xaa   :  { %v105_v43 = vpop.f32.mrf.mxu0 }
  0xab   :  { %v247_v47 = vmul.f32 0.35355338, %v105_v43 }
  0xad   :  { %v228_v37 = vpop.f32.mrf.mxu2 }
  0xae   :  { %v165_v36 = vpop.f32.mrf.mxu1 }
  0xaf   :  { %3131 = vmatpush.xpose.msk.msra.mxu3 %vm255_vm1, %v165_v36  ;;  %3151 = vmatpush.xpose.msk.msrb.mxu1 %vm255_vm1, %v165_v36 }
  0xb2   :  { %v108_v50 = vpop.f32.mrf.mxu0 }
  0xb3   :  { %3132 = vmatpush.xpose.msk.msra.mxu3 %vm255_vm1, %v162_v33  ;;  %3152 = vmatpush.xpose.msk.msrb.mxu1 %vm255_vm1, %v162_v33  ;;  %v248_v52 = vmul.f32 0.35355338, %v108_v50 }
  0xb5   :  { %v231_v41 = vpop.f32.mrf.mxu2 }
  0xb6   :  { %v168_v40 = vpop.f32.mrf.mxu1  ;;  %3133 = vmatmul.msk.f32.vlgmr.msra.gmra.mxu3 %vm255_vm1, %v243_v38 }
  0xb7   :  { %3153 = vmatpush.xpose.msk.msrb.mxu1 %vm255_vm1, %v159_v30 }
  0xba   :  { %v111_v56 = vpop.f32.mrf.mxu0 }
  0xbb   :  { %3154 = vmatpush.xpose.msk.msrb.mxu1 %vm255_vm1, %v156_v28  ;;  %v249_v58 = vmul.f32 0.35355338, %v111_v56 }
  0xbd   :  { %v234_v45 = vpop.f32.mrf.mxu2 }
  0xbe   :  { %v171_v44 = vpop.f32.mrf.mxu1  ;;  %3134 = vmatmul.msk.f32.gmra.mxu3 %vm255_vm1, %v244_v42 }
  0xbf   :  { %3155 = vmatpush.xpose.msk.msrb.mxu1 %vm255_vm1, %v153_v25 }
  0xc2   :  { %v114_v59 = vpop.f32.mrf.mxu0 }
  0xc3   :  { %3156 = vmatpush.xpose.msk.msrb.mxu1 %vm255_vm1, %v150_v24  ;;  %v250_v60 = vmul.f32 0.35355338, %v114_v59 }
  0xc5   :  { %v237_v49 = vpop.f32.mrf.mxu2 }
  0xc6   :  { %v174_v48 = vpop.f32.mrf.mxu1  ;;  %3135 = vmatmul.msk.f32.gmra.mxu3 %vm255_vm1, %v245_v46  ;;  %3157 = vmatmul.msk.f32.vlgmr.msrb.gmra.mxu1 %vm255_vm1, %v247_v47 }
  0xca   :  { %v117_v61 = vpop.f32.mrf.mxu0 }
  0xcb   :  { %v251_v62 = vmul.f32 0.35355338, %v117_v61 }
  0xcd   :  { %v240_v54 = vpop.f32.mrf.mxu2 }
  0xce   :  { %v177_v53 = vpop.f32.mrf.mxu1  ;;  %3136 = vmatmul.msk.f32.gmra.mxu3 %vm255_vm1, %v246_v51  ;;  %3158 = vmatmul.msk.f32.gmra.mxu1 %vm255_vm1, %v248_v52 }
  0xcf   :  { %506 = vmatpush.msra.mxu0 %v240_v54  ;;  %693 = vmatpush.msra.mxu1 %v240_v54 }
  0xd1   :  { %507 = vmatpush.msra.mxu0 %v237_v49  ;;  %694 = vmatpush.msra.mxu1 %v237_v49 }
  0xd2   :  { %v120_v63 = vpop.f32.mrf.mxu0 }
  0xd3   :  { %695 = vmatpush.msra.mxu1 %v234_v45  ;;  %v252_v0 = vmul.f32 0.35355338, %v120_v63 }
  0xd5   :  { %696 = vmatpush.msra.mxu1 %v231_v41 }
  0xd6   :  { %v180_v55 = vpop.f32.mrf.mxu1 }
  0xd7   :  { %697 = vmatpush.msra.mxu1 %v228_v37 }
  0xd9   :  { %698 = vmatpush.msra.mxu1 %v225_v34 }
  0xda   :  { %v3957_v27 = vpop.f32.mrf.mxu0 }
  0xde   :  { %v183_v57 = vpop.f32.mrf.mxu1 }
  0xdf   :  { %3137 = vmatpush.xpose.msk.msrb.mxu3 %vm255_vm1, %v183_v57  ;;  %3159 = vmatpush.xpose.msk.msrb.mxu0 %vm255_vm1, %v183_v57 }
  0xe0   :  { %3490 = vmatpush.xpose.msk.msrb.mxu2 %vm255_vm1, %v183_v57 }
  0xe3   :  { %3138 = vmatpush.xpose.msk.msrb.mxu3 %vm255_vm1, %v180_v55  ;;  %3160 = vmatpush.xpose.msk.msrb.mxu0 %vm255_vm1, %v180_v55 }
  0xe4   :  { %3491 = vmatpush.xpose.msk.msrb.mxu2 %vm255_vm1, %v180_v55 }
  0xe6   :  { %3139 = vmatmul.msk.f32.vlgmr.msrb.gmra.mxu3 %vm255_vm1, %v249_v58 }
  0xe7   :  { %465 = vmatpush.msra.mxu3 %v3908_v31  ;;  %3161 = vmatpush.xpose.msk.msrb.mxu0 %vm255_vm1, %v177_v53 }
  0xe8   :  { %3492 = vmatpush.xpose.msk.msrb.mxu2 %vm255_vm1, %v177_v53 }
  0xe9   :  { %466 = vmatpush.msra.mxu3 %v3906_v29 }
  0xeb   :  { %664 = vmatpush.msrb.mxu3 %v3908_v31  ;;  %3162 = vmatpush.xpose.msk.msrb.mxu0 %vm255_vm1, %v174_v48  ;;  %v126_v31 = vpop.f32.mrf.mxu0 }
  0xec   :  { %3493 = vmatpush.xpose.msk.msrb.mxu2 %vm255_vm1, %v174_v48  ;;  %v254_v32 = vmul.f32 0.35355338, %v126_v31 }
  0xed   :  { %665 = vmatpush.msrb.mxu3 %v3906_v29 }
  0xee   :  { %3140 = vmatmul.msk.f32.gmra.mxu3 %vm255_vm1, %v250_v60 }
  0xef   :  { %666 = vmatpush.msrb.mxu3 %v3904_v26  ;;  %3163 = vmatpush.xpose.msk.msrb.mxu0 %vm255_vm1, %v171_v44 }
  0xf0   :  { %3494 = vmatpush.xpose.msk.msrb.mxu2 %vm255_vm1, %v171_v44 }
  0xf3   :  { %3164 = vmatpush.xpose.msk.msrb.mxu0 %vm255_vm1, %v168_v40 }
  0xf4   :  { %3495 = vmatpush.xpose.msk.msrb.mxu2 %vm255_vm1, %v168_v40 }
  0xf6   :  { %3141 = vmatmul.msk.f32.gmra.mxu3 %vm255_vm1, %v251_v62 }
  0xf7   :  { %3166 = vmatmul.msk.f32.vlgmr.msrb.gmra.mxu2 %vm255_vm1, %v254_v32 }
  0xfe   :  { %3142 = vmatmul.msk.f32.gmra.mxu3 %vm255_vm1, %v252_v0 }
 0x139   :  { %v291_v1 = vpop.f32.mrf.mxu3 }
 0x13a   :  { %v351_v2 = vsel %vm350_vm2, %v291_v1, -inf }
 0x13b   :  { %352 = vmax.xlane.f32.xlu2 %v351_v2 }
 0x141   :  { %v294_v3 = vpop.f32.mrf.mxu3 }
 0x142   :  { %v354_v15 = vsel %vm350_vm2, %v294_v3, -inf }
 0x143   :  { %v3964_v44 = vpop.f32.mrf.mxu1 }
 0x144   :  { %v604_v61 = vsel %vm603_vm3, %v3964_v44, -inf }
 0x149   :  { %v3948_v4 = vpop.f32.mrf.mxu3 }
 0x14a   :  { %v357_v42 = vsel %vm350_vm2, %v3948_v4, -inf }
 0x14b   :  { %v559_v57 = vpop.f32.mrf.mxu1 }
 0x14c   :  { %v607_v59 = vsel %vm603_vm3, %v559_v57, -inf }
 0x151   :  { %v3950_v5 = vpop.f32.mrf.mxu3 }
 0x152   :  { %v360_v53 = vsel %vm350_vm2, %v3950_v5, -inf }
 0x169   :  { %v338_v6 = vpop.f32.mrf.mxu3 }
 0x16a   :  { %v363_v8 = vsel %vm350_vm2, %v338_v6, -inf }
 0x16b   :  { %364 = vmax.xlane.f32.xlu0 %v363_v8 }
 0x171   :  { %v341_v10 = vpop.f32.mrf.mxu3 }
 0x172   :  { %v366_v11 = vsel %vm350_vm2, %v341_v10, -inf }
 0x173   :  { %367 = vmax.xlane.f32.xlu0 %v366_v11 }
 0x179   :  { %v344_v14 = vpop.f32.mrf.mxu3 }
 0x17a   :  { %v369_v24 = vsel %vm350_vm2, %v344_v14, -inf }
 0x17b   :  { %355 = vmax.xlane.f32.xlu0 %v354_v15  ;;  %370 = vmax.xlane.f32.xlu1 %v369_v24 }
 0x181   :  { %v347_v25 = vpop.f32.mrf.mxu3 }
 0x182   :  { %v372_v26 = vsel %vm350_vm2, %v347_v25, -inf }
 0x183   :  { %373 = vmax.xlane.f32.xlu1 %v372_v26 }
 0x1ae   :  { %v353_v45 = vpop.xlane.xlu2 %352 }
 0x1af   :  { %v375_v49 = vsub.f32 %v291_v1, %v353_v45 }
 0x1b1   :  { %v383_v55 = vmul.f32 1.442695, %v375_v49 }
 0x1de   :  { %v365_v28 = vpop.xlane.xlu0 %364 }
 0x1df   :  { %v379_v29 = vsub.f32 %v338_v6, %v365_v28 }
 0x1e1   :  { %v391_v30 = vmul.f32 1.442695, %v379_v29  ;;  %v207_v29 = vpop.f32.mrf.mxu0 }
 0x1e3   :  { %3497 = vpow2.f32 %v391_v30 }
 0x1e6   :  { %v368_v33 = vpop.xlane.xlu0 %367 }
 0x1e7   :  { %v380_v34 = vsub.f32 %v341_v10, %v368_v33 }
 0x1e9   :  { %v3498_v35 = vpop.eup %3497  ;;  %v393_v36 = vmul.f32 1.442695, %v380_v34 }
 0x1ea   :  { %v411_v37 = vsel %vm350_vm2, %v3498_v35, 0.0 }
 0x1eb   :  { %3499 = vpow2.f32 %v393_v36  ;;  %412 = vadd.xlane.f32.xlu2 %v411_v37 }
 0x1ee   :  { %v371_v38 = vpop.xlane.xlu1 %370  ;;  %v356_v47 = vpop.xlane.xlu0 %355 }
 0x1ef   :  { %v381_v39 = vsub.f32 %v344_v14, %v371_v38  ;;  %v376_v52 = vsub.f32 %v294_v3, %v356_v47 }
 0x1f1   :  { %v3500_v40 = vpop.eup %3499  ;;  %v395_v41 = vmul.f32 1.442695, %v381_v39  ;;  %v385_v56 = vmul.f32 1.442695, %v376_v52 }
 0x1f2   :  { %v414_v43 = vsel %vm350_vm2, %v3500_v40, 0.0 }
 0x1f3   :  { %358 = vmax.xlane.f32.xlu2 %v357_v42  ;;  %415 = vadd.xlane.f32.xlu1 %v414_v43  ;;  %3501 = vpow2.f32 %v395_v41 }
 0x1f6   :  { %v374_v46 = vpop.xlane.xlu1 %373 }
 0x1f7   :  { %v382_v48 = vsub.f32 %v347_v25, %v374_v46 }
 0x1f9   :  { %v397_v50 = vmul.f32 1.442695, %v382_v48  ;;  %v3502_v51 = vpop.eup %3501 }
 0x1fa   :  { %v417_v54 = vsel %vm350_vm2, %v3502_v51, 0.0 }
 0x1fb   :  { %3503 = vpow2.f32 %v397_v50  ;;  %361 = vmax.xlane.f32.xlu1 %v360_v53  ;;  %418 = vadd.xlane.f32.xlu0 %v417_v54  ;;  %v600_v54 = vpop.f32.mrf.mxu2 }
 0x1fc   :  { %3505 = vpow2.f32 %v383_v55  ;;  %v253_v55 = vmul.f32 0.35355338, %v3957_v27 }
 0x1fd   :  { %3507 = vpow2.f32 %v385_v56  ;;  %v613_v56 = vsel %vm603_vm3, %v600_v54, -inf }
 0x201   :  { %v3504_v58 = vpop.eup %3503 }
 0x202   :  { %v420_v60 = vsel %vm350_vm2, %v3504_v58, 0.0  ;;  %v3973_v62 = vpop.eup %3505 }
 0x203   :  { %608 = vmax.xlane.f32.xlu1 %v607_v59  ;;  %421 = vadd.xlane.f32.xlu2 %v420_v60  ;;  %v3975_v63 = vpop.eup %3507  ;;  %v399_v0 = vsel %vm350_vm2, %v3973_v62, 0.0 }
 0x204   :  { %605 = vmax.xlane.f32.xlu0 %v604_v61  ;;  %v402_v1 = vsel %vm350_vm2, %v3975_v63, 0.0 }
 0x20b   :  { %400 = vadd.xlane.f32.xlu2 %v399_v0 }
 0x20c   :  { %403 = vadd.xlane.f32.xlu0 %v402_v1  ;;  %v3190_v1 = vld [vmem:[%s5049_s2 + $0x38] sm:$0xff] }
 0x25e   :  { %v413_v2 = vpop.xlane.xlu2 %412 }
 0x25f   :  { %3509 = vrcp.f32 %v413_v2 }
 0x265   :  { %v3510_v3 = vpop.eup %3509 }
 0x266   :  { %v435_v6 = vmul.f32 %v3510_v3, %v3498_v35  ;;  %v359_v8 = vpop.xlane.xlu2 %358  ;;  %v416_v10 = vpop.xlane.xlu1 %415 }
 0x267   :  { %v377_v11 = vsub.f32 %v3948_v4, %v359_v8  ;;  %3511 = vrcp.f32 %v416_v10  ;;  %v3188_v8 = vld [vmem:[%s5049_s2 + $0x28] sm:$0xff] }
 0x268   :  { %3147 = vmatmul.msk.f32.vlgmr.msra.gmra.mxu0 %vm350_vm2, %v435_v6 }
 0x269   :  { %v387_v14 = vmul.f32 1.442695, %v377_v11  ;;  %v3187_v11 = vld [vmem:[%s5049_s2 + $0x20] sm:$0xff] }
 0x26b   :  { %3513 = vpow2.f32 %v387_v14 }
 0x26d   :  { %v3512_v15 = vpop.eup %3511 }
 0x26e   :  { %v362_v24 = vpop.xlane.xlu1 %361  ;;  %v436_v25 = vmul.f32 %v3512_v15, %v3500_v40  ;;  %v419_v26 = vpop.xlane.xlu0 %418 }
 0x26f   :  { %v378_v28 = vsub.f32 %v3950_v5, %v362_v24  ;;  %3515 = vrcp.f32 %v419_v26  ;;  %v210_v5 = vpop.f32.mrf.mxu0 }
 0x270   :  { %3148 = vmatmul.msk.f32.gmra.mxu0 %vm350_vm2, %v436_v25 }
 0x271   :  { %v3514_v30 = vpop.eup %3513  ;;  %v389_v31 = vmul.f32 1.442695, %v378_v28 }
 0x272   :  { %v405_v32 = vsel %vm350_vm2, %v3514_v30, 0.0 }
 0x273   :  { %3517 = vpow2.f32 %v389_v31  ;;  %406 = vadd.xlane.f32.xlu1 %v405_v32 }
 0x275   :  { %v3516_v4 = vpop.eup %3515 }
 0x276   :  { %v422_v33 = vpop.xlane.xlu2 %421  ;;  %v609_v34 = vpop.xlane.xlu1 %608  ;;  %v437_v37 = vmul.f32 %v3516_v4, %v3502_v51 }
 0x277   :  { %v606_v35 = vpop.xlane.xlu0 %605  ;;  %3519 = vrcp.f32 %v422_v33  ;;  %v617_v36 = vsub.f32 %v559_v57, %v609_v34  ;;  %v213_v47 = vpop.f32.mrf.mxu0 }
 0x278   :  { %v616_v38 = vsub.f32 %v3964_v44, %v606_v35  ;;  %3149 = vmatmul.msk.f32.gmra.mxu0 %vm350_vm2, %v437_v37  ;;  %667 = vmatpush.msrb.mxu3 %v213_v47  ;;  %v3173_v37 = vld [vmem:[%s5052_s1 + $0x30] sm:$0xff] }
 0x279   :  { %v3518_v39 = vpop.eup %3517  ;;  %v622_v40 = vmul.f32 1.442695, %v617_v36  ;;  %v3174_v36 = vld [vmem:[%s5052_s1 + $0x38] sm:$0xff] }
 0x27a   :  { %v620_v41 = vmul.f32 1.442695, %v616_v38  ;;  %v408_v42 = vsel %vm350_vm2, %v3518_v39, 0.0  ;;  %668 = vmatpush.msrb.mxu3 %v210_v5  ;;  %724 = vmatpush.msra.mxu2 %v3174_v36  ;;  %v3172_v5 = vld [vmem:[%s5052_s1 + $0x28] sm:$0xff] }
 0x27b   :  { %3521 = vpow2.f32 %v622_v40  ;;  %409 = vadd.xlane.f32.xlu2 %v408_v42 }
 0x27c   :  { %3523 = vpow2.f32 %v620_v41  ;;  %669 = vmatpush.msrb.mxu3 %v207_v29  ;;  %725 = vmatpush.msra.mxu2 %v3173_v37 }
 0x27d   :  { %v3520_v43 = vpop.eup %3519 }
 0x27e   :  { %v401_v45 = vpop.xlane.xlu2 %400  ;;  %v438_v46 = vmul.f32 %v3520_v43, %v3504_v58  ;;  %726 = vmatpush.msra.mxu2 %v3172_v5 }
 0x27f   :  { %3525 = vrcp.f32 %v401_v45  ;;  %v404_v49 = vpop.xlane.xlu0 %403 }
 0x280   :  { %3150 = vmatmul.msk.f32.gmra.mxu0 %vm350_vm2, %v438_v46  ;;  %3527 = vrcp.f32 %v404_v49 }
 0x281   :  { %v3522_v48 = vpop.eup %3521 }
 0x282   :  { %v3524_v44 = vpop.eup %3523  ;;  %v631_v50 = vsel %vm603_vm3, %v3522_v48, 0.0 }
 0x283   :  { %v628_v51 = vsel %vm603_vm3, %v3524_v44, 0.0  ;;  %632 = vadd.xlane.f32.xlu1 %v631_v50 }
 0x284   :  { %629 = vadd.xlane.f32.xlu0 %v628_v51 }
 0x285   :  { %v3526_v52 = vpop.eup %3525 }
 0x286   :  { %v431_v53 = vmul.f32 %v3526_v52, %v3973_v62  ;;  %v3528_v57 = vpop.eup %3527 }
 0x287   :  { %v432_v58 = vmul.f32 %v3528_v57, %v3975_v63  ;;  %v3189_v63 = vld [vmem:[%s5049_s2 + $0x30] sm:$0xff] }
 0x288   :  { %3143 = vmatmul.msk.f32.vlgmr.msra.gmra.mxu3 %vm350_vm2, %v431_v53  ;;  %3165 = vmatmul.msk.f32.vlgmr.msrb.gmra.mxu0 %vm255_vm1, %v253_v55 }
 0x289   :  { %782 = vmatpush.msra.mxu3 %v3190_v1  ;;  %v3205_v1 = vld [vmem:[%s5050_s3 + $0x30] sm:$0xff] }
 0x28b   :  { %783 = vmatpush.msra.mxu3 %v3189_v63 }
 0x28c   :  { %614 = vmax.xlane.f32.xlu0 %v613_v56 }
 0x28d   :  { %784 = vmatpush.msra.mxu3 %v3188_v8 }
 0x28f   :  { %785 = vmatpush.msra.mxu3 %v3187_v11 }
 0x290   :  { %3144 = vmatmul.msk.f32.gmra.mxu3 %vm350_vm2, %v432_v58 }
 0x2e5   :  { %v3999_v59 = vpop.f32.mrf.mxu0 }
 0x2e6   :  { %v407_v60 = vpop.xlane.xlu1 %406 }
 0x2e7   :  { %3529 = vrcp.f32 %v407_v60 }
 0x2ed   :  { %v3530_v61 = vpop.eup %3529  ;;  %v4001_v62 = vpop.f32.mrf.mxu0 }
 0x2ee   :  { %v410_v27 = vpop.xlane.xlu2 %409  ;;  %v433_v0 = vmul.f32 %v3530_v61, %v3514_v30 }
 0x2ef   :  { %3531 = vrcp.f32 %v410_v27 }
 0x2f0   :  { %3145 = vmatmul.msk.f32.gmra.mxu3 %vm350_vm2, %v433_v0  ;;  %v3206_v0 = vld [vmem:[%s5050_s3 + $0x38] sm:$0xff] }
 0x2f1   :  { %840 = vmatpush.msra.mxu0 %v3206_v0 }
 0x2f3   :  { %841 = vmatpush.msra.mxu0 %v3205_v1 }
 0x2f5   :  { %v3532_v2 = vpop.eup %3531  ;;  %v4010_v3 = vpop.f32.mrf.mxu0 }
 0x2f6   :  { %v434_v6 = vmul.f32 %v3532_v2, %v3518_v39  ;;  %v633_v14 = vpop.xlane.xlu1 %632  ;;  %v3171_v39 = vld [vmem:[%s5052_s1 + $0x20] sm:$0xff] }
 0x2f7   :  { %v630_v10 = vpop.xlane.xlu0 %629  ;;  %727 = vmatpush.msra.mxu2 %v3171_v39 }
 0x2f8   :  { %3533 = vrcp.f32 %v630_v10  ;;  %3146 = vmatmul.msk.f32.gmra.mxu3 %vm350_vm2, %v434_v6  ;;  %3175 = vmatmul.msk.f32.vlgmr.msra.gmra.mxu2 %vm39_vm0, %v3760_v7 }
 0x2f9   :  { %3535 = vrcp.f32 %v633_v14 }
 0x2fd   :  { %v4019_v24 = vpop.f32.mrf.mxu0 }
 0x2fe   :  { %v3534_v15 = vpop.eup %3533 }
 0x2ff   :  { %v644_v25 = vmul.f32 %v3534_v15, %v3524_v44  ;;  %v615_v26 = vpop.xlane.xlu0 %614  ;;  %v3536_v30 = vpop.eup %3535  ;;  %v3204_v15 = vld [vmem:[%s5050_s3 + $0x28] sm:$0xff] }
 0x300   :  { %v619_v28 = vsub.f32 %v600_v54, %v615_v26  ;;  %v645_v4 = vmul.f32 %v3536_v30, %v3522_v48  ;;  %3176 = vmatmul.msk.f32.gmra.mxu2 %vm39_vm0, %v3783_v12  ;;  %842 = vmatpush.msra.mxu0 %v3204_v15 }
 0x301   :  { %3167 = vmatmul.msk.f32.vlgmr.msrb.gmra.mxu3 %vm603_vm3, %v644_v25  ;;  %v3203_v25 = vld [vmem:[%s5050_s3 + $0x20] sm:$0xff] }
 0x302   :  { %v626_v29 = vmul.f32 1.442695, %v619_v28  ;;  %843 = vmatpush.msra.mxu0 %v3203_v25 }
 0x303   :  { %3207 = vmatmul.msk.f32.vlgmr.msra.gmra.mxu0 %vm39_vm0, %v3760_v7 }
 0x304   :  { %3537 = vpow2.f32 %v626_v29 }
 0x305   :  { %v597_v31 = vpop.f32.mrf.mxu0 }
 0x306   :  { %v610_v32 = vsel %vm603_vm3, %v597_v31, -inf }
 0x307   :  { %611 = vmax.xlane.f32.xlu2 %v610_v32 }
 0x308   :  { %3177 = vmatmul.msk.f32.gmra.mxu2 %vm39_vm0, %v3805_v16 }
 0x309   :  { %3168 = vmatmul.msk.f32.gmra.mxu3 %vm603_vm3, %v645_v4 }
 0x30a   :  { %v4024_v33 = vpop.eup %3537 }
 0x30b   :  { %v637_v34 = vsel %vm603_vm3, %v4024_v33, 0.0  ;;  %v4048_v35 = vpop.f32.mrf.mxu3  ;;  %3208 = vmatmul.msk.f32.gmra.mxu0 %vm39_vm0, %v3783_v12 }
 0x30f   :  { %638 = vadd.xlane.f32.xlu2 %v637_v34 }
 0x310   :  { %3178 = vmatmul.msk.f32.gmra.mxu2 %vm39_vm0, %v3768_v9 }
 0x311   :  { %3191 = vmatmul.msk.f32.vlgmr.msra.gmra.mxu3 %vm39_vm0, %v3760_v7 }
 0x313   :  { %v4060_v38 = vpop.f32.mrf.mxu3  ;;  %3209 = vmatmul.msk.f32.gmra.mxu0 %vm39_vm0, %v3805_v16 }
 0x318   :  { %3179 = vmatmul.msk.f32.gmra.mxu2 %vm39_vm0, %v3788_v13 }
 0x319   :  { %3192 = vmatmul.msk.f32.gmra.mxu3 %vm39_vm0, %v3783_v12 }
 0x31b   :  { %3210 = vmatmul.msk.f32.gmra.mxu0 %vm39_vm0, %v3768_v9 }
 0x320   :  { %3180 = vmatmul.msk.f32.gmra.mxu2 %vm39_vm0, %v3810_v17 }
 0x321   :  { %3193 = vmatmul.msk.f32.gmra.mxu3 %vm39_vm0, %v3805_v16 }
 0x323   :  { %3211 = vmatmul.msk.f32.gmra.mxu0 %vm39_vm0, %v3788_v13 }
 0x328   :  { %3181 = vmatmul.msk.f32.gmra.mxu2 %vm39_vm0, %v3821_v18 }
 0x329   :  { %3194 = vmatmul.msk.f32.gmra.mxu3 %vm39_vm0, %v3768_v9 }
 0x32b   :  { %3212 = vmatmul.msk.f32.gmra.mxu0 %vm39_vm0, %v3810_v17 }
 0x330   :  { %3182 = vmatmul.msk.f32.gmra.mxu2 %vm39_vm0, %v3832_v19 }
 0x331   :  { %3195 = vmatmul.msk.f32.gmra.mxu3 %vm39_vm0, %v3788_v13 }
 0x333   :  { %3213 = vmatmul.msk.f32.gmra.mxu0 %vm39_vm0, %v3821_v18 }
 0x338   :  { %3183 = vmatmul.msk.f32.gmra.mxu2 %vm39_vm0, %v3843_v20 }
 0x339   :  { %3196 = vmatmul.msk.f32.gmra.mxu3 %vm39_vm0, %v3810_v17 }
 0x33b   :  { %3214 = vmatmul.msk.f32.gmra.mxu0 %vm39_vm0, %v3832_v19 }
 0x340   :  { %3184 = vmatmul.msk.f32.gmra.mxu2 %vm39_vm0, %v3854_v21 }
 0x341   :  { %3197 = vmatmul.msk.f32.gmra.mxu3 %vm39_vm0, %v3821_v18 }
 0x343   :  { %3215 = vmatmul.msk.f32.gmra.mxu0 %vm39_vm0, %v3843_v20 }
 0x348   :  { %3185 = vmatmul.msk.f32.gmra.mxu2 %vm39_vm0, %v3865_v22 }
 0x349   :  { %3198 = vmatmul.msk.f32.gmra.mxu3 %vm39_vm0, %v3832_v19 }
 0x34b   :  { %3216 = vmatmul.msk.f32.gmra.mxu0 %vm39_vm0, %v3854_v21 }
 0x350   :  { %3186 = vmatmul.msk.f32.gmra.mxu2 %vm39_vm0, %v3876_v23 }
 0x351   :  { %3199 = vmatmul.msk.f32.gmra.mxu3 %vm39_vm0, %v3843_v20 }
 0x353   :  { %3217 = vmatmul.msk.f32.gmra.mxu0 %vm39_vm0, %v3865_v22 }
 0x359   :  { %3200 = vmatmul.msk.f32.gmra.mxu3 %vm39_vm0, %v3854_v21 }
 0x35b   :  { %3218 = vmatmul.msk.f32.gmra.mxu0 %vm39_vm0, %v3876_v23 }
 0x361   :  { %3201 = vmatmul.msk.f32.gmra.mxu3 %vm39_vm0, %v3865_v22 }
 0x369   :  { %3202 = vmatmul.msk.f32.gmra.mxu3 %vm39_vm0, %v3876_v23 }
 0x373   :  { %v4070_v40 = vpop.f32.mrf.mxu3 }
 0x37a   :  { %v612_v41 = vpop.xlane.xlu2 %611 }
 0x37b   :  { %v4074_v42 = vpop.f32.mrf.mxu3  ;;  %v618_v43 = vsub.f32 %v597_v31, %v612_v41  ;;  %v729_v61 = vpop.f32.mrf.mxu2 }
 0x37c   :  { %v881_v63 = vmul.f32 0.35355338, %v729_v61 }
 0x37d   :  { %v624_v45 = vmul.f32 1.442695, %v618_v43 }
 0x37f   :  { %3539 = vpow2.f32 %v624_v45 }
 0x380   :  { %v4165_v34 = vpop.f32.mrf.mxu0 }
 0x382   :  { %v639_v56 = vpop.xlane.xlu2 %638 }
 0x383   :  { %v732_v2 = vpop.f32.mrf.mxu2 }
 0x384   :  { %v4078_v46 = vpop.f32.mrf.mxu3  ;;  %v882_v6 = vmul.f32 0.35355338, %v732_v2 }
 0x385   :  { %v3540_v47 = vpop.eup %3539 }
 0x386   :  { %v634_v48 = vsel %vm603_vm3, %v3540_v47, 0.0 }
 0x387   :  { %635 = vadd.xlane.f32.xlu1 %v634_v48 }
 0x388   :  { %v4167_v37 = vpop.f32.mrf.mxu0 }
 0x38b   :  { %v735_v8 = vpop.f32.mrf.mxu2 }
 0x38c   :  { %v4083_v44 = vpop.f32.mrf.mxu3  ;;  %v883_v10 = vmul.f32 0.35355338, %v735_v8 }
 0x390   :  { %v4169_v21 = vpop.f32.mrf.mxu0 }
 0x393   :  { %v738_v11 = vpop.f32.mrf.mxu2 }
 0x394   :  { %v787_v49 = vpop.f32.mrf.mxu3  ;;  %v884_v14 = vmul.f32 0.35355338, %v738_v11 }
 0x398   :  { %v4171_v22 = vpop.f32.mrf.mxu0 }
 0x39b   :  { %v741_v26 = vpop.f32.mrf.mxu2 }
 0x39c   :  { %v790_v50 = vpop.f32.mrf.mxu3  ;;  %v885_v28 = vmul.f32 0.35355338, %v741_v26 }
 0x3a0   :  { %v4175_v23 = vpop.f32.mrf.mxu0 }
 0x3a3   :  { %v744_v19 = vpop.f32.mrf.mxu2 }
 0x3a4   :  { %v793_v51 = vpop.f32.mrf.mxu3  ;;  %v886_v4 = vmul.f32 0.35355338, %v744_v19 }
 0x3ab   :  { %v747_v41 = vpop.f32.mrf.mxu2 }
 0x3ac   :  { %v796_v52 = vpop.f32.mrf.mxu3  ;;  %v887_v43 = vmul.f32 0.35355338, %v747_v41 }
 0x3b4   :  { %v799_v53 = vpop.f32.mrf.mxu3 }
 0x3bc   :  { %v802_v54 = vpop.f32.mrf.mxu3 }
 0x3bd   :  { %3239 = vmatpush.xpose.msk.msrb.mxu3 %vm255_vm1, %v802_v54  ;;  %3219 = vmatpush.xpose.msk.msrb.mxu1 %vm255_vm1, %v802_v54 }
 0x3c1   :  { %3240 = vmatpush.xpose.msk.msrb.mxu3 %vm255_vm1, %v799_v53  ;;  %3220 = vmatpush.xpose.msk.msrb.mxu1 %vm255_vm1, %v799_v53 }
 0x3c4   :  { %v805_v18 = vpop.f32.mrf.mxu3 }
 0x3c5   :  { %3241 = vmatpush.xpose.msk.msrb.mxu3 %vm255_vm1, %v796_v52 }
 0x3c9   :  { %3242 = vmatpush.xpose.msk.msrb.mxu3 %vm255_vm1, %v793_v51 }
 0x3cc   :  { %v808_v20 = vpop.f32.mrf.mxu3 }
 0x3cd   :  { %3243 = vmatpush.xpose.msk.msrb.mxu3 %vm255_vm1, %v790_v50  ;;  %v750_v50 = vpop.f32.mrf.mxu2 }
 0x3ce   :  { %v888_v51 = vmul.f32 0.35355338, %v750_v50 }
 0x3d1   :  { %3244 = vmatpush.xpose.msk.msrb.mxu3 %vm255_vm1, %v787_v49  ;;  %v860_v49 = vpop.f32.mrf.mxu0 }
 0x3d4   :  { %3245 = vmatmul.msk.f32.vlgmr.msrb.gmra.mxu3 %vm255_vm1, %v885_v28 }
 0x3dc   :  { %3246 = vmatmul.msk.f32.gmra.mxu3 %vm255_vm1, %v886_v4 }
 0x3fa   :  { %v636_v55 = vpop.xlane.xlu1 %635 }
 0x3fb   :  { %3541 = vrcp.f32 %v636_v55 }
 0x3fc   :  { %3543 = vrcp.f32 %v639_v56 }
 0x401   :  { %v3542_v57 = vpop.eup %3541 }
 0x402   :  { %v646_v58 = vmul.f32 %v3542_v57, %v3540_v47  ;;  %v3544_v60 = vpop.eup %3543  ;;  %v753_v57 = vpop.f32.mrf.mxu2 }
 0x403   :  { %v647_v27 = vmul.f32 %v3544_v60, %v4024_v33  ;;  %v811_v33 = vpop.f32.mrf.mxu3 }
 0x404   :  { %3169 = vmatmul.msk.f32.vlgmr.msra.gmra.mxu1 %vm603_vm3, %v646_v58  ;;  %v889_v58 = vmul.f32 0.35355338, %v753_v57 }
 0x40b   :  { %v814_v36 = vpop.f32.mrf.mxu3 }
 0x40c   :  { %3170 = vmatmul.msk.f32.gmra.mxu1 %vm603_vm3, %v647_v27 }
 0x413   :  { %v817_v5 = vpop.f32.mrf.mxu3 }
 0x414   :  { %3221 = vmatmul.msk.f32.vlgmr.msrb.gmra.mxu1 %vm255_vm1, %v881_v63  ;;  %v756_v63 = vpop.f32.mrf.mxu2 }
 0x415   :  { %v890_v2 = vmul.f32 0.35355338, %v756_v63 }
 0x41b   :  { %v820_v39 = vpop.f32.mrf.mxu3 }
 0x41c   :  { %3222 = vmatmul.msk.f32.gmra.mxu1 %vm255_vm1, %v882_v6  ;;  %v759_v41 = vpop.f32.mrf.mxu2 }
 0x41d   :  { %3225 = vmatpush.xpose.msk.msra.mxu1 %vm255_vm1, %v820_v39 }
 0x421   :  { %3226 = vmatpush.xpose.msk.msra.mxu1 %vm255_vm1, %v817_v5 }
 0x424   :  { %3223 = vmatmul.msk.f32.gmra.mxu1 %vm255_vm1, %v883_v10 }
 0x425   :  { %1101 = vmatpush.msrb.mxu1 %v860_v49 }
 0x427   :  { %1102 = vmatpush.msrb.mxu1 %v4175_v23 }
 0x42c   :  { %3224 = vmatmul.msk.f32.gmra.mxu1 %vm255_vm1, %v884_v14 }
 0x434   :  { %3227 = vmatmul.msk.f32.vlgmr.msra.gmra.mxu1 %vm255_vm1, %v887_v43  ;;  %v891_v43 = vmul.f32 0.35355338, %v759_v41 }
 0x435   :  { %3247 = vmatpush.xpose.msk.msra.mxu1 %vm255_vm1, %v820_v39 }
 0x439   :  { %3248 = vmatpush.xpose.msk.msra.mxu1 %vm255_vm1, %v817_v5 }
 0x43c   :  { %3228 = vmatmul.msk.f32.gmra.mxu1 %vm255_vm1, %v888_v51 }
 0x43d   :  { %3249 = vmatpush.xpose.msk.msra.mxu1 %vm255_vm1, %v814_v36 }
 0x441   :  { %3250 = vmatpush.xpose.msk.msra.mxu1 %vm255_vm1, %v811_v33 }
 0x444   :  { %3229 = vmatmul.msk.f32.gmra.mxu1 %vm255_vm1, %v889_v58 }
 0x445   :  { %3251 = vmatpush.xpose.msk.msra.mxu1 %vm255_vm1, %v808_v20 }
 0x449   :  { %3252 = vmatpush.xpose.msk.msra.mxu1 %vm255_vm1, %v805_v18 }
 0x44c   :  { %3230 = vmatmul.msk.f32.gmra.mxu1 %vm255_vm1, %v890_v2 }
 0x457   :  { %v1192_v6 = vpop.f32.mrf.mxu3 }
 0x458   :  { %v1239_v11 = vsel %vm603_vm3, %v1192_v6, -inf }
 0x481   :  { %v4137_v29 = vpop.f32.mrf.mxu1 }
 0x489   :  { %v4141_v30 = vpop.f32.mrf.mxu1 }
 0x491   :  { %v928_v7 = vpop.f32.mrf.mxu1 }
 0x492   :  { %v987_v12 = vsel %vm350_vm2, %v928_v7, -inf }
 0x493   :  { %988 = vmax.xlane.f32.xlu0 %v987_v12 }
 0x499   :  { %v931_v9 = vpop.f32.mrf.mxu1 }
 0x49a   :  { %v990_v16 = vsel %vm350_vm2, %v931_v9, -inf }
 0x49b   :  { %991 = vmax.xlane.f32.xlu1 %v990_v16 }
 0x4a1   :  { %v934_v13 = vpop.f32.mrf.mxu1 }
 0x4a2   :  { %v993_v31 = vsel %vm350_vm2, %v934_v13, -inf }
 0x4a3   :  { %994 = vmax.xlane.f32.xlu2 %v993_v31 }
 0x4a9   :  { %v4154_v17 = vpop.f32.mrf.mxu1 }
 0x4aa   :  { %v996_v32 = vsel %vm350_vm2, %v4154_v17, -inf }
 0x4ab   :  { %997 = vmax.xlane.f32.xlu0 %v996_v32 }
 0x506   :  { %v989_v45 = vpop.xlane.xlu0 %988 }
 0x507   :  { %v1011_v47 = vsub.f32 %v928_v7, %v989_v45  ;;  %v4194_v7 = vpop.f32.mrf.mxu3  ;;  %v4210_v45 = vpop.f32.mrf.mxu1 }
 0x508   :  { %v1242_v12 = vsel %vm603_vm3, %v4194_v7, -inf }
 0x509   :  { %v1019_v48 = vmul.f32 1.442695, %v1011_v47  ;;  %v3259_v47 = vld [vmem:[%s5053_s4 + $0x8] sm:$0xff] }
 0x50a   :  { %1382 = vmatpush.msrb.mxu0 %v3259_v47 }
 0x50b   :  { %3545 = vpow2.f32 %v1019_v48 }
 0x50e   :  { %v992_v52 = vpop.xlane.xlu1 %991 }
 0x50f   :  { %v1012_v53 = vsub.f32 %v931_v9, %v992_v52  ;;  %v4215_v48 = vpop.f32.mrf.mxu1 }
 0x511   :  { %v3546_v54 = vpop.eup %3545  ;;  %v1021_v55 = vmul.f32 1.442695, %v1012_v53 }
 0x512   :  { %v1035_v56 = vsel %vm350_vm2, %v3546_v54, 0.0 }
 0x513   :  { %3547 = vpow2.f32 %v1021_v55  ;;  %1036 = vadd.xlane.f32.xlu1 %v1035_v56 }
 0x516   :  { %v995_v60 = vpop.xlane.xlu2 %994 }
 0x517   :  { %v1013_v61 = vsub.f32 %v934_v13, %v995_v60 }
 0x519   :  { %v3548_v27 = vpop.eup %3547  ;;  %v1023_v0 = vmul.f32 1.442695, %v1013_v61  ;;  %v863_v61 = vpop.f32.mrf.mxu0 }
 0x51a   :  { %v1038_v1 = vsel %vm350_vm2, %v3548_v27, 0.0 }
 0x51b   :  { %3549 = vpow2.f32 %v1023_v0  ;;  %1039 = vadd.xlane.f32.xlu2 %v1038_v1 }
 0x51e   :  { %v998_v8 = vpop.xlane.xlu0 %997 }
 0x51f   :  { %v1014_v10 = vsub.f32 %v4154_v17, %v998_v8 }
 0x521   :  { %v3550_v14 = vpop.eup %3549  ;;  %v1025_v15 = vmul.f32 1.442695, %v1014_v10  ;;  %v866_v63 = vpop.f32.mrf.mxu0 }
 0x522   :  { %v1041_v25 = vsel %vm350_vm2, %v3550_v14, 0.0 }
 0x523   :  { %3551 = vpow2.f32 %v1025_v15  ;;  %1240 = vmax.xlane.f32.xlu2 %v1239_v11  ;;  %1042 = vadd.xlane.f32.xlu0 %v1041_v25 }
 0x529   :  { %v3552_v26 = vpop.eup %3551  ;;  %v869_v11 = vpop.f32.mrf.mxu0 }
 0x52a   :  { %v1044_v28 = vsel %vm350_vm2, %v3552_v26, 0.0 }
 0x52b   :  { %1045 = vadd.xlane.f32.xlu1 %v1044_v28  ;;  %1243 = vmax.xlane.f32.xlu0 %v1242_v12 }
 0x531   :  { %v872_v15 = vpop.f32.mrf.mxu0 }
 0x586   :  { %v1037_v9 = vpop.xlane.xlu1 %1036 }
 0x587   :  { %3553 = vrcp.f32 %v1037_v9 }
 0x58d   :  { %v3554_v16 = vpop.eup %3553 }
 0x58e   :  { %v1067_v13 = vmul.f32 %v3554_v16, %v3546_v54  ;;  %v1040_v31 = vpop.xlane.xlu2 %1039 }
 0x58f   :  { %3555 = vrcp.f32 %v1040_v31 }
 0x590   :  { %3231 = vmatmul.msk.f32.vlgmr.msrb.gmra.mxu1 %vm350_vm2, %v1067_v13 }
 0x591   :  { %1299 = vmatpush.msrb.mxu1 %v860_v49  ;;  %v4217_v49 = vpop.f32.mrf.mxu1 }
 0x593   :  { %1300 = vmatpush.msrb.mxu1 %v4175_v23 }
 0x595   :  { %v3556_v17 = vpop.eup %3555  ;;  %1301 = vmatpush.msrb.mxu1 %v4171_v22 }
 0x596   :  { %v1241_v32 = vpop.xlane.xlu2 %1240  ;;  %v1043_v18 = vpop.xlane.xlu0 %1042  ;;  %v1068_v19 = vmul.f32 %v3556_v17, %v3548_v27 }
 0x597   :  { %1302 = vmatpush.msrb.mxu1 %v4169_v21  ;;  %v1251_v4 = vsub.f32 %v1192_v6, %v1241_v32  ;;  %3557 = vrcp.f32 %v1043_v18 }
 0x598   :  { %3232 = vmatmul.msk.f32.gmra.mxu1 %vm350_vm2, %v1068_v19 }
 0x599   :  { %v1255_v20 = vmul.f32 1.442695, %v1251_v4  ;;  %1303 = vmatpush.msrb.mxu1 %v4167_v37  ;;  %v762_v37 = vpop.f32.mrf.mxu2  ;;  %v4219_v50 = vpop.f32.mrf.mxu1 }
 0x59a   :  { %v1008_v25 = vsel %vm350_vm2, %v4219_v50, -inf }
 0x59b   :  { %3559 = vpow2.f32 %v1255_v20  ;;  %1304 = vmatpush.msrb.mxu1 %v4165_v34  ;;  %v892_v34 = vmul.f32 0.35355338, %v762_v37 }
 0x59d   :  { %v3558_v33 = vpop.eup %3557 }
 0x59e   :  { %v1046_v36 = vpop.xlane.xlu1 %1045  ;;  %v1069_v5 = vmul.f32 %v3558_v33, %v3550_v14  ;;  %v1244_v52 = vpop.xlane.xlu0 %1243  ;;  %v999_v14 = vsel %vm350_vm2, %v4210_v45, -inf }
 0x59f   :  { %3561 = vrcp.f32 %v1046_v36  ;;  %v1252_v58 = vsub.f32 %v4194_v7, %v1244_v52  ;;  %v706_v7 = vld [vmem:[%s5053_s4] sm:$0xff] }
 0x5a0   :  { %3233 = vmatmul.msk.f32.gmra.mxu1 %vm350_vm2, %v1069_v5 }
 0x5a1   :  { %v3560_v39 = vpop.eup %3559  ;;  %v1257_v27 = vmul.f32 1.442695, %v1252_v58 }
 0x5a2   :  { %v1263_v22 = vsel %vm603_vm3, %v3560_v39, 0.0 }
 0x5a3   :  { %1264 = vadd.xlane.f32.xlu0 %v1263_v22  ;;  %v1002_v22 = vsel %vm350_vm2, %v4215_v48, -inf }
 0x5a5   :  { %v3562_v21 = vpop.eup %3561 }
 0x5a6   :  { %v1070_v23 = vmul.f32 %v3562_v21, %v3552_v26  ;;  %v875_v26 = vpop.f32.mrf.mxu0 }
 0x5a8   :  { %3234 = vmatmul.msk.f32.gmra.mxu1 %vm350_vm2, %v1070_v23 }
 0x5ae   :  { %v878_v28 = vpop.f32.mrf.mxu0 }
 0x5af   :  { %1328 = vmatpush.msra.mxu3 %v878_v28  ;;  %1142 = vmatpush.msrb.mxu2 %v878_v28 }
 0x5b0   :  { %3253 = vmatmul.msk.f32.vlgmr.msra.gmra.mxu1 %vm255_vm1, %v891_v43 }
 0x5b1   :  { %1329 = vmatpush.msra.mxu3 %v875_v26  ;;  %1143 = vmatpush.msrb.mxu2 %v875_v26 }
 0x5b2   :  { %1447 = vmatpush.msra.mxu1 %v706_v7 }
 0x5b3   :  { %1500 = vmatpush.msra.mxu2 %v3259_v47  ;;  %1330 = vmatpush.msra.mxu3 %v872_v15  ;;  %v4367_v15 = vld [vmem:[%s5051_s0 + $0x50] sm:$0xff] }
 0x5b5   :  { %1331 = vmatpush.msra.mxu3 %v869_v11  ;;  %v4360_v11 = vld [vmem:[%s5051_s0 + $0x48] sm:$0xff] }
 0x5b7   :  { %1332 = vmatpush.msra.mxu3 %v866_v63  ;;  %v4325_v63 = vld [vmem:[%s5051_s0 + $0x20] sm:$0xff] }
 0x5b8   :  { %3254 = vmatmul.msk.f32.gmra.mxu1 %vm255_vm1, %v892_v34 }
 0x5b9   :  { %1333 = vmatpush.msra.mxu3 %v863_v61 }
 0x5bb   :  { %1541 = vmatpush.msrb.mxu3 %v706_v7 }
 0x60d   :  { %v1104_v51 = vpop.f32.mrf.mxu1 }
 0x60e   :  { %3260 = vmatmul.msk.f32.vlgmr.msrb.gmra.mxu0 %vm255_vm1, %v1104_v51 }
 0x615   :  { %v1107_v53 = vpop.f32.mrf.mxu1 }
 0x616   :  { %v1265_v54 = vpop.xlane.xlu0 %1264  ;;  %3261 = vmatmul.msk.f32.gmra.mxu0 %vm255_vm1, %v1107_v53 }
 0x617   :  { %3563 = vrcp.f32 %v1265_v54 }
 0x618   :  { %3565 = vpow2.f32 %v1257_v27  ;;  %v3302_v27 = vld [vmem:[%s5049_s2 + $0x50] sm:$0xff] }
 0x61d   :  { %v3564_v55 = vpop.eup %3563  ;;  %v1110_v56 = vpop.f32.mrf.mxu1 }
 0x61e   :  { %v1279_v57 = vmul.f32 %v3564_v55, %v3560_v39  ;;  %3262 = vmatmul.msk.f32.gmra.mxu0 %vm255_vm1, %v1110_v56  ;;  %v3566_v2 = vpop.eup %3565 }
 0x61f   :  { %v1266_v8 = vsel %vm603_vm3, %v3566_v2, 0.0 }
 0x620   :  { %3255 = vmatmul.msk.f32.vlgmr.msrb.gmra.mxu1 %vm603_vm3, %v1279_v57 }
 0x625   :  { %v1113_v60 = vpop.f32.mrf.mxu1 }
 0x626   :  { %3263 = vmatmul.msk.f32.gmra.mxu0 %vm255_vm1, %v1113_v60 }
 0x62d   :  { %v1233_v0 = vpop.f32.mrf.mxu1 }
 0x62e   :  { %v1245_v1 = vsel %vm603_vm3, %v1233_v0, -inf }
 0x62f   :  { %1246 = vmax.xlane.f32.xlu1 %v1245_v1  ;;  %v4318_v1 = vld [vmem:[%s5051_s0 + $0x18] sm:$0xff] }
 0x635   :  { %v1236_v6 = vpop.f32.mrf.mxu1 }
 0x636   :  { %v1248_v10 = vsel %vm603_vm3, %v1236_v6, -inf }
 0x637   :  { %1267 = vadd.xlane.f32.xlu1 %v1266_v8  ;;  %1249 = vmax.xlane.f32.xlu2 %v1248_v10  ;;  %v4346_v8 = vld [vmem:[%s5051_s0 + $0x38] sm:$0xff]  ;;  %v4353_v10 = vld [vmem:[%s5051_s0 + $0x40] sm:$0xff] }
 0x63f   :  { %1000 = vmax.xlane.f32.xlu1 %v999_v14 }
 0x647   :  { %1009 = vmax.xlane.f32.xlu1 %v1008_v25 }
 0x6a2   :  { %v1247_v12 = vpop.xlane.xlu1 %1246 }
 0x6a3   :  { %v1253_v9 = vsub.f32 %v1233_v0, %v1247_v12  ;;  %v4311_v0 = vld [vmem:[%s5051_s0 + $0x10] sm:$0xff]  ;;  %v4375_v12 = vld [vmem:[%s5051_s0 + $0x58] sm:$0xff] }
 0x6a5   :  { %v1259_v16 = vmul.f32 1.442695, %v1253_v9 }
 0x6a7   :  { %3567 = vpow2.f32 %v1259_v16 }
 0x6aa   :  { %v1268_v13 = vpop.xlane.xlu1 %1267  ;;  %v1250_v31 = vpop.xlane.xlu2 %1249 }
 0x6ab   :  { %3569 = vrcp.f32 %v1268_v13  ;;  %v1254_v17 = vsub.f32 %v1236_v6, %v1250_v31  ;;  %v4339_v6 = vld [vmem:[%s5051_s0 + $0x30] sm:$0xff] }
 0x6ad   :  { %v3568_v32 = vpop.eup %3567  ;;  %v1261_v18 = vmul.f32 1.442695, %v1254_v17 }
 0x6ae   :  { %v1269_v19 = vsel %vm603_vm3, %v3568_v32, 0.0 }
 0x6af   :  { %3571 = vpow2.f32 %v1261_v18  ;;  %1270 = vadd.xlane.f32.xlu2 %v1269_v19 }
 0x6b1   :  { %v3570_v4 = vpop.eup %3569 }
 0x6b2   :  { %v1001_v20 = vpop.xlane.xlu1 %1000  ;;  %v1280_v33 = vmul.f32 %v3570_v4, %v3566_v2  ;;  %v4332_v2 = vld [vmem:[%s5051_s0 + $0x28] sm:$0xff]  ;;  %v3287_v4 = vld [vmem:[%s5052_s1 + $0x58] sm:$0xff] }
 0x6b3   :  { %v1015_v36 = vsub.f32 %v4210_v45, %v1001_v20  ;;  %v1005_v45 = vsel %vm350_vm2, %v4217_v49, -inf  ;;  %v3286_v20 = vld [vmem:[%s5052_s1 + $0x50] sm:$0xff] }
 0x6b4   :  { %3256 = vmatmul.msk.f32.gmra.mxu1 %vm603_vm3, %v1280_v33  ;;  %v3285_v33 = vld [vmem:[%s5052_s1 + $0x48] sm:$0xff] }
 0x6b5   :  { %v3572_v5 = vpop.eup %3571  ;;  %v1027_v39 = vmul.f32 1.442695, %v1015_v36 }
 0x6b6   :  { %v1272_v21 = vsel %vm603_vm3, %v3572_v5, 0.0 }
 0x6b7   :  { %3573 = vpow2.f32 %v1027_v39  ;;  %1003 = vmax.xlane.f32.xlu2 %v1002_v22  ;;  %1273 = vadd.xlane.f32.xlu0 %v1272_v21  ;;  %v1306_v39 = vpop.f32.mrf.mxu1 }
 0x6ba   :  { %v1010_v23 = vpop.xlane.xlu1 %1009 }
 0x6bb   :  { %v1018_v41 = vsub.f32 %v4219_v50, %v1010_v23 }
 0x6bc   :  { %3268 = vmatmul.msk.f32.vlgmr.msra.gmra.mxu1 %vm255_vm1, %v4048_v35 }
 0x6bd   :  { %v3574_v43 = vpop.eup %3573  ;;  %v1033_v37 = vmul.f32 1.442695, %v1018_v41 }
 0x6be   :  { %v1047_v34 = vsel %vm350_vm2, %v3574_v43, 0.0 }
 0x6bf   :  { %3575 = vpow2.f32 %v1033_v37  ;;  %1048 = vadd.xlane.f32.xlu2 %v1047_v34  ;;  %1006 = vmax.xlane.f32.xlu0 %v1005_v45 }
 0x6c4   :  { %3269 = vmatmul.msk.f32.gmra.mxu1 %vm255_vm1, %v4060_v38 }
 0x6c5   :  { %v4251_v47 = vpop.eup %3575 }
 0x6c6   :  { %v1056_v50 = vsel %vm350_vm2, %v4251_v47, 0.0 }
 0x6c7   :  { %1057 = vadd.xlane.f32.xlu2 %v1056_v50 }
 0x6cc   :  { %3270 = vmatmul.msk.f32.gmra.mxu1 %vm255_vm1, %v4070_v40 }
 0x6d4   :  { %3271 = vmatmul.msk.f32.gmra.mxu1 %vm255_vm1, %v4074_v42 }
 0x6dc   :  { %3272 = vmatmul.msk.f32.gmra.mxu1 %vm255_vm1, %v3999_v59 }
 0x6e4   :  { %3273 = vmatmul.msk.f32.gmra.mxu1 %vm255_vm1, %v4001_v62 }
 0x6ec   :  { %3274 = vmatmul.msk.f32.gmra.mxu1 %vm255_vm1, %v4010_v3 }
 0x6f4   :  { %3275 = vmatmul.msk.f32.gmra.mxu1 %vm255_vm1, %v4019_v24 }
 0x722   :  { %v1271_v35 = vpop.xlane.xlu2 %1270 }
 0x723   :  { %3577 = vrcp.f32 %v1271_v35 }
 0x729   :  { %v3578_v38 = vpop.eup %3577 }
 0x72a   :  { %v1281_v51 = vmul.f32 %v3578_v38, %v3568_v32  ;;  %v1274_v40 = vpop.xlane.xlu0 %1273  ;;  %v1004_v52 = vpop.xlane.xlu2 %1003 }
 0x72b   :  { %3579 = vrcp.f32 %v1274_v40  ;;  %v1016_v42 = vsub.f32 %v4215_v48, %v1004_v52 }
 0x72c   :  { %3257 = vmatmul.msk.f32.vlgmr.msra.gmra.mxu3 %vm603_vm3, %v1281_v51 }
 0x72d   :  { %v1029_v59 = vmul.f32 1.442695, %v1016_v42 }
 0x72f   :  { %3581 = vpow2.f32 %v1029_v59 }
 0x731   :  { %v3580_v62 = vpop.eup %3579  ;;  %v1309_v21 = vpop.f32.mrf.mxu1 }
 0x732   :  { %v1007_v53 = vpop.xlane.xlu0 %1006  ;;  %v1049_v54 = vpop.xlane.xlu2 %1048  ;;  %v1282_v3 = vmul.f32 %v3580_v62, %v3572_v5  ;;  %v3284_v5 = vld [vmem:[%s5052_s1 + $0x40] sm:$0xff] }
 0x733   :  { %v1017_v55 = vsub.f32 %v4217_v49, %v1007_v53  ;;  %3583 = vrcp.f32 %v1049_v54  ;;  %v3303_v49 = vld [vmem:[%s5049_s2 + $0x58] sm:$0xff] }
 0x734   :  { %3258 = vmatmul.msk.f32.gmra.mxu3 %vm603_vm3, %v1282_v3 }
 0x735   :  { %v3582_v24 = vpop.eup %3581  ;;  %v1031_v56 = vmul.f32 1.442695, %v1017_v55  ;;  %1630 = vmatpush.msra.mxu3 %v3303_v49 }
 0x736   :  { %v1050_v57 = vsel %vm350_vm2, %v3582_v24, 0.0 }
 0x737   :  { %3585 = vpow2.f32 %v1031_v56  ;;  %1051 = vadd.xlane.f32.xlu0 %v1050_v57  ;;  %1631 = vmatpush.msra.mxu3 %v3302_v27 }
 0x739   :  { %v3584_v48 = vpop.eup %3583 }
 0x73a   :  { %v1071_v58 = vmul.f32 %v3584_v48, %v3574_v43  ;;  %v1058_v9 = vpop.xlane.xlu2 %1057 }
 0x73c   :  { %3235 = vmatmul.msk.f32.vlgmr.msrb.gmra.mxu2 %vm350_vm2, %v1071_v58  ;;  %3280 = vmatmul.msk.f32.vlgmr.msrb.gmra.mxu3 %vm255_vm1, %v4078_v46  ;;  %v3301_v46 = vld [vmem:[%s5049_s2 + $0x48] sm:$0xff] }
 0x73d   :  { %v3586_v60 = vpop.eup %3585  ;;  %1632 = vmatpush.msra.mxu3 %v3301_v46  ;;  %1572 = vmatpush.msrb.mxu2 %v3287_v4 }
 0x73e   :  { %v1053_v61 = vsel %vm350_vm2, %v3586_v60, 0.0 }
 0x73f   :  { %1054 = vadd.xlane.f32.xlu1 %v1053_v61  ;;  %1573 = vmatpush.msrb.mxu2 %v3286_v20 }
 0x741   :  { %1574 = vmatpush.msrb.mxu2 %v3285_v33 }
 0x743   :  { %1575 = vmatpush.msrb.mxu2 %v3284_v5 }
 0x744   :  { %3281 = vmatmul.msk.f32.gmra.mxu3 %vm255_vm1, %v4083_v44  ;;  %v3300_v44 = vld [vmem:[%s5049_s2 + $0x40] sm:$0xff] }
 0x745   :  { %1633 = vmatpush.msra.mxu3 %v3300_v44 }
 0x74c   :  { %3282 = vmatmul.msk.f32.gmra.mxu3 %vm255_vm1, %v4137_v29  ;;  %v4297_v29 = vld [vmem:[%s5051_s0] sm:$0xff] }
 0x754   :  { %3283 = vmatmul.msk.f32.gmra.mxu3 %vm255_vm1, %v4141_v30  ;;  %v4304_v30 = vld [vmem:[%s5051_s0 + $0x8] sm:$0xff] }
 0x75c   :  { %3304 = vmatmul.msk.f32.vlgmr.msra.gmra.mxu3 %vm39_vm0, %v4297_v29 }
 0x764   :  { %3305 = vmatmul.msk.f32.gmra.mxu3 %vm39_vm0, %v4304_v30 }
 0x76c   :  { %3306 = vmatmul.msk.f32.gmra.mxu3 %vm39_vm0, %v4311_v0 }
 0x774   :  { %3307 = vmatmul.msk.f32.gmra.mxu3 %vm39_vm0, %v4318_v1 }
 0x77c   :  { %3308 = vmatmul.msk.f32.gmra.mxu3 %vm39_vm0, %v4325_v63 }
 0x784   :  { %3309 = vmatmul.msk.f32.gmra.mxu3 %vm39_vm0, %v4332_v2 }
 0x78c   :  { %3310 = vmatmul.msk.f32.gmra.mxu3 %vm39_vm0, %v4339_v6 }
 0x794   :  { %3311 = vmatmul.msk.f32.gmra.mxu3 %vm39_vm0, %v4346_v8 }
 0x79c   :  { %3312 = vmatmul.msk.f32.gmra.mxu3 %vm39_vm0, %v4353_v10 }
 0x7a4   :  { %3313 = vmatmul.msk.f32.gmra.mxu3 %vm39_vm0, %v4360_v11 }
 0x7aa   :  { %v1052_v14 = vpop.xlane.xlu0 %1051 }
 0x7ab   :  { %3587 = vrcp.f32 %v1052_v14 }
 0x7ac   :  { %3314 = vmatmul.msk.f32.gmra.mxu3 %vm39_vm0, %v4367_v15 }
 0x7af   :  { %v1335_v25 = vpop.f32.mrf.mxu3 }
 0x7b1   :  { %v3588_v26 = vpop.eup %3587 }
 0x7b2   :  { %v1055_v28 = vpop.xlane.xlu1 %1054  ;;  %v1072_v7 = vmul.f32 %v3588_v26, %v3582_v24 }
 0x7b3   :  { %3589 = vrcp.f32 %v1055_v28  ;;  %v4464_v28 = vpop.f32.mrf.mxu1 }
 0x7b4   :  { %3236 = vmatmul.msk.f32.gmra.mxu2 %vm350_vm2, %v1072_v7  ;;  %3315 = vmatmul.msk.f32.gmra.mxu3 %vm39_vm0, %v4375_v12  ;;  %3591 = vrcp.f32 %v1058_v9 }
 0x7b7   :  { %v1338_v16 = vpop.f32.mrf.mxu3 }
 0x7b9   :  { %v3590_v13 = vpop.eup %3589 }
 0x7ba   :  { %v1073_v31 = vmul.f32 %v3590_v13, %v3586_v60  ;;  %v3592_v17 = vpop.eup %3591 }
 0x7bb   :  { %v1074_v19 = vmul.f32 %v3592_v17, %v4251_v47 }
 0x7bc   :  { %3237 = vmatmul.msk.f32.gmra.mxu2 %vm350_vm2, %v1073_v31 }
 0x7bf   :  { %v1145_v32 = vpop.f32.mrf.mxu2  ;;  %v4380_v18 = vpop.f32.mrf.mxu3 }
 0x7c0   :  { %3264 = vmatmul.msk.f32.gmra.mxu0 %vm255_vm1, %v1145_v32 }
 0x7c4   :  { %3238 = vmatmul.msk.f32.gmra.mxu2 %vm350_vm2, %v1074_v19 }
 0x7c7   :  { %v4394_v36 = vpop.f32.mrf.mxu3 }
 0x7cc   :  { %3276 = vmatmul.msk.f32.vlgmr.msra.gmra.mxu2 %vm255_vm1, %v1306_v39 }
 0x7cf   :  { %v4400_v22 = vpop.f32.mrf.mxu3 }
 0x7d4   :  { %3277 = vmatmul.msk.f32.gmra.mxu2 %vm255_vm1, %v1309_v21 }
 0x7d7   :  { %v4403_v23 = vpop.f32.mrf.mxu3 }
 0x7dc   :  { %3278 = vmatmul.msk.f32.gmra.mxu2 %vm255_vm1, %v1335_v25 }
 0x7df   :  { %v1635_v41 = vpop.f32.mrf.mxu3 }
 0x7e4   :  { %3279 = vmatmul.msk.f32.gmra.mxu2 %vm255_vm1, %v1338_v16  ;;  %v4468_v16 = vpop.f32.mrf.mxu1 }
 0x7e7   :  { %v1638_v43 = vpop.f32.mrf.mxu3 }
 0x7ec   :  { %3288 = vmatmul.msk.f32.vlgmr.msrb.gmra.mxu2 %vm39_vm0, %v4297_v29  ;;  %v4471_v17 = vpop.f32.mrf.mxu1 }
 0x7ef   :  { %v1641_v37 = vpop.f32.mrf.mxu3 }
 0x7f4   :  { %3289 = vmatmul.msk.f32.gmra.mxu2 %vm39_vm0, %v4304_v30  ;;  %v4474_v4 = vpop.f32.mrf.mxu1 }
 0x7f7   :  { %v1644_v34 = vpop.f32.mrf.mxu3 }
 0x7fc   :  { %3290 = vmatmul.msk.f32.gmra.mxu2 %vm39_vm0, %v4311_v0  ;;  %v4477_v21 = vpop.f32.mrf.mxu1 }
 0x7ff   :  { %v1647_v45 = vpop.f32.mrf.mxu3 }
 0x804   :  { %3291 = vmatmul.msk.f32.gmra.mxu2 %vm39_vm0, %v4318_v1 }
 0x807   :  { %v1650_v47 = vpop.f32.mrf.mxu3 }
 0x808   :  { %3352 = vmatpush.xpose.msk.msrb.mxu3 %vm255_vm1, %v1650_v47  ;;  %3332 = vmatpush.xpose.msk.msrb.mxu1 %vm255_vm1, %v1650_v47 }
 0x80c   :  { %3292 = vmatmul.msk.f32.gmra.mxu2 %vm39_vm0, %v4325_v63  ;;  %3353 = vmatpush.xpose.msk.msrb.mxu3 %vm255_vm1, %v1647_v45 }
 0x80d   :  { %3333 = vmatpush.xpose.msk.msrb.mxu1 %vm255_vm1, %v1647_v45 }
 0x80f   :  { %v1653_v50 = vpop.f32.mrf.mxu3 }
 0x810   :  { %3354 = vmatpush.xpose.msk.msrb.mxu3 %vm255_vm1, %v1644_v34 }
 0x814   :  { %3293 = vmatmul.msk.f32.gmra.mxu2 %vm39_vm0, %v4332_v2  ;;  %3355 = vmatpush.xpose.msk.msrb.mxu3 %vm255_vm1, %v1641_v37 }
 0x817   :  { %v1656_v35 = vpop.f32.mrf.mxu3 }
 0x818   :  { %3356 = vmatpush.xpose.msk.msrb.mxu3 %vm255_vm1, %v1638_v43 }
 0x81c   :  { %3294 = vmatmul.msk.f32.gmra.mxu2 %vm39_vm0, %v4339_v6  ;;  %3357 = vmatpush.xpose.msk.msrb.mxu3 %vm255_vm1, %v1635_v41  ;;  %v4480_v41 = vpop.f32.mrf.mxu1 }
 0x81f   :  { %v1659_v51 = vpop.f32.mrf.mxu3 }
 0x824   :  { %3295 = vmatmul.msk.f32.gmra.mxu2 %vm39_vm0, %v4346_v8  ;;  %v4482_v43 = vpop.f32.mrf.mxu1 }
 0x827   :  { %v1662_v52 = vpop.f32.mrf.mxu3 }
 0x82c   :  { %3296 = vmatmul.msk.f32.gmra.mxu2 %vm39_vm0, %v4353_v10  ;;  %v4484_v37 = vpop.f32.mrf.mxu1 }
 0x82f   :  { %v1665_v59 = vpop.f32.mrf.mxu3 }
 0x834   :  { %3297 = vmatmul.msk.f32.gmra.mxu2 %vm39_vm0, %v4360_v11 }
 0x837   :  { %v1148_v38 = vpop.f32.mrf.mxu2  ;;  %v1668_v53 = vpop.f32.mrf.mxu3 }
 0x838   :  { %3265 = vmatmul.msk.f32.gmra.mxu0 %vm255_vm1, %v1148_v38  ;;  %3360 = vmatpush.xpose.msk.msra.mxu3 %vm255_vm1, %v1668_v53  ;;  %v3319_v38 = vld [vmem:[%s5050_s3 + $0x58] sm:$0xff] }
 0x839   :  { %3338 = vmatpush.xpose.msk.msra.mxu1 %vm255_vm1, %v1668_v53  ;;  %1688 = vmatpush.msra.mxu0 %v3319_v38 }
 0x83c   :  { %3298 = vmatmul.msk.f32.gmra.mxu2 %vm39_vm0, %v4367_v15  ;;  %3361 = vmatpush.xpose.msk.msra.mxu3 %vm255_vm1, %v1665_v59 }
 0x83d   :  { %3339 = vmatpush.xpose.msk.msra.mxu1 %vm255_vm1, %v1665_v59  ;;  %v3316_v59 = vld [vmem:[%s5050_s3 + $0x40] sm:$0xff] }
 0x83f   :  { %v1151_v40 = vpop.f32.mrf.mxu2 }
 0x840   :  { %3266 = vmatmul.msk.f32.gmra.mxu0 %vm255_vm1, %v1151_v40  ;;  %3362 = vmatpush.xpose.msk.msra.mxu3 %vm255_vm1, %v1662_v52 }
 0x844   :  { %3299 = vmatmul.msk.f32.gmra.mxu2 %vm39_vm0, %v4375_v12  ;;  %3363 = vmatpush.xpose.msk.msra.mxu3 %vm255_vm1, %v1659_v51  ;;  %v3318_v51 = vld [vmem:[%s5050_s3 + $0x50] sm:$0xff] }
 0x845   :  { %1689 = vmatpush.msra.mxu0 %v3318_v51 }
 0x847   :  { %v1154_v42 = vpop.f32.mrf.mxu2 }
 0x848   :  { %3267 = vmatmul.msk.f32.gmra.mxu0 %vm255_vm1, %v1154_v42  ;;  %3364 = vmatpush.xpose.msk.msra.mxu3 %vm255_vm1, %v1656_v35  ;;  %v3317_v42 = vld [vmem:[%s5050_s3 + $0x48] sm:$0xff] }
 0x849   :  { %1690 = vmatpush.msra.mxu0 %v3317_v42 }
 0x84b   :  { %1691 = vmatpush.msra.mxu0 %v3316_v59 }
 0x84c   :  { %3365 = vmatpush.xpose.msk.msra.mxu3 %vm255_vm1, %v1653_v50 }
 0x84f   :  { %v4442_v62 = vpop.f32.mrf.mxu2 }
 0x850   :  { %3320 = vmatmul.msk.f32.vlgmr.msra.gmra.mxu0 %vm39_vm0, %v4297_v29 }
 0x857   :  { %v4448_v54 = vpop.f32.mrf.mxu2 }
 0x858   :  { %3321 = vmatmul.msk.f32.gmra.mxu0 %vm39_vm0, %v4304_v30 }
 0x85f   :  { %v4452_v3 = vpop.f32.mrf.mxu2 }
 0x860   :  { %3322 = vmatmul.msk.f32.gmra.mxu0 %vm39_vm0, %v4311_v0 }
 0x867   :  { %v4456_v55 = vpop.f32.mrf.mxu2 }
 0x868   :  { %3323 = vmatmul.msk.f32.gmra.mxu0 %vm39_vm0, %v4318_v1 }
 0x86f   :  { %v1577_v24 = vpop.f32.mrf.mxu2 }
 0x870   :  { %v1729_v56 = vmul.f32 0.35355338, %v1577_v24  ;;  %3324 = vmatmul.msk.f32.gmra.mxu0 %vm39_vm0, %v4325_v63 }
 0x872   :  { %3334 = vmatmul.msk.f32.vlgmr.msrb.gmra.mxu1 %vm255_vm1, %v1729_v56 }
 0x877   :  { %v1580_v57 = vpop.f32.mrf.mxu2 }
 0x878   :  { %v1730_v48 = vmul.f32 0.35355338, %v1580_v57  ;;  %3325 = vmatmul.msk.f32.gmra.mxu0 %vm39_vm0, %v4332_v2 }
 0x87a   :  { %3335 = vmatmul.msk.f32.gmra.mxu1 %vm255_vm1, %v1730_v48 }
 0x87f   :  { %v1583_v58 = vpop.f32.mrf.mxu2 }
 0x880   :  { %v1731_v60 = vmul.f32 0.35355338, %v1583_v58  ;;  %3326 = vmatmul.msk.f32.gmra.mxu0 %vm39_vm0, %v4339_v6 }
 0x882   :  { %3336 = vmatmul.msk.f32.gmra.mxu1 %vm255_vm1, %v1731_v60 }
 0x887   :  { %v1586_v61 = vpop.f32.mrf.mxu2 }
 0x888   :  { %v1732_v49 = vmul.f32 0.35355338, %v1586_v61  ;;  %3327 = vmatmul.msk.f32.gmra.mxu0 %vm39_vm0, %v4346_v8 }
 0x88a   :  { %3337 = vmatmul.msk.f32.gmra.mxu1 %vm255_vm1, %v1732_v49  ;;  %v4536_v49 = vpop.f32.mrf.mxu0 }
 0x88f   :  { %v1589_v27 = vpop.f32.mrf.mxu2 }
 0x890   :  { %v1733_v46 = vmul.f32 0.35355338, %v1589_v27  ;;  %3328 = vmatmul.msk.f32.gmra.mxu0 %vm39_vm0, %v4353_v10 }
 0x892   :  { %3358 = vmatmul.msk.f32.vlgmr.msrb.gmra.mxu3 %vm255_vm1, %v1733_v46 }
 0x897   :  { %v1592_v44 = vpop.f32.mrf.mxu2 }
 0x898   :  { %v1734_v14 = vmul.f32 0.35355338, %v1592_v44  ;;  %3329 = vmatmul.msk.f32.gmra.mxu0 %vm39_vm0, %v4360_v11  ;;  %v4544_v44 = vpop.f32.mrf.mxu0 }
 0x89a   :  { %3359 = vmatmul.msk.f32.gmra.mxu3 %vm255_vm1, %v1734_v14 }
 0x89f   :  { %v1595_v25 = vpop.f32.mrf.mxu2 }
 0x8a0   :  { %v1735_v26 = vmul.f32 0.35355338, %v1595_v25  ;;  %3330 = vmatmul.msk.f32.gmra.mxu0 %vm39_vm0, %v4367_v15 }
 0x8a2   :  { %3340 = vmatmul.msk.f32.vlgmr.msra.gmra.mxu1 %vm255_vm1, %v1735_v26 }
 0x8a7   :  { %v1598_v7 = vpop.f32.mrf.mxu2 }
 0x8a8   :  { %v1736_v9 = vmul.f32 0.35355338, %v1598_v7  ;;  %3331 = vmatmul.msk.f32.gmra.mxu0 %vm39_vm0, %v4375_v12 }
 0x8aa   :  { %3341 = vmatmul.msk.f32.gmra.mxu1 %vm255_vm1, %v1736_v9  ;;  %v4548_v9 = vpop.f32.mrf.mxu0 }
 0x8af   :  { %v1601_v13 = vpop.f32.mrf.mxu2 }
 0x8b0   :  { %v1737_v31 = vmul.f32 0.35355338, %v1601_v13 }
 0x8b2   :  { %3342 = vmatmul.msk.f32.gmra.mxu1 %vm255_vm1, %v1737_v31 }
 0x8b7   :  { %v1604_v32 = vpop.f32.mrf.mxu2 }
 0x8b8   :  { %v1738_v19 = vmul.f32 0.35355338, %v1604_v32 }
 0x8ba   :  { %3343 = vmatmul.msk.f32.gmra.mxu1 %vm255_vm1, %v1738_v19 }
 0x8bf   :  { %v1607_v20 = vpop.f32.mrf.mxu2 }
 0x8c0   :  { %v1739_v33 = vmul.f32 0.35355338, %v1607_v20 }
 0x8c2   :  { %3366 = vmatmul.msk.f32.vlgmr.msra.gmra.mxu3 %vm255_vm1, %v1739_v33 }
 0x8c7   :  { %v1610_v5 = vpop.f32.mrf.mxu2 }
 0x8c8   :  { %v1740_v39 = vmul.f32 0.35355338, %v1610_v5 }
 0x8ca   :  { %3367 = vmatmul.msk.f32.gmra.mxu3 %vm255_vm1, %v1740_v39  ;;  %v4556_v39 = vpop.f32.mrf.mxu0 }
 0x8d2   :  { %v4562_v51 = vpop.f32.mrf.mxu0 }
 0x8ef   :  { %v1776_v34 = vpop.f32.mrf.mxu1 }
 0x8f0   :  { %v1835_v45 = vsel %vm350_vm2, %v1776_v34, -inf }
 0x8f1   :  { %1836 = vmax.xlane.f32.xlu0 %v1835_v45 }
 0x8f7   :  { %v1779_v47 = vpop.f32.mrf.mxu1 }
 0x8f8   :  { %v1838_v50 = vsel %vm350_vm2, %v1779_v47, -inf }
 0x8f9   :  { %1839 = vmax.xlane.f32.xlu1 %v1838_v50 }
 0x8ff   :  { %v1782_v35 = vpop.f32.mrf.mxu1 }
 0x900   :  { %v1841_v40 = vsel %vm350_vm2, %v1782_v35, -inf }
 0x901   :  { %1842 = vmax.xlane.f32.xlu2 %v1841_v40 }
 0x907   :  { %v1785_v52 = vpop.f32.mrf.mxu1 }
 0x908   :  { %v1844_v53 = vsel %vm350_vm2, %v1785_v52, -inf }
 0x909   :  { %1845 = vmax.xlane.f32.xlu0 %v1844_v53 }
 0x915   :  { %v4512_v24 = vpop.f32.mrf.mxu3 }
 0x916   :  { %v2087_v61 = vsel %vm603_vm3, %v4512_v24, -inf }
 0x91d   :  { %v4518_v56 = vpop.f32.mrf.mxu3 }
 0x91e   :  { %v2090_v42 = vsel %vm603_vm3, %v4518_v56, -inf }
 0x91f   :  { %v4538_v27 = vpop.f32.mrf.mxu1 }
 0x920   :  { %v1847_v46 = vsel %vm350_vm2, %v4538_v27, -inf }
 0x927   :  { %v4568_v59 = vpop.f32.mrf.mxu1 }
 0x945   :  { %v4522_v57 = vpop.f32.mrf.mxu3 }
 0x946   :  { %v2093_v48 = vsel %vm603_vm3, %v4522_v57, -inf }
 0x947   :  { %2094 = vmax.xlane.f32.xlu1 %v2093_v48  ;;  %v4572_v48 = vpop.f32.mrf.mxu0 }
 0x94d   :  { %v4528_v58 = vpop.f32.mrf.mxu3 }
 0x94e   :  { %v2096_v60 = vsel %vm603_vm3, %v4528_v58, -inf }
 0x94f   :  { %2097 = vmax.xlane.f32.xlu2 %v2096_v60  ;;  %v1850_v60 = vsel %vm350_vm2, %v4568_v59, -inf }
 0x957   :  { %2088 = vmax.xlane.f32.xlu2 %v2087_v61  ;;  %v4578_v61 = vpop.f32.mrf.mxu1 }
 0x95f   :  { %1848 = vmax.xlane.f32.xlu2 %v1847_v46  ;;  %v1853_v46 = vsel %vm350_vm2, %v4578_v61, -inf }
 0x964   :  { %v1837_v14 = vpop.xlane.xlu0 %1836 }
 0x965   :  { %v1859_v25 = vsub.f32 %v1776_v34, %v1837_v14  ;;  %v4582_v14 = vpop.f32.mrf.mxu0 }
 0x967   :  { %v1867_v26 = vmul.f32 1.442695, %v1859_v25 }
 0x969   :  { %3593 = vpow2.f32 %v1867_v26 }
 0x96c   :  { %v1840_v7 = vpop.xlane.xlu1 %1839 }
 0x96d   :  { %v1860_v13 = vsub.f32 %v1779_v47, %v1840_v7  ;;  %v4584_v25 = vpop.f32.mrf.mxu0 }
 0x96f   :  { %v4550_v31 = vpop.eup %3593  ;;  %v1869_v32 = vmul.f32 1.442695, %v1860_v13 }
 0x970   :  { %v1883_v19 = vsel %vm350_vm2, %v4550_v31, 0.0 }
 0x971   :  { %3595 = vpow2.f32 %v1869_v32  ;;  %1884 = vadd.xlane.f32.xlu0 %v1883_v19 }
 0x974   :  { %v1843_v20 = vpop.xlane.xlu2 %1842 }
 0x975   :  { %v1861_v33 = vsub.f32 %v1782_v35, %v1843_v20  ;;  %v1693_v26 = vpop.f32.mrf.mxu0 }
 0x977   :  { %v4554_v5 = vpop.eup %3595  ;;  %v1871_v34 = vmul.f32 1.442695, %v1861_v33 }
 0x978   :  { %v1886_v45 = vsel %vm350_vm2, %v4554_v5, 0.0 }
 0x979   :  { %3597 = vpow2.f32 %v1871_v34  ;;  %1887 = vadd.xlane.f32.xlu1 %v1886_v45 }
 0x97c   :  { %v1846_v47 = vpop.xlane.xlu0 %1845 }
 0x97d   :  { %v1862_v50 = vsub.f32 %v1785_v52, %v1846_v47  ;;  %v1696_v7 = vpop.f32.mrf.mxu0 }
 0x97f   :  { %v4560_v38 = vpop.eup %3597  ;;  %v1873_v40 = vmul.f32 1.442695, %v1862_v50 }
 0x980   :  { %v1889_v35 = vsel %vm350_vm2, %v4560_v38, 0.0 }
 0x981   :  { %3599 = vpow2.f32 %v1873_v40  ;;  %1890 = vadd.xlane.f32.xlu0 %v1889_v35  ;;  %2091 = vmax.xlane.f32.xlu1 %v2090_v42 }
 0x985   :  { %v1699_v13 = vpop.f32.mrf.mxu0 }
 0x987   :  { %v4570_v53 = vpop.eup %3599 }
 0x988   :  { %v1892_v52 = vsel %vm350_vm2, %v4570_v53, 0.0 }
 0x989   :  { %1893 = vadd.xlane.f32.xlu0 %v1892_v52  ;;  %1851 = vmax.xlane.f32.xlu1 %v1850_v60  ;;  %v4592_v52 = vpop.f32.mrf.mxu1 }
 0x98d   :  { %v1702_v20 = vpop.f32.mrf.mxu0 }
 0x991   :  { %1854 = vmax.xlane.f32.xlu0 %v1853_v46 }
 0x995   :  { %v1705_v47 = vpop.f32.mrf.mxu0 }
 0x99d   :  { %v1708_v60 = vpop.f32.mrf.mxu0 }
 0x99e   :  { %1949 = vmatpush.msrb.mxu1 %v1708_v60  ;;  %2147 = vmatpush.msrb.mxu0 %v1708_v60 }
 0x9a0   :  { %1950 = vmatpush.msrb.mxu1 %v1705_v47  ;;  %2148 = vmatpush.msrb.mxu0 %v1705_v47 }
 0x9a2   :  { %2149 = vmatpush.msrb.mxu0 %v1702_v20 }
 0x9a4   :  { %2150 = vmatpush.msrb.mxu0 %v1699_v13 }
 0x9a5   :  { %v1711_v13 = vpop.f32.mrf.mxu0 }
 0x9a6   :  { %2151 = vmatpush.msrb.mxu0 %v1696_v7 }
 0x9a8   :  { %2152 = vmatpush.msrb.mxu0 %v1693_v26 }
 0x9ba   :  { %v2095_v32 = vpop.xlane.xlu1 %2094 }
 0x9bb   :  { %v2101_v19 = vsub.f32 %v4522_v57, %v2095_v32  ;;  %v1856_v32 = vsel %vm350_vm2, %v4592_v52, -inf }
 0x9bd   :  { %v2107_v33 = vmul.f32 1.442695, %v2101_v19 }
 0x9bf   :  { %3601 = vpow2.f32 %v2107_v33 }
 0x9c2   :  { %v2098_v34 = vpop.xlane.xlu2 %2097 }
 0x9c3   :  { %v2102_v45 = vsub.f32 %v4528_v58, %v2098_v34 }
 0x9c5   :  { %v4588_v50 = vpop.eup %3601  ;;  %v2109_v40 = vmul.f32 1.442695, %v2102_v45 }
 0x9c6   :  { %v2117_v35 = vsel %vm603_vm3, %v4588_v50, 0.0 }
 0x9c7   :  { %3603 = vpow2.f32 %v2109_v40  ;;  %2118 = vadd.xlane.f32.xlu2 %v2117_v35 }
 0x9ca   :  { %v2089_v42 = vpop.xlane.xlu2 %2088 }
 0x9cb   :  { %v2099_v57 = vsub.f32 %v4512_v24, %v2089_v42 }
 0x9cd   :  { %v4595_v46 = vpop.eup %3603  ;;  %v2103_v58 = vmul.f32 1.442695, %v2099_v57  ;;  %v1714_v57 = vpop.f32.mrf.mxu0 }
 0x9ce   :  { %v2120_v19 = vsel %vm603_vm3, %v4595_v46, 0.0 }
 0x9cf   :  { %3605 = vpow2.f32 %v2103_v58  ;;  %1857 = vmax.xlane.f32.xlu2 %v1856_v32  ;;  %2121 = vadd.xlane.f32.xlu1 %v2120_v19 }
 0x9d2   :  { %v1849_v33 = vpop.xlane.xlu2 %1848 }
 0x9d3   :  { %v1863_v24 = vsub.f32 %v4538_v27, %v1849_v33 }
 0x9d5   :  { %v4602_v34 = vpop.eup %3605  ;;  %v1875_v45 = vmul.f32 1.442695, %v1863_v24  ;;  %v1717_v24 = vpop.f32.mrf.mxu0 }
 0x9d6   :  { %v2111_v40 = vsel %vm603_vm3, %v4602_v34, 0.0 }
 0x9d7   :  { %3607 = vpow2.f32 %v1875_v45  ;;  %2112 = vadd.xlane.f32.xlu0 %v2111_v40 }
 0x9dd   :  { %v4606_v35 = vpop.eup %3607 }
 0x9de   :  { %v1895_v47 = vsel %vm350_vm2, %v4606_v35, 0.0 }
 0x9df   :  { %1896 = vadd.xlane.f32.xlu2 %v1895_v47 }
 0x9e4   :  { %v1885_v20 = vpop.xlane.xlu0 %1884 }
 0x9e5   :  { %3609 = vrcp.f32 %v1885_v20 }
 0x9eb   :  { %v3610_v27 = vpop.eup %3609 }
 0x9ec   :  { %v1915_v7 = vmul.f32 %v3610_v27, %v4550_v31  ;;  %v1888_v42 = vpop.xlane.xlu1 %1887 }
 0x9ed   :  { %3611 = vrcp.f32 %v1888_v42 }
 0x9ee   :  { %3344 = vmatmul.msk.f32.vlgmr.msrb.gmra.mxu1 %vm350_vm2, %v1915_v7  ;;  %v1720_v7 = vpop.f32.mrf.mxu0 }
 0x9f3   :  { %v3612_v26 = vpop.eup %3611 }
 0x9f4   :  { %v1891_v60 = vpop.xlane.xlu0 %1890  ;;  %v2092_v58 = vpop.xlane.xlu1 %2091  ;;  %v1916_v32 = vmul.f32 %v3612_v26, %v4554_v5 }
 0x9f5   :  { %3613 = vrcp.f32 %v1891_v60  ;;  %v2100_v19 = vsub.f32 %v4518_v56, %v2092_v58 }
 0x9f6   :  { %3345 = vmatmul.msk.f32.gmra.mxu1 %vm350_vm2, %v1916_v32 }
 0x9f7   :  { %v2105_v33 = vmul.f32 1.442695, %v2100_v19  ;;  %v1723_v19 = vpop.f32.mrf.mxu0 }
 0x9f9   :  { %3615 = vpow2.f32 %v2105_v33 }
 0x9fb   :  { %v3614_v45 = vpop.eup %3613 }
 0x9fc   :  { %v1894_v31 = vpop.xlane.xlu0 %1893  ;;  %v1852_v40 = vpop.xlane.xlu1 %1851  ;;  %v1917_v47 = vmul.f32 %v3614_v45, %v4560_v38 }
 0x9fd   :  { %3617 = vrcp.f32 %v1894_v31  ;;  %v1864_v20 = vsub.f32 %v4568_v59, %v1852_v40  ;;  %v3403_v31 = vld [vmem:[%s5049_s2 + $0x70] sm:$0xff]  ;;  %v3402_v40 = vld [vmem:[%s5049_s2 + $0x68] sm:$0xff] }
 0x9fe   :  { %3346 = vmatmul.msk.f32.gmra.mxu1 %vm350_vm2, %v1917_v47 }
 0x9ff   :  { %v4618_v27 = vpop.eup %3615  ;;  %v1877_v5 = vmul.f32 1.442695, %v1864_v20 }
 0xa00   :  { %v2114_v56 = vsel %vm603_vm3, %v4618_v27, 0.0 }
 0xa01   :  { %3619 = vpow2.f32 %v1877_v5  ;;  %2115 = vadd.xlane.f32.xlu1 %v2114_v56 }
 0xa03   :  { %v3618_v42 = vpop.eup %3617 }
 0xa04   :  { %v1855_v26 = vpop.xlane.xlu0 %1854  ;;  %v1918_v60 = vmul.f32 %v3618_v42, %v4570_v53  ;;  %v1726_v53 = vpop.f32.mrf.mxu0 }
 0xa05   :  { %v1865_v38 = vsub.f32 %v4578_v61, %v1855_v26  ;;  %2176 = vmatpush.msra.mxu1 %v1726_v53  ;;  %1990 = vmatpush.msra.mxu2 %v1726_v53  ;;  %v3404_v61 = vld [vmem:[%s5049_s2 + $0x78] sm:$0xff] }
 0xa06   :  { %3347 = vmatmul.msk.f32.gmra.mxu1 %vm350_vm2, %v1918_v60 }
 0xa07   :  { %v4625_v59 = vpop.eup %3619  ;;  %v1879_v58 = vmul.f32 1.442695, %v1865_v38  ;;  %2177 = vmatpush.msra.mxu1 %v1723_v19  ;;  %1991 = vmatpush.msra.mxu2 %v1723_v19 }
 0xa08   :  { %v1898_v32 = vsel %vm350_vm2, %v4625_v59, 0.0 }
 0xa09   :  { %3621 = vpow2.f32 %v1879_v58  ;;  %1899 = vadd.xlane.f32.xlu0 %v1898_v32  ;;  %2178 = vmatpush.msra.mxu1 %v1720_v7 }
 0xa0b   :  { %2179 = vmatpush.msra.mxu1 %v1717_v24 }
 0xa0d   :  { %2180 = vmatpush.msra.mxu1 %v1714_v57 }
 0xa0f   :  { %v4629_v33 = vpop.eup %3621  ;;  %2181 = vmatpush.msra.mxu1 %v1711_v13  ;;  %v3401_v13 = vld [vmem:[%s5049_s2 + $0x60] sm:$0xff] }
 0xa10   :  { %v1901_v45 = vsel %vm350_vm2, %v4629_v33, 0.0 }
 0xa11   :  { %1902 = vadd.xlane.f32.xlu1 %v1901_v45  ;;  %2384 = vmatpush.msrb.mxu1 %v3404_v61 }
 0xa13   :  { %2385 = vmatpush.msrb.mxu1 %v3403_v31 }
 0xa15   :  { %2386 = vmatpush.msrb.mxu1 %v3402_v40 }
 0xa17   :  { %2387 = vmatpush.msrb.mxu1 %v3401_v13 }
 0xa3a   :  { %v2119_v47 = vpop.xlane.xlu2 %2118 }
 0xa3b   :  { %3623 = vrcp.f32 %v2119_v47 }
 0xa41   :  { %v3624_v57 = vpop.eup %3623 }
 0xa42   :  { %v2129_v24 = vmul.f32 %v3624_v57, %v4588_v50  ;;  %v2122_v20 = vpop.xlane.xlu1 %2121  ;;  %v1858_v5 = vpop.xlane.xlu2 %1857  ;;  %v3387_v57 = vld [vmem:[%s5052_s1 + $0x70] sm:$0xff] }
 0xa43   :  { %3625 = vrcp.f32 %v2122_v20  ;;  %v1866_v56 = vsub.f32 %v4592_v52, %v1858_v5  ;;  %v3385_v20 = vld [vmem:[%s5052_s1 + $0x60] sm:$0xff] }
 0xa44   :  { %3370 = vmatmul.msk.f32.vlgmr.msra.gmra.mxu1 %vm603_vm3, %v2129_v24 }
 0xa45   :  { %v1881_v7 = vmul.f32 1.442695, %v1866_v56  ;;  %v3372_v56 = vld [vmem:[%s5053_s4 + $0x10] sm:$0xff] }
 0xa46   :  { %2291 = vmatpush.msrb.mxu3 %v3372_v56  ;;  %2230 = vmatpush.msrb.mxu2 %v3372_v56 }
 0xa47   :  { %3627 = vpow2.f32 %v1881_v7 }
 0xa49   :  { %v3626_v42 = vpop.eup %3625 }
 0xa4a   :  { %v2113_v26 = vpop.xlane.xlu0 %2112  ;;  %v2130_v60 = vmul.f32 %v3626_v42, %v4595_v46 }
 0xa4b   :  { %3629 = vrcp.f32 %v2113_v26 }
 0xa4c   :  { %3371 = vmatmul.msk.f32.gmra.mxu1 %vm603_vm3, %v2130_v60 }
 0xa4d   :  { %v4650_v38 = vpop.eup %3627 }
 0xa4e   :  { %v1904_v50 = vsel %vm350_vm2, %v4650_v38, 0.0 }
 0xa4f   :  { %1905 = vadd.xlane.f32.xlu2 %v1904_v50 }
 0xa51   :  { %v3630_v58 = vpop.eup %3629 }
 0xa52   :  { %v2127_v52 = vmul.f32 %v3630_v58, %v4602_v34  ;;  %v1897_v32 = vpop.xlane.xlu2 %1896 }
 0xa53   :  { %3631 = vrcp.f32 %v1897_v32 }
 0xa54   :  { %3368 = vmatmul.msk.f32.vlgmr.msrb.gmra.mxu0 %vm603_vm3, %v2127_v52  ;;  %3405 = vmatmul.msk.f32.vlgmr.msrb.gmra.mxu1 %vm39_vm0, %v4297_v29 }
 0xa59   :  { %v3632_v46 = vpop.eup %3631 }
 0xa5a   :  { %v1919_v19 = vmul.f32 %v3632_v46, %v4606_v35 }
 0xa5c   :  { %3348 = vmatmul.msk.f32.vlgmr.msra.gmra.mxu2 %vm350_vm2, %v1919_v19  ;;  %3406 = vmatmul.msk.f32.gmra.mxu1 %vm39_vm0, %v4304_v30 }
 0xa64   :  { %3407 = vmatmul.msk.f32.gmra.mxu1 %vm39_vm0, %v4311_v0 }
 0xa6c   :  { %3408 = vmatmul.msk.f32.gmra.mxu1 %vm39_vm0, %v4318_v1 }
 0xa74   :  { %v2116_v34 = vpop.xlane.xlu1 %2115  ;;  %3409 = vmatmul.msk.f32.gmra.mxu1 %vm39_vm0, %v4325_v63 }
 0xa75   :  { %3633 = vrcp.f32 %v2116_v34  ;;  %v3420_v34 = vld [vmem:[%s5050_s3 + $0x78] sm:$0xff] }
 0xa76   :  { %2442 = vmatpush.msra.mxu3 %v3420_v34 }
 0xa7b   :  { %v3634_v45 = vpop.eup %3633 }
 0xa7c   :  { %v1900_v53 = vpop.xlane.xlu0 %1899  ;;  %3410 = vmatmul.msk.f32.gmra.mxu1 %vm39_vm0, %v4332_v2  ;;  %v2128_v35 = vmul.f32 %v3634_v45, %v4618_v27  ;;  %v1952_v27 = vpop.f32.mrf.mxu1  ;;  %v3419_v45 = vld [vmem:[%s5050_s3 + $0x70] sm:$0xff] }
 0xa7d   :  { %3635 = vrcp.f32 %v1900_v53  ;;  %2443 = vmatpush.msra.mxu3 %v3419_v45 }
 0xa7e   :  { %3369 = vmatmul.msk.f32.gmra.mxu0 %vm603_vm3, %v2128_v35  ;;  %v3418_v35 = vld [vmem:[%s5050_s3 + $0x68] sm:$0xff] }
 0xa7f   :  { %2444 = vmatpush.msra.mxu3 %v3418_v35 }
 0xa83   :  { %v3636_v61 = vpop.eup %3635 }
 0xa84   :  { %v1903_v31 = vpop.xlane.xlu1 %1902  ;;  %3411 = vmatmul.msk.f32.gmra.mxu1 %vm39_vm0, %v4339_v6  ;;  %v1920_v40 = vmul.f32 %v3636_v61, %v4625_v59  ;;  %v3388_v59 = vld [vmem:[%s5052_s1 + $0x78] sm:$0xff]  ;;  %v1955_v24 = vpop.f32.mrf.mxu1 }
 0xa85   :  { %3637 = vrcp.f32 %v1903_v31  ;;  %2326 = vmatpush.msra.mxu0 %v3388_v59  ;;  %v3417_v31 = vld [vmem:[%s5050_s3 + $0x60] sm:$0xff] }
 0xa86   :  { %3349 = vmatmul.msk.f32.gmra.mxu2 %vm350_vm2, %v1920_v40  ;;  %2445 = vmatpush.msra.mxu3 %v3417_v31 }
 0xa87   :  { %2327 = vmatpush.msra.mxu0 %v3387_v57 }
 0xa8b   :  { %v3638_v47 = vpop.eup %3637 }
 0xa8c   :  { %3412 = vmatmul.msk.f32.gmra.mxu1 %vm39_vm0, %v4346_v8  ;;  %v1921_v13 = vmul.f32 %v3638_v47, %v4629_v33  ;;  %v3386_v33 = vld [vmem:[%s5052_s1 + $0x68] sm:$0xff]  ;;  %v1958_v5 = vpop.f32.mrf.mxu1 }
 0xa8d   :  { %2328 = vmatpush.msra.mxu0 %v3386_v33 }
 0xa8e   :  { %3350 = vmatmul.msk.f32.gmra.mxu2 %vm350_vm2, %v1921_v13 }
 0xa8f   :  { %2329 = vmatpush.msra.mxu0 %v3385_v20 }
 0xa90   :  { %3389 = vmatmul.msk.f32.vlgmr.msra.gmra.mxu0 %vm39_vm0, %v4297_v29 }
 0xa94   :  { %3413 = vmatmul.msk.f32.gmra.mxu1 %vm39_vm0, %v4353_v10  ;;  %v1961_v7 = vpop.f32.mrf.mxu1 }
 0xa98   :  { %3390 = vmatmul.msk.f32.gmra.mxu0 %vm39_vm0, %v4304_v30 }
 0xa9c   :  { %3414 = vmatmul.msk.f32.gmra.mxu1 %vm39_vm0, %v4360_v11 }
 0xaa0   :  { %3391 = vmatmul.msk.f32.gmra.mxu0 %vm39_vm0, %v4311_v0 }
 0xaa4   :  { %3415 = vmatmul.msk.f32.gmra.mxu1 %vm39_vm0, %v4367_v15 }
 0xaa8   :  { %3392 = vmatmul.msk.f32.gmra.mxu0 %vm39_vm0, %v4318_v1 }
 0xaac   :  { %3416 = vmatmul.msk.f32.gmra.mxu1 %vm39_vm0, %v4375_v12 }
 0xab0   :  { %3393 = vmatmul.msk.f32.gmra.mxu0 %vm39_vm0, %v4325_v63 }
 0xab8   :  { %3394 = vmatmul.msk.f32.gmra.mxu0 %vm39_vm0, %v4332_v2 }
 0xac0   :  { %3395 = vmatmul.msk.f32.gmra.mxu0 %vm39_vm0, %v4339_v6 }
 0xac1   :  { %v2183_v42 = vpop.f32.mrf.mxu1 }
 0xac2   :  { %v1906_v26 = vpop.xlane.xlu2 %1905 }
 0xac3   :  { %3639 = vrcp.f32 %v1906_v26 }
 0xac8   :  { %3396 = vmatmul.msk.f32.gmra.mxu0 %vm39_vm0, %v4346_v8 }
 0xac9   :  { %v3640_v60 = vpop.eup %3639  ;;  %v2186_v50 = vpop.f32.mrf.mxu1 }
 0xaca   :  { %v1922_v58 = vmul.f32 %v3640_v60, %v4650_v38 }
 0xacc   :  { %3351 = vmatmul.msk.f32.gmra.mxu2 %vm350_vm2, %v1922_v58 }
 0xad0   :  { %3397 = vmatmul.msk.f32.gmra.mxu0 %vm39_vm0, %v4353_v10 }
 0xad1   :  { %v2154_v52 = vpop.f32.mrf.mxu0  ;;  %v4715_v32 = vpop.f32.mrf.mxu1 }
 0xad2   :  { %3381 = vmatmul.msk.f32.vlgmr.msrb.gmra.mxu3 %vm255_vm1, %v2154_v52 }
 0xad4   :  { %3373 = vmatmul.msk.f32.vlgmr.msrb.gmra.mxu2 %vm255_vm1, %v1952_v27 }
 0xad8   :  { %3398 = vmatmul.msk.f32.gmra.mxu0 %vm39_vm0, %v4360_v11 }
 0xad9   :  { %v4721_v46 = vpop.f32.mrf.mxu1 }
 0xadc   :  { %3374 = vmatmul.msk.f32.gmra.mxu2 %vm255_vm1, %v1955_v24 }
 0xadf   :  { %v1993_v61 = vpop.f32.mrf.mxu2 }
 0xae0   :  { %3399 = vmatmul.msk.f32.gmra.mxu0 %vm39_vm0, %v4367_v15 }
 0xae1   :  { %v4726_v38 = vpop.f32.mrf.mxu1 }
 0xae4   :  { %3375 = vmatmul.msk.f32.gmra.mxu2 %vm255_vm1, %v1958_v5 }
 0xae8   :  { %3400 = vmatmul.msk.f32.gmra.mxu0 %vm39_vm0, %v4375_v12 }
 0xae9   :  { %v4731_v19 = vpop.f32.mrf.mxu1 }
 0xaec   :  { %3376 = vmatmul.msk.f32.gmra.mxu2 %vm255_vm1, %v1961_v7 }
 0xaf1   :  { %v2401_v53 = vpop.f32.mrf.mxu1 }
 0xaf4   :  { %3377 = vmatmul.msk.f32.gmra.mxu2 %vm255_vm1, %v1993_v61 }
 0xaf9   :  { %v2404_v40 = vpop.f32.mrf.mxu1 }
 0xafa   :  { %3433 = vmatpush.xpose.msk.msra.mxu2 %vm255_vm1, %v2404_v40 }
 0xafb   :  { %v2157_v47 = vpop.f32.mrf.mxu0 }
 0xafc   :  { %3382 = vmatmul.msk.f32.gmra.mxu3 %vm255_vm1, %v2157_v47 }
 0xafe   :  { %3434 = vmatpush.xpose.msk.msra.mxu2 %vm255_vm1, %v2401_v53 }
 0xb01   :  { %v2407_v13 = vpop.f32.mrf.mxu1 }
 0xb04   :  { %3383 = vmatmul.msk.f32.gmra.mxu3 %vm255_vm1, %v2183_v42 }
 0xb09   :  { %v1996_v27 = vpop.f32.mrf.mxu2  ;;  %v2410_v59 = vpop.f32.mrf.mxu1 }
 0xb0a   :  { %3378 = vmatmul.msk.f32.gmra.mxu2 %vm255_vm1, %v1996_v27 }
 0xb0c   :  { %3384 = vmatmul.msk.f32.gmra.mxu3 %vm255_vm1, %v2186_v50 }
 0xb0d   :  { %v2331_v5 = vpop.f32.mrf.mxu0 }
 0xb0e   :  { %v2483_v42 = vmul.f32 0.35355338, %v2331_v5 }
 0xb11   :  { %v1999_v57 = vpop.f32.mrf.mxu2  ;;  %v2413_v33 = vpop.f32.mrf.mxu1 }
 0xb12   :  { %3379 = vmatmul.msk.f32.gmra.mxu2 %vm255_vm1, %v1999_v57 }
 0xb14   :  { %3421 = vmatmul.msk.f32.vlgmr.msra.gmra.mxu3 %vm39_vm0, %v4297_v29 }
 0xb15   :  { %v2334_v29 = vpop.f32.mrf.mxu0 }
 0xb19   :  { %v2416_v24 = vpop.f32.mrf.mxu1 }
 0xb1c   :  { %3422 = vmatmul.msk.f32.gmra.mxu3 %vm39_vm0, %v4304_v30 }
 0xb1d   :  { %v2337_v30 = vpop.f32.mrf.mxu0 }
 0xb21   :  { %v2419_v20 = vpop.f32.mrf.mxu1 }
 0xb24   :  { %3423 = vmatmul.msk.f32.gmra.mxu3 %vm39_vm0, %v4311_v0 }
 0xb25   :  { %v2340_v0 = vpop.f32.mrf.mxu0 }
 0xb29   :  { %v2422_v56 = vpop.f32.mrf.mxu1 }
 0xb2a   :  { %3461 = vmatpush.xpose.msk.msrb.mxu3 %vm255_vm1, %v2422_v56  ;;  %3439 = vmatpush.xpose.msk.msrb.mxu2 %vm255_vm1, %v2422_v56 }
 0xb2c   :  { %3424 = vmatmul.msk.f32.gmra.mxu3 %vm39_vm0, %v4318_v1 }
 0xb2d   :  { %v2343_v1 = vpop.f32.mrf.mxu0 }
 0xb2e   :  { %3462 = vmatpush.xpose.msk.msrb.mxu3 %vm255_vm1, %v2419_v20  ;;  %3440 = vmatpush.xpose.msk.msrb.mxu2 %vm255_vm1, %v2419_v20  ;;  %v2487_v61 = vmul.f32 0.35355338, %v2343_v1 }
 0xb32   :  { %3463 = vmatpush.xpose.msk.msrb.mxu3 %vm255_vm1, %v2416_v24 }
 0xb34   :  { %3425 = vmatmul.msk.f32.gmra.mxu3 %vm39_vm0, %v4325_v63 }
 0xb35   :  { %v2346_v7 = vpop.f32.mrf.mxu0 }
 0xb36   :  { %3464 = vmatpush.xpose.msk.msrb.mxu3 %vm255_vm1, %v2413_v33  ;;  %v2488_v47 = vmul.f32 0.35355338, %v2346_v7 }
 0xb3a   :  { %3465 = vmatpush.xpose.msk.msrb.mxu3 %vm255_vm1, %v2410_v59 }
 0xb3c   :  { %3426 = vmatmul.msk.f32.gmra.mxu3 %vm39_vm0, %v4332_v2  ;;  %v2484_v2 = vmul.f32 0.35355338, %v2334_v29 }
 0xb3d   :  { %v2349_v26 = vpop.f32.mrf.mxu0 }
 0xb3e   :  { %3466 = vmatpush.xpose.msk.msrb.mxu3 %vm255_vm1, %v2407_v13  ;;  %v2489_v60 = vmul.f32 0.35355338, %v2349_v26 }
 0xb44   :  { %3427 = vmatmul.msk.f32.gmra.mxu3 %vm39_vm0, %v4339_v6 }
 0xb45   :  { %v2352_v6 = vpop.f32.mrf.mxu0 }
 0xb4c   :  { %3428 = vmatmul.msk.f32.gmra.mxu3 %vm39_vm0, %v4346_v8  ;;  %v2485_v8 = vmul.f32 0.35355338, %v2337_v30 }
 0xb4f   :  { %v2002_v63 = vpop.f32.mrf.mxu2 }
 0xb50   :  { %3380 = vmatmul.msk.f32.gmra.mxu2 %vm255_vm1, %v2002_v63 }
 0xb54   :  { %3429 = vmatmul.msk.f32.gmra.mxu3 %vm39_vm0, %v4353_v10  ;;  %v2355_v10 = vpop.f32.mrf.mxu0 }
 0xb55   :  { %v4809_v50 = vpop.f32.mrf.mxu3 }
 0xb57   :  { %v4823_v35 = vpop.f32.mrf.mxu2 }
 0xb58   :  { %3435 = vmatmul.msk.f32.vlgmr.msra.gmra.mxu2 %vm255_vm1, %v2483_v42 }
 0xb59   :  { %3453 = vmatpush.xpose.msk.msra.mxu2 %vm255_vm1, %v2404_v40 }
 0xb5c   :  { %3430 = vmatmul.msk.f32.gmra.mxu3 %vm39_vm0, %v4360_v11  ;;  %v2486_v11 = vmul.f32 0.35355338, %v2340_v0 }
 0xb5d   :  { %3454 = vmatpush.xpose.msk.msra.mxu2 %vm255_vm1, %v2401_v53 }
 0xb5f   :  { %v4826_v40 = vpop.f32.mrf.mxu2 }
 0xb60   :  { %3436 = vmatmul.msk.f32.gmra.mxu2 %vm255_vm1, %v2484_v2 }
 0xb61   :  { %3455 = vmatpush.xpose.msk.msra.mxu2 %vm255_vm1, %v4731_v19  ;;  %v2491_v19 = vmul.f32 0.35355338, %v2355_v10 }
 0xb64   :  { %3431 = vmatmul.msk.f32.gmra.mxu3 %vm39_vm0, %v4367_v15  ;;  %v2358_v15 = vpop.f32.mrf.mxu0 }
 0xb65   :  { %3456 = vmatpush.xpose.msk.msra.mxu2 %vm255_vm1, %v4726_v38  ;;  %v2492_v45 = vmul.f32 0.35355338, %v2358_v15 }
 0xb67   :  { %v4829_v27 = vpop.f32.mrf.mxu2 }
 0xb68   :  { %3437 = vmatmul.msk.f32.gmra.mxu2 %vm255_vm1, %v2485_v8 }
 0xb69   :  { %3457 = vmatpush.xpose.msk.msra.mxu2 %vm255_vm1, %v4721_v46  ;;  %v2490_v46 = vmul.f32 0.35355338, %v2352_v6 }
 0xb6c   :  { %3432 = vmatmul.msk.f32.gmra.mxu3 %vm39_vm0, %v4375_v12  ;;  %v2361_v58 = vpop.f32.mrf.mxu0 }
 0xb6d   :  { %3458 = vmatpush.xpose.msk.msra.mxu2 %vm255_vm1, %v4715_v32  ;;  %v2493_v52 = vmul.f32 0.35355338, %v2361_v58 }
 0xb6f   :  { %v4831_v57 = vpop.f32.mrf.mxu2 }
 0xb70   :  { %3438 = vmatmul.msk.f32.gmra.mxu2 %vm255_vm1, %v2486_v11 }
 0xb74   :  { %3467 = vmatmul.msk.f32.vlgmr.msrb.gmra.mxu3 %vm255_vm1, %v2493_v52  ;;  %v2364_v12 = vpop.f32.mrf.mxu0 }
 0xb75   :  { %v2494_v32 = vmul.f32 0.35355338, %v2364_v12 }
 0xb77   :  { %v4833_v20 = vpop.f32.mrf.mxu2 }
 0xb78   :  { %3441 = vmatmul.msk.f32.vlgmr.msrb.gmra.mxu2 %vm255_vm1, %v2489_v60 }
 0xb7c   :  { %3468 = vmatmul.msk.f32.gmra.mxu3 %vm255_vm1, %v2494_v32 }
 0xb7f   :  { %v4813_v38 = vpop.f32.mrf.mxu3 }
 0xb80   :  { %3442 = vmatmul.msk.f32.gmra.mxu2 %vm255_vm1, %v2490_v46 }
 0xb87   :  { %v4817_v34 = vpop.f32.mrf.mxu3 }
 0xb88   :  { %3443 = vmatmul.msk.f32.gmra.mxu2 %vm255_vm1, %v2491_v19 }
 0xb8d   :  { %v4835_v56 = vpop.f32.mrf.mxu2 }
 0xb8f   :  { %v4820_v53 = vpop.f32.mrf.mxu3 }
 0xb90   :  { %3444 = vmatmul.msk.f32.gmra.mxu2 %vm255_vm1, %v2492_v45 }
 0xb95   :  { %v4837_v30 = vpop.f32.mrf.mxu2 }
 0xb97   :  { %v2447_v31 = vpop.f32.mrf.mxu3 }
 0xb98   :  { %3459 = vmatmul.msk.f32.vlgmr.msra.gmra.mxu2 %vm255_vm1, %v2487_v61 }
 0xb9f   :  { %v2450_v13 = vpop.f32.mrf.mxu3 }
 0xba0   :  { %3460 = vmatmul.msk.f32.gmra.mxu2 %vm255_vm1, %v2488_v47 }
 0xba7   :  { %v2453_v59 = vpop.f32.mrf.mxu3 }
 0xbaf   :  { %v2456_v33 = vpop.f32.mrf.mxu3 }
 0xbb7   :  { %v2459_v24 = vpop.f32.mrf.mxu3 }
 0xbbf   :  { %v2462_v5 = vpop.f32.mrf.mxu3 }
 0xbc0   :  { %2703 = vmatpush.msrb.mxu0 %v2462_v5 }
 0xbc2   :  { %2704 = vmatpush.msrb.mxu0 %v2459_v24 }
 0xbc4   :  { %2901 = vmatpush.msra.mxu0 %v2462_v5 }
 0xbc6   :  { %2902 = vmatpush.msra.mxu0 %v2459_v24 }
 0xbc7   :  { %v2465_v29 = vpop.f32.mrf.mxu3 }
 0xbc8   :  { %2903 = vmatpush.msra.mxu0 %v2456_v33 }
 0xbca   :  { %2904 = vmatpush.msra.mxu0 %v2453_v59 }
 0xbcc   :  { %2905 = vmatpush.msra.mxu0 %v2450_v13 }
 0xbce   :  { %2906 = vmatpush.msra.mxu0 %v2447_v31 }
 0xbcf   :  { %v2468_v0 = vpop.f32.mrf.mxu3 }
 0xbd3   :  { %v4839_v1 = vpop.f32.mrf.mxu2 }
 0xbd7   :  { %v2471_v7 = vpop.f32.mrf.mxu3 }
 0xbdb   :  { %v2530_v63 = vpop.f32.mrf.mxu2 }
 0xbdc   :  { %v2589_v42 = vsel %vm350_vm2, %v2530_v63, -inf }
 0xbdd   :  { %2590 = vmax.xlane.f32.xlu0 %v2589_v42 }
 0xbdf   :  { %v2474_v26 = vpop.f32.mrf.mxu3 }
 0xbe3   :  { %v2533_v2 = vpop.f32.mrf.mxu2 }
 0xbe4   :  { %v2592_v6 = vsel %vm350_vm2, %v2533_v2, -inf }
 0xbe5   :  { %2593 = vmax.xlane.f32.xlu1 %v2592_v6 }
 0xbe7   :  { %v2477_v8 = vpop.f32.mrf.mxu3 }
 0xbeb   :  { %v2536_v10 = vpop.f32.mrf.mxu2 }
 0xbec   :  { %v2595_v11 = vsel %vm350_vm2, %v2536_v10, -inf }
 0xbed   :  { %2596 = vmax.xlane.f32.xlu2 %v2595_v11 }
 0xbef   :  { %v2480_v15 = vpop.f32.mrf.mxu3 }
 0xbf0   :  { %2744 = vmatpush.msra.mxu1 %v2480_v15 }
 0xbf2   :  { %2745 = vmatpush.msra.mxu1 %v2477_v8 }
 0xbf3   :  { %v2539_v60 = vpop.f32.mrf.mxu2 }
 0xbf4   :  { %2930 = vmatpush.msrb.mxu1 %v2480_v15  ;;  %v2598_v58 = vsel %vm350_vm2, %v2539_v60, -inf }
 0xbf5   :  { %2599 = vmax.xlane.f32.xlu1 %v2598_v58 }
 0xbf6   :  { %2931 = vmatpush.msrb.mxu1 %v2477_v8 }
 0xbf7   :  { %v4856_v59 = vpop.f32.mrf.mxu3 }
 0xbf8   :  { %2932 = vmatpush.msrb.mxu1 %v2474_v26  ;;  %v2847_v33 = vsel %vm603_vm3, %v4856_v59, -inf }
 0xbfa   :  { %2933 = vmatpush.msrb.mxu1 %v2471_v7 }
 0xbfb   :  { %v2577_v52 = vpop.f32.mrf.mxu2 }
 0xbfc   :  { %2934 = vmatpush.msrb.mxu1 %v2468_v0  ;;  %v2601_v46 = vsel %vm350_vm2, %v2577_v52, -inf }
 0xbfd   :  { %2602 = vmax.xlane.f32.xlu0 %v2601_v46 }
 0xbfe   :  { %2935 = vmatpush.msrb.mxu1 %v2465_v29 }
 0xbff   :  { %v4864_v29 = vpop.f32.mrf.mxu3 }
 0xc00   :  { %v2850_v0 = vsel %vm603_vm3, %v4864_v29, -inf }
 0xc03   :  { %v2580_v12 = vpop.f32.mrf.mxu2 }
 0xc04   :  { %v2604_v32 = vsel %vm350_vm2, %v2580_v12, -inf }
 0xc05   :  { %2605 = vmax.xlane.f32.xlu2 %v2604_v32 }
 0xc0b   :  { %v2583_v19 = vpop.f32.mrf.mxu2 }
 0xc0c   :  { %v2607_v45 = vsel %vm350_vm2, %v2583_v19, -inf }
 0xc0d   :  { %2608 = vmax.xlane.f32.xlu0 %v2607_v45 }
 0xc13   :  { %v4848_v61 = vpop.f32.mrf.mxu2 }
 0xc14   :  { %v2610_v31 = vsel %vm350_vm2, %v4848_v61, -inf }
 0xc15   :  { %2611 = vmax.xlane.f32.xlu2 %v2610_v31 }
 0xc1b   :  { %v4852_v47 = vpop.f32.mrf.mxu2 }
 0xc1c   :  { %v2841_v13 = vsel %vm603_vm3, %v4852_v47, -inf }
 0xc1d   :  { %2842 = vmax.xlane.f32.xlu1 %v2841_v13 }
 0xc23   :  { %v4860_v24 = vpop.f32.mrf.mxu2 }
 0xc24   :  { %v2844_v5 = vsel %vm603_vm3, %v4860_v24, -inf }
 0xc25   :  { %2848 = vmax.xlane.f32.xlu1 %v2847_v33  ;;  %2845 = vmax.xlane.f32.xlu0 %v2844_v5 }
 0xc2d   :  { %2851 = vmax.xlane.f32.xlu0 %v2850_v0 }
 0xc50   :  { %v2591_v7 = vpop.xlane.xlu0 %2590 }
 0xc51   :  { %v2613_v42 = vsub.f32 %v2530_v63, %v2591_v7 }
 0xc53   :  { %v2621_v26 = vmul.f32 1.442695, %v2613_v42 }
 0xc55   :  { %3641 = vpow2.f32 %v2621_v26 }
 0xc58   :  { %v2594_v6 = vpop.xlane.xlu1 %2593 }
 0xc59   :  { %v2614_v8 = vsub.f32 %v2533_v2, %v2594_v6 }
 0xc5b   :  { %v4868_v11 = vpop.eup %3641  ;;  %v2623_v15 = vmul.f32 1.442695, %v2614_v8 }
 0xc5c   :  { %v2637_v58 = vsel %vm350_vm2, %v4868_v11, 0.0 }
 0xc5d   :  { %3643 = vpow2.f32 %v2623_v15  ;;  %2638 = vadd.xlane.f32.xlu2 %v2637_v58 }
 0xc60   :  { %v2597_v46 = vpop.xlane.xlu2 %2596 }
 0xc61   :  { %v2615_v32 = vsub.f32 %v2536_v10, %v2597_v46 }
 0xc63   :  { %v4872_v45 = vpop.eup %3643  ;;  %v2625_v31 = vmul.f32 1.442695, %v2615_v32 }
 0xc64   :  { %v2640_v63 = vsel %vm350_vm2, %v4872_v45, 0.0 }
 0xc65   :  { %3645 = vpow2.f32 %v2625_v31  ;;  %2641 = vadd.xlane.f32.xlu1 %v2640_v63 }
 0xc68   :  { %v2600_v13 = vpop.xlane.xlu1 %2599 }
 0xc69   :  { %v2616_v2 = vsub.f32 %v2539_v60, %v2600_v13 }
 0xc6b   :  { %v4876_v33 = vpop.eup %3645  ;;  %v2627_v5 = vmul.f32 1.442695, %v2616_v2 }
 0xc6c   :  { %v2643_v0 = vsel %vm350_vm2, %v4876_v33, 0.0 }
 0xc6d   :  { %3647 = vpow2.f32 %v2627_v5  ;;  %2644 = vadd.xlane.f32.xlu2 %v2643_v0 }
 0xc70   :  { %v2603_v7 = vpop.xlane.xlu0 %2602 }
 0xc71   :  { %v2617_v10 = vsub.f32 %v2577_v52, %v2603_v7 }
 0xc73   :  { %v4880_v42 = vpop.eup %3647  ;;  %v2629_v26 = vmul.f32 1.442695, %v2617_v10 }
 0xc74   :  { %v2646_v6 = vsel %vm350_vm2, %v4880_v42, 0.0 }
 0xc75   :  { %3649 = vpow2.f32 %v2629_v26  ;;  %2647 = vadd.xlane.f32.xlu1 %v2646_v6 }
 0xc78   :  { %v2606_v8 = vpop.xlane.xlu2 %2605 }
 0xc79   :  { %v2618_v60 = vsub.f32 %v2580_v12, %v2606_v8 }
 0xc7b   :  { %v4884_v15 = vpop.eup %3649  ;;  %v2631_v58 = vmul.f32 1.442695, %v2618_v60 }
 0xc7c   :  { %v2649_v46 = vsel %vm350_vm2, %v4884_v15, 0.0 }
 0xc7d   :  { %3651 = vpow2.f32 %v2631_v58  ;;  %2650 = vadd.xlane.f32.xlu0 %v2649_v46 }
 0xc80   :  { %v2609_v32 = vpop.xlane.xlu0 %2608 }
 0xc81   :  { %v2619_v52 = vsub.f32 %v2583_v19, %v2609_v32 }
 0xc83   :  { %v4888_v31 = vpop.eup %3651  ;;  %v2633_v63 = vmul.f32 1.442695, %v2619_v52 }
 0xc84   :  { %v2652_v13 = vsel %vm350_vm2, %v4888_v31, 0.0 }
 0xc85   :  { %3653 = vpow2.f32 %v2633_v63  ;;  %2653 = vadd.xlane.f32.xlu2 %v2652_v13 }
 0xc88   :  { %v2612_v2 = vpop.xlane.xlu2 %2611 }
 0xc89   :  { %v2620_v12 = vsub.f32 %v4848_v61, %v2612_v2 }
 0xc8b   :  { %v4893_v5 = vpop.eup %3653  ;;  %v2635_v0 = vmul.f32 1.442695, %v2620_v12 }
 0xc8c   :  { %v2655_v7 = vsel %vm350_vm2, %v4893_v5, 0.0 }
 0xc8d   :  { %3655 = vpow2.f32 %v2635_v0  ;;  %2656 = vadd.xlane.f32.xlu0 %v2655_v7 }
 0xc90   :  { %v2843_v19 = vpop.xlane.xlu1 %2842 }
 0xc91   :  { %v2853_v10 = vsub.f32 %v4852_v47, %v2843_v19 }
 0xc93   :  { %v4898_v26 = vpop.eup %3655  ;;  %v2857_v6 = vmul.f32 1.442695, %v2853_v10 }
 0xc94   :  { %v2658_v8 = vsel %vm350_vm2, %v4898_v26, 0.0 }
 0xc95   :  { %3657 = vpow2.f32 %v2857_v6  ;;  %2659 = vadd.xlane.f32.xlu2 %v2658_v8 }
 0xc98   :  { %v2849_v61 = vpop.xlane.xlu1 %2848  ;;  %v2846_v60 = vpop.xlane.xlu0 %2845 }
 0xc99   :  { %v2855_v58 = vsub.f32 %v4856_v59, %v2849_v61  ;;  %v2854_v46 = vsub.f32 %v4860_v24, %v2846_v60 }
 0xc9b   :  { %v4904_v32 = vpop.eup %3657  ;;  %v2861_v52 = vmul.f32 1.442695, %v2855_v58  ;;  %v2859_v63 = vmul.f32 1.442695, %v2854_v46 }
 0xc9c   :  { %v2865_v47 = vsel %vm603_vm3, %v4904_v32, 0.0 }
 0xc9d   :  { %3659 = vpow2.f32 %v2861_v52  ;;  %2866 = vadd.xlane.f32.xlu1 %v2865_v47 }
 0xc9e   :  { %3661 = vpow2.f32 %v2859_v63 }
 0xca0   :  { %v2852_v13 = vpop.xlane.xlu0 %2851 }
 0xca1   :  { %v2856_v2 = vsub.f32 %v4864_v29, %v2852_v13 }
 0xca3   :  { %v3660_v12 = vpop.eup %3659  ;;  %v2863_v0 = vmul.f32 1.442695, %v2856_v2 }
 0xca4   :  { %v3662_v7 = vpop.eup %3661  ;;  %v2871_v59 = vsel %vm603_vm3, %v3660_v12, 0.0 }
 0xca5   :  { %3663 = vpow2.f32 %v2863_v0  ;;  %2872 = vadd.xlane.f32.xlu1 %v2871_v59  ;;  %v2868_v24 = vsel %vm603_vm3, %v3662_v7, 0.0 }
 0xca6   :  { %2869 = vadd.xlane.f32.xlu0 %v2868_v24 }
 0xcab   :  { %v3664_v19 = vpop.eup %3663 }
 0xcac   :  { %v2874_v10 = vsel %vm603_vm3, %v3664_v19, 0.0 }
 0xcad   :  { %2875 = vadd.xlane.f32.xlu2 %v2874_v10 }
 0xcd0   :  { %v2639_v6 = vpop.xlane.xlu2 %2638 }
 0xcd1   :  { %3665 = vrcp.f32 %v2639_v6 }
 0xcd7   :  { %v3666_v8 = vpop.eup %3665 }
 0xcd8   :  { %v2669_v61 = vmul.f32 %v3666_v8, %v4868_v11  ;;  %v2642_v29 = vpop.xlane.xlu1 %2641 }
 0xcd9   :  { %3667 = vrcp.f32 %v2642_v29 }
 0xcda   :  { %3445 = vmatmul.msk.f32.vlgmr.msrb.gmra.mxu0 %vm350_vm2, %v2669_v61 }
 0xcdf   :  { %v3668_v60 = vpop.eup %3667 }
 0xce0   :  { %v2645_v58 = vpop.xlane.xlu2 %2644  ;;  %v2670_v46 = vmul.f32 %v3668_v60, %v4872_v45 }
 0xce1   :  { %3669 = vrcp.f32 %v2645_v58 }
 0xce2   :  { %3446 = vmatmul.msk.f32.gmra.mxu0 %vm350_vm2, %v2670_v46 }
 0xce7   :  { %v3670_v52 = vpop.eup %3669 }
 0xce8   :  { %v2648_v63 = vpop.xlane.xlu1 %2647  ;;  %v2671_v47 = vmul.f32 %v3670_v52, %v4876_v33 }
 0xce9   :  { %3671 = vrcp.f32 %v2648_v63 }
 0xcea   :  { %3447 = vmatmul.msk.f32.gmra.mxu0 %vm350_vm2, %v2671_v47 }
 0xcef   :  { %v3672_v13 = vpop.eup %3671 }
 0xcf0   :  { %v2651_v11 = vpop.xlane.xlu0 %2650  ;;  %v2672_v2 = vmul.f32 %v3672_v13, %v4880_v42 }
 0xcf1   :  { %3673 = vrcp.f32 %v2651_v11 }
 0xcf2   :  { %3448 = vmatmul.msk.f32.gmra.mxu0 %vm350_vm2, %v2672_v2 }
 0xcf7   :  { %v3674_v0 = vpop.eup %3673 }
 0xcf8   :  { %v2673_v45 = vmul.f32 %v3674_v0, %v4884_v15  ;;  %v2654_v59 = vpop.xlane.xlu2 %2653 }
 0xcf9   :  { %3675 = vrcp.f32 %v2654_v59 }
 0xcfa   :  { %3449 = vmatmul.msk.f32.vlgmr.msra.gmra.mxu1 %vm350_vm2, %v2673_v45 }
 0xcff   :  { %v3676_v24 = vpop.eup %3675 }
 0xd00   :  { %v2657_v10 = vpop.xlane.xlu0 %2656  ;;  %v2674_v33 = vmul.f32 %v3676_v24, %v4888_v31 }
 0xd01   :  { %3677 = vrcp.f32 %v2657_v10 }
 0xd02   :  { %3450 = vmatmul.msk.f32.gmra.mxu1 %vm350_vm2, %v2674_v33 }
 0xd07   :  { %v3678_v6 = vpop.eup %3677 }
 0xd08   :  { %v2660_v8 = vpop.xlane.xlu2 %2659  ;;  %v2675_v42 = vmul.f32 %v3678_v6, %v4893_v5 }
 0xd09   :  { %3679 = vrcp.f32 %v2660_v8 }
 0xd0a   :  { %3451 = vmatmul.msk.f32.gmra.mxu1 %vm350_vm2, %v2675_v42  ;;  %v1450_v42 = vadd.f32 %v4464_v28, %v4536_v49 }
 0xd0f   :  { %v3680_v61 = vpop.eup %3679 }
 0xd10   :  { %v2867_v15 = vpop.xlane.xlu1 %2866  ;;  %v2676_v29 = vmul.f32 %v3680_v61, %v4898_v26  ;;  %v2256_v61 = vadd.f32 %v4823_v35, %v1450_v42 }
 0xd11   :  { %3681 = vrcp.f32 %v2867_v15  ;;  %v4954_v15 = vld [vmem:[%s5054_s5] ss:$0 sm:$0xff] }
 0xd12   :  { %3452 = vmatmul.msk.f32.gmra.mxu1 %vm350_vm2, %v2676_v29 }
 0xd17   :  { %v3682_v60 = vpop.eup %3681 }
 0xd18   :  { %v2881_v31 = vmul.f32 %v3682_v60, %v4904_v32  ;;  %v2873_v58 = vpop.xlane.xlu1 %2872  ;;  %v3473_v32 = vld [vmem:[%s5053_s4 + $0x18] sm:$0xff] }
 0xd19   :  { %3683 = vrcp.f32 %v2873_v58  ;;  %v2870_v46 = vpop.xlane.xlu0 %2869  ;;  %2984 = vmatpush.msrb.mxu2 %v3473_v32  ;;  %3045 = vmatpush.msra.mxu3 %v3473_v32  ;;  %v1453_v58 = vadd.f32 %v4468_v16, %v4544_v44 }
 0xd1a   :  { %3685 = vrcp.f32 %v2870_v46  ;;  %3469 = vmatmul.msk.f32.vlgmr.msra.gmra.mxu0 %vm603_vm3, %v2881_v31 }
 0xd1b   :  { %v2257_v28 = vadd.f32 %v4826_v40, %v1453_v58  ;;  %v1459_v40 = vadd.f32 %v4474_v4, %v4556_v39 }
 0xd1f   :  { %v3684_v5 = vpop.eup %3683 }
 0xd20   :  { %v3686_v52 = vpop.eup %3685  ;;  %v2883_v63 = vmul.f32 %v3684_v5, %v3660_v12  ;;  %v2876_v47 = vpop.xlane.xlu2 %2875  ;;  %v1456_v5 = vadd.f32 %v4471_v17, %v4548_v9  ;;  %v2259_v17 = vadd.f32 %v4831_v57, %v1459_v40  ;;  %v1465_v57 = vadd.f32 %v4480_v41, %v4572_v48 }
 0xd21   :  { %v2882_v13 = vmul.f32 %v3686_v52, %v3662_v7  ;;  %3687 = vrcp.f32 %v2876_v47 }
 0xd22   :  { %3471 = vmatmul.msk.f32.vlgmr.msrb.gmra.mxu1 %vm603_vm3, %v2883_v63  ;;  %v2258_v16 = vadd.f32 %v4829_v27, %v1456_v5  ;;  %v1462_v27 = vadd.f32 %v4477_v21, %v4562_v51  ;;  %v2261_v21 = vadd.f32 %v4835_v56, %v1465_v57  ;;  %v1471_v56 = vadd.f32 %v4484_v37, %v4584_v25 }
 0xd23   :  { %3470 = vmatmul.msk.f32.gmra.mxu0 %vm603_vm3, %v2882_v13 }
 0xd24   :  { %v2260_v4 = vadd.f32 %v4833_v20, %v1462_v27  ;;  %v1468_v20 = vadd.f32 %v4482_v43, %v4582_v14  ;;  %v2263_v43 = vadd.f32 %v4839_v1, %v1471_v56  ;;  %v1547_v1 = vadd.f32 %v4394_v36, %v4448_v54 }
 0xd25   :  { %v1553_v54 = vadd.f32 %v4403_v23, %v4456_v55 }
 0xd26   :  { %v2262_v41 = vadd.f32 %v4837_v30, %v1468_v20  ;;  %v1544_v30 = vadd.f32 %v4380_v18, %v4442_v62  ;;  %v2306_v18 = vadd.f32 %v4813_v38, %v1547_v1 }
 0xd27   :  { %v3688_v26 = vpop.eup %3687 }
 0xd28   :  { %v2884_v11 = vmul.f32 %v3688_v26, %v3664_v19  ;;  %v2305_v37 = vadd.f32 %v4809_v50, %v1544_v30  ;;  %v1550_v50 = vadd.f32 %v4400_v22, %v4452_v3  ;;  %v2308_v22 = vadd.f32 %v4820_v53, %v1553_v54 }
 0xd2a   :  { %3472 = vmatmul.msk.f32.gmra.mxu1 %vm603_vm3, %v2884_v11 }
 0xd57   :  { %v2706_v2 = vpop.f32.mrf.mxu0 }
 0xd58   :  { %3474 = vmatmul.msk.f32.vlgmr.msrb.gmra.mxu2 %vm255_vm1, %v2706_v2 }
 0xd5f   :  { %v2709_v12 = vpop.f32.mrf.mxu0 }
 0xd60   :  { %3475 = vmatmul.msk.f32.gmra.mxu2 %vm255_vm1, %v2709_v12 }
 0xd67   :  { %v2712_v7 = vpop.f32.mrf.mxu0 }
 0xd68   :  { %3476 = vmatmul.msk.f32.gmra.mxu2 %vm255_vm1, %v2712_v7 }
 0xd6f   :  { %v2715_v0 = vpop.f32.mrf.mxu0 }
 0xd70   :  { %3477 = vmatmul.msk.f32.gmra.mxu2 %vm255_vm1, %v2715_v0 }
 0xd77   :  { %v2747_v19 = vpop.f32.mrf.mxu1 }
 0xd78   :  { %3478 = vmatmul.msk.f32.gmra.mxu2 %vm255_vm1, %v2747_v19 }
 0xd7f   :  { %v2750_v45 = vpop.f32.mrf.mxu1 }
 0xd80   :  { %3479 = vmatmul.msk.f32.gmra.mxu2 %vm255_vm1, %v2750_v45 }
 0xd87   :  { %v2753_v59 = vpop.f32.mrf.mxu1 }
 0xd88   :  { %3480 = vmatmul.msk.f32.gmra.mxu2 %vm255_vm1, %v2753_v59 }
 0xd8f   :  { %v2756_v24 = vpop.f32.mrf.mxu1 }
 0xd90   :  { %3481 = vmatmul.msk.f32.gmra.mxu2 %vm255_vm1, %v2756_v24 }
 0xd97   :  { %v2908_v10 = vpop.f32.mrf.mxu0 }
 0xd98   :  { %3482 = vmatmul.msk.f32.vlgmr.msra.gmra.mxu3 %vm255_vm1, %v2908_v10 }
 0xd9f   :  { %v2937_v6 = vpop.f32.mrf.mxu1 }
 0xda0   :  { %v2911_v33 = vpop.f32.mrf.mxu0 }
 0xda1   :  { %3483 = vmatmul.msk.f32.gmra.mxu3 %vm255_vm1, %v2911_v33  ;;  %v2307_v33 = vadd.f32 %v4817_v34, %v1550_v50 }
 0xda7   :  { %v2940_v8 = vpop.f32.mrf.mxu1 }
 0xda9   :  { %3484 = vmatmul.msk.f32.gmra.mxu3 %vm255_vm1, %v2937_v6 }
 0xdb1   :  { %3485 = vmatmul.msk.f32.gmra.mxu3 %vm255_vm1, %v2940_v8 }
 0xddb   :  { %v2986_v29 = vpop.f32.mrf.mxu2 }
 0xddc   :  { %v3010_v60 = vadd.f32 %v2986_v29, %v2256_v61 }
 0xdde   :  { %v3067_v31 = vadd.f32 %v4954_v15, %v3010_v60 }
 0xde0   :  { %3079 = vst.msk [vmem:[%s5055_s6] sm:$0xff] %vm39_vm0, %v3067_v31 }
 0xde3   :  { %v2989_v49 = vpop.f32.mrf.mxu2 }
 0xde4   :  { %v3011_v35 = vadd.f32 %v2989_v49, %v2257_v28 }
 0xde6   :  { %v3068_v46 = vadd.f32 %v4954_v15, %v3011_v35 }
 0xde8   :  { %3080 = vst.msk [vmem:[%s5055_s6 + $0x8] sm:$0xff] %vm39_vm0, %v3068_v46 }
 0xdeb   :  { %v2992_v44 = vpop.f32.mrf.mxu2 }
 0xdec   :  { %v3012_v52 = vadd.f32 %v2992_v44, %v2258_v16 }
 0xdee   :  { %v3069_v63 = vadd.f32 %v4954_v15, %v3012_v52 }
 0xdf0   :  { %3081 = vst.msk [vmem:[%s5055_s6 + $0x10] sm:$0xff] %vm39_vm0, %v3069_v63 }
 0xdf3   :  { %v2995_v9 = vpop.f32.mrf.mxu2 }
 0xdf4   :  { %v3013_v47 = vadd.f32 %v2995_v9, %v2259_v17 }
 0xdf6   :  { %v3070_v13 = vadd.f32 %v4954_v15, %v3013_v47 }
 0xdf8   :  { %3082 = vst.msk [vmem:[%s5055_s6 + $0x18] sm:$0xff] %vm39_vm0, %v3070_v13 }
 0xdfb   :  { %v2998_v39 = vpop.f32.mrf.mxu2 }
 0xdfc   :  { %v3014_v26 = vadd.f32 %v2998_v39, %v2260_v4 }
 0xdfe   :  { %v3071_v11 = vadd.f32 %v4954_v15, %v3014_v26 }
 0xe00   :  { %3083 = vst.msk [vmem:[%s5055_s6 + $0x30] sm:$0xff] %vm39_vm0, %v3071_v11 }
 0xe03   :  { %v3001_v51 = vpop.f32.mrf.mxu2 }
 0xe04   :  { %v3015_v32 = vadd.f32 %v3001_v51, %v2261_v21 }
 0xe06   :  { %v3072_v2 = vadd.f32 %v4954_v15, %v3015_v32 }
 0xe08   :  { %3084 = vst.msk [vmem:[%s5055_s6 + $0x38] sm:$0xff] %vm39_vm0, %v3072_v2 }
 0xe0b   :  { %v3004_v48 = vpop.f32.mrf.mxu2 }
 0xe0c   :  { %v3016_v12 = vadd.f32 %v3004_v48, %v2262_v41 }
 0xe0e   :  { %v3073_v7 = vadd.f32 %v4954_v15, %v3016_v12 }
 0xe10   :  { %3085 = vst.msk [vmem:[%s5055_s6 + $0x40] sm:$0xff] %vm39_vm0, %v3073_v7 }
 0xe13   :  { %v3007_v14 = vpop.f32.mrf.mxu2 }
 0xe14   :  { %v3017_v0 = vadd.f32 %v3007_v14, %v2263_v43 }
 0xe16   :  { %v3074_v19 = vadd.f32 %v4954_v15, %v3017_v0 }
 0xe18   :  { %3086 = vst.msk [vmem:[%s5055_s6 + $0x48] sm:$0xff] %vm39_vm0, %v3074_v19 }
 0xe1b   :  { %v3047_v25 = vpop.f32.mrf.mxu3 }
 0xe1c   :  { %v3059_v45 = vadd.f32 %v3047_v25, %v2305_v37 }
 0xe1e   :  { %v3075_v59 = vadd.f32 %v4954_v15, %v3059_v45 }
 0xe20   :  { %3087 = vst.msk [vmem:[%s5055_s6 + $0x20] sm:$0xff] %vm39_vm0, %v3075_v59 }
 0xe24   :  { %v3050_v62 = vpop.f32.mrf.mxu3 }
 0xe25   :  { %v3060_v24 = vadd.f32 %v3050_v62, %v2306_v18 }
 0xe27   :  { %v3076_v10 = vadd.f32 %v4954_v15, %v3060_v24 }
 0xe29   :  { %3088 = vst.msk [vmem:[%s5055_s6 + $0x28] sm:$0xff] %vm39_vm0, %v3076_v10 }
 0xe2c   :  { %v3053_v6 = vpop.f32.mrf.mxu3 }
 0xe2d   :  { %v3061_v8 = vadd.f32 %v3053_v6, %v2307_v33 }
 0xe2f   :  { %v3077_v36 = vadd.f32 %v4954_v15, %v3061_v8 }
 0xe31   :  { %3089 = vst.msk [vmem:[%s5055_s6 + $0x50] sm:$0xff] %vm39_vm0, %v3077_v36 }
 0xe34   :  { %v3056_v3 = vpop.f32.mrf.mxu3 }
 0xe35   :  { %v3062_v38 = vadd.f32 %v3056_v3, %v2308_v22 }
 0xe37   :  { %v3078_v42 = vadd.f32 %v4954_v15, %v3062_v38 }
 0xe39   :  { %3090 = vst.msk [vmem:[%s5055_s6 + $0x58] sm:$0xff] %vm39_vm0, %v3078_v42 }

</bundles_post_ra>
